<compile_context>
chip_gen: v5e
topology: v5e:2x2
jax: 0.10.0
libtpu: 0.0.40
codegen_flags: <defaults>
</compile_context>

<pallas_src>
import functools

import jax
import jax.numpy as jnp
from jax import lax
from jax.experimental import pallas as pl
from jax.experimental.pallas import tpu as pltpu

EPS = 1e-5

# Target bytes for a streamed (TM, C) activation block (per perf guidance: 2-8 MiB
# blocks keep the ~0.35us/step grid overhead negligible on the mem-bound stages).
_BLOCK_BYTES_TARGET = 4 * 1024 * 1024


@functools.lru_cache(maxsize=None)
def _vmem_limit_bytes():
    """Scoped-VMEM limit: ~3/4 of physical VMEM, capped at 96 MiB (v5e/v6e have
    128 MiB physical, v7x has 64 MiB -> 48 MiB), safe fallback 48 MiB."""
    try:
        cap = int(pltpu.get_tpu_info().vmem_capacity_bytes)
    except Exception:
        cap = 64 * 1024 * 1024
    return max(48 * 1024 * 1024, min(96 * 1024 * 1024, (cap * 3) // 4))


def _compiler_params():
    return pltpu.CompilerParams(
        dimension_semantics=("parallel",),
        vmem_limit_bytes=_vmem_limit_bytes(),
    )


def _pick_row_tile(total_rows, target):
    """Largest divisor of total_rows that is <= target and a multiple of 16
    (bf16 packs two rows per sublane); falls back to 8-multiples, then to the
    full extent (always a legal block shape)."""
    if total_rows <= target:
        return total_rows
    for mult in (16, 8):
        t = (target // mult) * mult
        while t >= mult:
            if total_rows % t == 0:
                return t
            t -= mult
    return total_rows


# ---------------------------------------------------------------------------
# K1 / K3: (optional bn+relu) -> 1x1 conv (matmul) -> per-tile channel stats
# ---------------------------------------------------------------------------
def _mm_stats_kernel(*refs, prenorm, compute_dtype):
    if prenorm:
        x_ref, w_ref, scale_ref, shift_ref, h_ref, sum_ref, ssq_ref = refs
    else:
        x_ref, w_ref, h_ref, sum_ref, ssq_ref = refs

    cd = jnp.dtype(compute_dtype)
    if prenorm:
        # previous stage's BatchNorm folded into a per-channel affine, then ReLU
        x = x_ref[...].astype(jnp.float32)
        xin = jnp.maximum(x * scale_ref[...] + shift_ref[...], 0.0).astype(cd)
    else:
        # no f32 round-trip: feed the input (cast only if needed) straight to the MXU
        xin = x_ref[...].astype(cd)

    # compute_dtype (bf16 by default) MXU operands, f32 accumulation
    h = jnp.dot(xin, w_ref[...], preferred_element_type=jnp.float32)   # (TM, Cout)

    h_ref[...] = h.astype(h_ref.dtype)
    # per-tile BN partials (f32): sum and sum-of-squares, combined outside with
    # Chan's formula for a numerically safe global variance.
    sum_ref[...] = jnp.sum(h, axis=0).reshape(1, 1, -1)
    ssq_ref[...] = jnp.sum(h * h, axis=0).reshape(1, 1, -1)


def _mm_stage(x2d, w, scale=None, shift=None, *, compute_dtype, row_tile):
    R, Cin = x2d.shape
    Cout = w.shape[1]
    bytes_per_row = max(Cin, Cout) * max(x2d.dtype.itemsize,
                                         jnp.dtype(compute_dtype).itemsize)
    target = max(row_tile, _BLOCK_BYTES_TARGET // bytes_per_row)
    TM = _pick_row_tile(R, target)
    G = R // TM
    prenorm = scale is not None

    in_specs = [pl.BlockSpec((TM, Cin), lambda i: (i, 0)),
                pl.BlockSpec((Cin, Cout), lambda i: (0, 0))]
    args = [x2d, w]
    if prenorm:
        in_specs += [pl.BlockSpec((1, Cin), lambda i: (0, 0)),
                     pl.BlockSpec((1, Cin), lambda i: (0, 0))]
        args += [scale, shift]

    out_shape = (jax.ShapeDtypeStruct((R, Cout), compute_dtype),
                 jax.ShapeDtypeStruct((G, 1, Cout), jnp.float32),
                 jax.ShapeDtypeStruct((G, 1, Cout), jnp.float32))
    out_specs = (pl.BlockSpec((TM, Cout), lambda i: (i, 0)),
                 pl.BlockSpec((1, 1, Cout), lambda i: (i, 0, 0)),
                 pl.BlockSpec((1, 1, Cout), lambda i: (i, 0, 0)))

    h, s, ss = pl.pallas_call(
        functools.partial(_mm_stats_kernel, prenorm=prenorm,
                          compute_dtype=compute_dtype),
        grid=(G,),
        in_specs=in_specs,
        out_specs=out_specs,
        out_shape=out_shape,
        compiler_params=_compiler_params(),
    )(*args)
    return h, s, ss, TM


# ---------------------------------------------------------------------------
# K2: bn1+relu -> 3x3 conv (pad=1) via 9 accumulated tap matmuls -> bn2 stats
# ---------------------------------------------------------------------------
def _conv3x3_kernel(h1_ref, w2_ref, scale_ref, shift_ref,
                    h2_ref, sum_ref, ssq_ref, *, compute_dtype):
    _, H, W, C = h1_ref.shape
    cd = jnp.dtype(compute_dtype)

    # bn1 folded to a per-channel affine, then ReLU; MXU operands in compute_dtype
    y = h1_ref[...].reshape(H, W, C).astype(jnp.float32)
    y = jnp.maximum(y * scale_ref[...] + shift_ref[...], 0.0).astype(cd)

    zrow = jnp.zeros((1, W, C), cd)
    zcol = jnp.zeros((H, 1, C), cd)
    # row-shifted variants (H is a leading dim -> cheap shifts)
    y_rows = (jnp.concatenate([zrow, y[:-1]], axis=0),    # ky = 0  (reads y[i-1])
              y,                                           # ky = 1
              jnp.concatenate([y[1:], zrow], axis=0))      # ky = 2  (reads y[i+1])

    # 9 tap matmuls accumulated in f32: no padded scratch writeback, no re-read of
    # misaligned slices, no (H*W, 9C) im2col buffer.
    acc = jnp.zeros((H * W, C), jnp.float32)
    for ky in range(3):
        yr = y_rows[ky]
        for kx in range(3):
            if kx == 0:      # reads y[:, j-1]
                yt = jnp.concatenate([zcol, yr[:, :-1, :]], axis=1)
            elif kx == 1:
                yt = yr
            else:            # reads y[:, j+1]
                yt = jnp.concatenate([yr[:, 1:, :], zcol], axis=1)
            acc = acc + jnp.dot(yt.reshape(H * W, C), w2_ref[3 * ky + kx],
                                preferred_element_type=jnp.float32)

    h2_ref[...] = acc.reshape(1, H * W, C).astype(h2_ref.dtype)
    sum_ref[...] = jnp.sum(acc, axis=0).reshape(1, 1, -1)
    ssq_ref[...] = jnp.sum(acc * acc, axis=0).reshape(1, 1, -1)


def _conv3x3_stage(h1, w2r, scale1, shift1, *, compute_dtype):
    N, H, W, Cw = h1.shape
    out_shape = (jax.ShapeDtypeStruct((N, H * W, Cw), compute_dtype),
                 jax.ShapeDtypeStruct((N, 1, Cw), jnp.float32),
                 jax.ShapeDtypeStruct((N, 1, Cw), jnp.float32))
    in_specs = [pl.BlockSpec((1, H, W, Cw), lambda n: (n, 0, 0, 0)),
                pl.BlockSpec(w2r.shape, lambda n: (0, 0, 0)),
                pl.BlockSpec((1, Cw), lambda n: (0, 0)),
                pl.BlockSpec((1, Cw), lambda n: (0, 0))]
    out_specs = (pl.BlockSpec((1, H * W, Cw), lambda n: (n, 0, 0)),
                 pl.BlockSpec((1, 1, Cw), lambda n: (n, 0, 0)),
                 pl.BlockSpec((1, 1, Cw), lambda n: (n, 0, 0)))

    h2, s, ss = pl.pallas_call(
        functools.partial(_conv3x3_kernel, compute_dtype=compute_dtype),
        grid=(N,),
        in_specs=in_specs,
        out_specs=out_specs,
        out_shape=out_shape,
        compiler_params=_compiler_params(),
    )(h1, w2r, scale1, shift1)
    return h2.reshape(N * H * W, Cw), s, ss, H * W


# ---------------------------------------------------------------------------
# K4: bn3 -> residual add -> relu  (lane-dense: last dim packs W*C)
# ---------------------------------------------------------------------------
def _finalize_kernel(h3_ref, x_ref, scale_ref, shift_ref, out_ref):
    h3 = h3_ref[...].astype(jnp.float32)
    x = x_ref[...].astype(jnp.float32)
    out = jnp.maximum(h3 * scale_ref[...] + shift_ref[...] + x, 0.0)
    out_ref[...] = out.astype(out_ref.dtype)


def _finalize_stage(h3, x2d, scale3, shift3, out_dtype, *, n_rows, lane_cols,
                    row_tile):
    R, C = h3.shape
    # lane-dense packing: view (R, C) as (n_rows, W*C) so stores fill 128-lane vregs
    h3p = h3.reshape(n_rows, lane_cols)
    xp = x2d.reshape(n_rows, lane_cols)
    rep = lane_cols // C
    scale_p = jnp.tile(scale3, (1, rep))
    shift_p = jnp.tile(shift3, (1, rep))

    bytes_per_row = lane_cols * 4
    target = max(row_tile, _BLOCK_BYTES_TARGET // bytes_per_row)
    TM = _pick_row_tile(n_rows, target)
    G = n_rows // TM

    out = pl.pallas_call(
        _finalize_kernel,
        grid=(G,),
        in_specs=[pl.BlockSpec((TM, lane_cols), lambda i: (i, 0)),
                  pl.BlockSpec((TM, lane_cols), lambda i: (i, 0)),
                  pl.BlockSpec((1, lane_cols), lambda i: (0, 0)),
                  pl.BlockSpec((1, lane_cols), lambda i: (0, 0))],
        out_specs=pl.BlockSpec((TM, lane_cols), lambda i: (i, 0)),
        out_shape=jax.ShapeDtypeStruct((n_rows, lane_cols), out_dtype),
        compiler_params=_compiler_params(),
    )(h3p, xp, scale_p, shift_p)
    return out.reshape(R, C)


# ---------------------------------------------------------------------------
# glue: fold training-mode BN stats into per-channel (scale, shift)
# ---------------------------------------------------------------------------
def _bn_affine(tile_sum, tile_ssq, tile_count, g, b):
    """Combine per-tile (count, mean, M2) with Chan's parallel formula, then fold
    the BatchNorm (biased var, eps=1e-5) + affine into per-channel scale/shift."""
    G = tile_sum.shape[0]
    s = tile_sum.reshape(G, -1)        # (G, C)
    ss = tile_ssq.reshape(G, -1)       # (G, C)
    n_i = jnp.float32(tile_count)
    total = n_i * G
    mean_i = s / n_i
    m2_i = ss - s * mean_i             # per-tile sum of squared deviations
    mean = jnp.sum(s, axis=0) / total
    m2 = jnp.sum(m2_i, axis=0) + n_i * jnp.sum((mean_i - mean[None, :]) ** 2, axis=0)
    var = jnp.maximum(m2 / total, 0.0)
    inv = lax.rsqrt(var + EPS)
    scale = g.reshape(-1).astype(jnp.float32) * inv
    shift = b.reshape(-1).astype(jnp.float32) - mean * scale
    return scale.reshape(1, -1), shift.reshape(1, -1)


@functools.partial(jax.jit, static_argnames=("compute_dtype", "row_tile"))
def bottleneck_pallas(x, w1, g1, b1, w2, g2, b2, w3, g3, b3,
                      *, compute_dtype=jnp.bfloat16, row_tile=1024):
    N, H, W, Cin = x.shape
    Cw = w1.shape[1]
    Cout = w3.shape[1]
    assert Cin == Cout, "identity shortcut needs inplanes == planes*expansion"
    R = N * H * W
    cd = jnp.dtype(compute_dtype)

    x2d = x.reshape(R, Cin)

    # --- stage 1: conv1x1 #1, bn1 batch-stat partials ------------------------
    h1, s1, ss1, c1 = _mm_stage(x2d, w1.astype(cd),
                                compute_dtype=compute_dtype, row_tile=row_tile)
    scale1, shift1 = _bn_affine(s1, ss1, c1, g1, b1)

    # --- stage 2: bn1+relu -> 3x3 conv (pad=1), bn2 partials ------------------
    w2r = w2.reshape(9, Cw, Cw).astype(cd)     # (ky,kx)-major, (cin,cout) per tap
    h2, s2, ss2, c2 = _conv3x3_stage(h1.reshape(N, H, W, Cw), w2r, scale1, shift1,
                                     compute_dtype=compute_dtype)
    scale2, shift2 = _bn_affine(s2, ss2, c2, g2, b2)

    # --- stage 3: bn2+relu -> conv1x1 #3, bn3 partials ------------------------
    h3, s3, ss3, c3 = _mm_stage(h2, w3.astype(cd), scale2, shift2,
                                compute_dtype=compute_dtype, row_tile=row_tile)
    scale3, shift3 = _bn_affine(s3, ss3, c3, g3, b3)

    # --- stage 4: bn3 -> residual add -> relu (lane-dense) --------------------
    out = _finalize_stage(h3, x2d, scale3, shift3, x.dtype,
                          n_rows=N * H, lane_cols=W * Cout, row_tile=row_tile)
    return out.reshape(N, H, W, Cout)


# ---------------- pure-JAX reference (for correctness check) ----------------
def _bn_ref(h, g, b):
    mean = jnp.mean(h, axis=(0, 1, 2), keepdims=True)
    var = jnp.mean((h - mean) ** 2, axis=(0, 1, 2), keepdims=True)
    return (h - mean) / jnp.sqrt(var + EPS) * g.reshape(1, 1, 1, -1) + b.reshape(1, 1, 1, -1)


def _conv_ref(x, w, pad):
    return jax.lax.conv_general_dilated(
        x, w, window_strides=(1, 1), padding=pad,
        dimension_numbers=('NHWC', 'HWIO', 'NHWC'))


def bottleneck_ref(x, w1, g1, b1, w2, g2, b2, w3, g3, b3):
    Cin = x.shape[-1]
    Cw = w1.shape[1]
    h = _conv_ref(x, w1.reshape(1, 1, Cin, Cw), ((0, 0), (0, 0)))
    h = jnp.maximum(_bn_ref(h, g1, b1), 0.0)
    h = _conv_ref(h, w2, ((1, 1), (1, 1)))
    h = jnp.maximum(_bn_ref(h, g2, b2), 0.0)
    h = _conv_ref(h, w3.reshape(1, 1, Cw, w3.shape[1]), ((0, 0), (0, 0)))
    h = _bn_ref(h, g3, b3)
    return jnp.maximum(h + x, 0.0)


if __name__ == "__main__":
    # Small shapes consistent with the module: inplanes = planes * expansion so the
    # identity shortcut (downsample=None) type-checks, as in a standard ResNet stage.
    N, H, W = 2, 16, 16
    planes = 4
    inplanes = planes * 4          # = 16 (Bottleneck.expansion = 4)
    width = planes                 # base_width=64, groups=1 -> width = planes
    cout = planes * 4              # = 16

    key = jax.random.PRNGKey(0)
    ks = jax.random.split(key, 10)

    x = jax.random.normal(ks[0], (N, H, W, inplanes), jnp.float32)

    w1 = 0.1 * jax.random.normal(ks[1], (inplanes, width), jnp.float32)       # conv1 1x1
    w2 = 0.1 * jax.random.normal(ks[2], (3, 3, width, width), jnp.float32)    # conv2 3x3 HWIO
    w3 = 0.1 * jax.random.normal(ks[3], (width, cout), jnp.float32)           # conv3 1x1

    g1 = 1.0 + 0.1 * jax.random.normal(ks[4], (1, width), jnp.float32)
    b1 = 0.1 * jax.random.normal(ks[5], (1, width), jnp.float32)
    g2 = 1.0 + 0.1 * jax.random.normal(ks[6], (1, width), jnp.float32)
    b2 = 0.1 * jax.random.normal(ks[7], (1, width), jnp.float32)
    g3 = 1.0 + 0.1 * jax.random.normal(ks[8], (1, cout), jnp.float32)
    b3 = 0.1 * jax.random.normal(ks[9], (1, cout), jnp.float32)

    args = (x, w1, g1, b1, w2, g2, b2, w3, g3, b3)

    ref = jax.block_until_ready(bottleneck_ref(*args))

    # exact-precision path: f32 compute, tight tolerance vs the XLA reference
    out_f32 = jax.block_until_ready(bottleneck_pallas(*args, compute_dtype=jnp.float32))
    assert out_f32.shape == (N, H, W, cout)
    assert jnp.allclose(out_f32, ref, rtol=1e-3, atol=1e-3), "f32 mismatch vs reference"

    # performance path (default): bf16 MXU operands / bf16 intermediates,
    # f32 accumulation and f32 BN statistics
    out_bf16 = jax.block_until_ready(bottleneck_pallas(*args))
    assert out_bf16.shape == (N, H, W, cout)
    assert jnp.allclose(out_bf16, ref, rtol=5e-2, atol=1e-1), "bf16 mismatch vs reference"

    print("KERNEL_OK")
</pallas_src>

<mosaic_0001>
module attributes {stable_mosaic.version = 11 : i64} {
  func.func @_conv3x3_kernel(%arg0: i32, %arg1: memref<1x16x16x4xf32, #tpu.memory_space<vmem>>, %arg2: memref<9x4x4xf32, #tpu.memory_space<vmem>>, %arg3: memref<1x4xf32, #tpu.memory_space<vmem>>, %arg4: memref<1x4xf32, #tpu.memory_space<vmem>>, %arg5: memref<1x256x4xf32, #tpu.memory_space<vmem>>, %arg6: memref<1x1x4xf32, #tpu.memory_space<vmem>>, %arg7: memref<1x1x4xf32, #tpu.memory_space<vmem>>) attributes {dimension_semantics = [#tpu.dimension_semantics<parallel>], iteration_bounds = array<i64: 2>, scalar_prefetch = 0 : i64, scratch_operands = 0 : i64, tpu.core_type = #tpu.core_type<tc>, window_params = [{transform_indices = @transform_0, window_bounds = array<i64: 1, 16, 16, 4>}, {pipeline_mode = #tpu.pipeline_mode<synchronous>, transform_indices = @transform_1, window_bounds = array<i64: 9, 4, 4>}, {pipeline_mode = #tpu.pipeline_mode<synchronous>, transform_indices = @transform_2, window_bounds = array<i64: 1, 4>}, {pipeline_mode = #tpu.pipeline_mode<synchronous>, transform_indices = @transform_3, window_bounds = array<i64: 1, 4>}, {transform_indices = @transform_4, window_bounds = array<i64: 1, 256, 4>}, {transform_indices = @transform_5, window_bounds = array<i64: 1, 1, 4>}, {transform_indices = @transform_6, window_bounds = array<i64: 1, 1, 4>}]} {
    %c0 = arith.constant 0 : index
    %c0_0 = arith.constant 0 : index
    %c0_1 = arith.constant 0 : index
    %c0_2 = arith.constant 0 : index
    %0 = vector.load %arg1[%c0, %c0_0, %c0_1, %c0_2] : memref<1x16x16x4xf32, #tpu.memory_space<vmem>>, vector<1x16x16x4xf32>
    %1 = vector.shape_cast %0 : vector<1x16x16x4xf32> to vector<16x16x4xf32>
    %c0_3 = arith.constant 0 : index
    %c0_4 = arith.constant 0 : index
    %2 = vector.load %arg3[%c0_3, %c0_4] : memref<1x4xf32, #tpu.memory_space<vmem>>, vector<1x4xf32>
    %3 = vector.shape_cast %2 : vector<1x4xf32> to vector<1x1x4xf32>
    %4 = vector.broadcast %3 : vector<1x1x4xf32> to vector<16x16x4xf32>
    %5 = arith.mulf %1, %4 : vector<16x16x4xf32>
    %c0_5 = arith.constant 0 : index
    %c0_6 = arith.constant 0 : index
    %6 = vector.load %arg4[%c0_5, %c0_6] : memref<1x4xf32, #tpu.memory_space<vmem>>, vector<1x4xf32>
    %7 = vector.shape_cast %6 : vector<1x4xf32> to vector<1x1x4xf32>
    %8 = vector.broadcast %7 : vector<1x1x4xf32> to vector<16x16x4xf32>
    %9 = arith.addf %5, %8 : vector<16x16x4xf32>
    %cst = arith.constant 0.000000e+00 : f32
    %10 = vector.broadcast %cst : f32 to vector<16x16x4xf32>
    %11 = arith.maximumf %9, %10 : vector<16x16x4xf32>
    %cst_7 = arith.constant 0.000000e+00 : f32
    %12 = vector.broadcast %cst_7 : f32 to vector<1x16x4xf32>
    %cst_8 = arith.constant 0.000000e+00 : f32
    %13 = vector.broadcast %cst_8 : f32 to vector<16x1x4xf32>
    %14 = vector.extract_strided_slice %11 {offsets = [0, 0, 0], sizes = [15, 16, 4], strides = [1, 1, 1]} : vector<16x16x4xf32> to vector<15x16x4xf32>
    %15 = tpu.concatenate %12, %14 in 0 : vector<1x16x4xf32>, vector<15x16x4xf32> -> vector<16x16x4xf32>
    %16 = vector.extract_strided_slice %11 {offsets = [1, 0, 0], sizes = [15, 16, 4], strides = [1, 1, 1]} : vector<16x16x4xf32> to vector<15x16x4xf32>
    %17 = tpu.concatenate %16, %12 in 0 : vector<15x16x4xf32>, vector<1x16x4xf32> -> vector<16x16x4xf32>
    %cst_9 = arith.constant 0.000000e+00 : f32
    %18 = vector.broadcast %cst_9 : f32 to vector<256x4xf32>
    %19 = vector.extract_strided_slice %15 {offsets = [0, 0, 0], sizes = [16, 15, 4], strides = [1, 1, 1]} : vector<16x16x4xf32> to vector<16x15x4xf32>
    %20 = tpu.concatenate %13, %19 in 1 : vector<16x1x4xf32>, vector<16x15x4xf32> -> vector<16x16x4xf32>
    %21 = vector.shape_cast %20 : vector<16x16x4xf32> to vector<256x4xf32>
    %c0_10 = arith.constant 0 : index
    %c0_11 = arith.constant 0 : index
    %c0_12 = arith.constant 0 : index
    %22 = vector.load %arg2[%c0_10, %c0_11, %c0_12] : memref<9x4x4xf32, #tpu.memory_space<vmem>>, vector<1x4x4xf32>
    %23 = vector.shape_cast %22 : vector<1x4x4xf32> to vector<4x4xf32>
    %cst_13 = arith.constant dense<0.000000e+00> : vector<256x4xf32>
    %24 = tpu.matmul %21, %23, %cst_13 {dimension_numbers = #tpu.dot_dimension_numbers<[1], [0], [0], [1], [0, 0, 1, 1], [], []>} : vector<256x4xf32>, vector<4x4xf32>, vector<256x4xf32> -> vector<256x4xf32>
    %25 = arith.addf %18, %24 : vector<256x4xf32>
    %26 = vector.shape_cast %15 : vector<16x16x4xf32> to vector<256x4xf32>
    %c1 = arith.constant 1 : index
    %c0_14 = arith.constant 0 : index
    %c0_15 = arith.constant 0 : index
    %27 = vector.load %arg2[%c1, %c0_14, %c0_15] : memref<9x4x4xf32, #tpu.memory_space<vmem>>, vector<1x4x4xf32>
    %28 = vector.shape_cast %27 : vector<1x4x4xf32> to vector<4x4xf32>
    %cst_16 = arith.constant dense<0.000000e+00> : vector<256x4xf32>
    %29 = tpu.matmul %26, %28, %cst_16 {dimension_numbers = #tpu.dot_dimension_numbers<[1], [0], [0], [1], [0, 0, 1, 1], [], []>} : vector<256x4xf32>, vector<4x4xf32>, vector<256x4xf32> -> vector<256x4xf32>
    %30 = arith.addf %25, %29 : vector<256x4xf32>
    %31 = vector.extract_strided_slice %15 {offsets = [0, 1, 0], sizes = [16, 15, 4], strides = [1, 1, 1]} : vector<16x16x4xf32> to vector<16x15x4xf32>
    %32 = tpu.concatenate %31, %13 in 1 : vector<16x15x4xf32>, vector<16x1x4xf32> -> vector<16x16x4xf32>
    %33 = vector.shape_cast %32 : vector<16x16x4xf32> to vector<256x4xf32>
    %c2 = arith.constant 2 : index
    %c0_17 = arith.constant 0 : index
    %c0_18 = arith.constant 0 : index
    %34 = vector.load %arg2[%c2, %c0_17, %c0_18] : memref<9x4x4xf32, #tpu.memory_space<vmem>>, vector<1x4x4xf32>
    %35 = vector.shape_cast %34 : vector<1x4x4xf32> to vector<4x4xf32>
    %cst_19 = arith.constant dense<0.000000e+00> : vector<256x4xf32>
    %36 = tpu.matmul %33, %35, %cst_19 {dimension_numbers = #tpu.dot_dimension_numbers<[1], [0], [0], [1], [0, 0, 1, 1], [], []>} : vector<256x4xf32>, vector<4x4xf32>, vector<256x4xf32> -> vector<256x4xf32>
    %37 = arith.addf %30, %36 : vector<256x4xf32>
    %38 = vector.extract_strided_slice %11 {offsets = [0, 0, 0], sizes = [16, 15, 4], strides = [1, 1, 1]} : vector<16x16x4xf32> to vector<16x15x4xf32>
    %39 = tpu.concatenate %13, %38 in 1 : vector<16x1x4xf32>, vector<16x15x4xf32> -> vector<16x16x4xf32>
    %40 = vector.shape_cast %39 : vector<16x16x4xf32> to vector<256x4xf32>
    %c3 = arith.constant 3 : index
    %c0_20 = arith.constant 0 : index
    %c0_21 = arith.constant 0 : index
    %41 = vector.load %arg2[%c3, %c0_20, %c0_21] : memref<9x4x4xf32, #tpu.memory_space<vmem>>, vector<1x4x4xf32>
    %42 = vector.shape_cast %41 : vector<1x4x4xf32> to vector<4x4xf32>
    %cst_22 = arith.constant dense<0.000000e+00> : vector<256x4xf32>
    %43 = tpu.matmul %40, %42, %cst_22 {dimension_numbers = #tpu.dot_dimension_numbers<[1], [0], [0], [1], [0, 0, 1, 1], [], []>} : vector<256x4xf32>, vector<4x4xf32>, vector<256x4xf32> -> vector<256x4xf32>
    %44 = arith.addf %37, %43 : vector<256x4xf32>
    %45 = vector.shape_cast %11 : vector<16x16x4xf32> to vector<256x4xf32>
    %c4 = arith.constant 4 : index
    %c0_23 = arith.constant 0 : index
    %c0_24 = arith.constant 0 : index
    %46 = vector.load %arg2[%c4, %c0_23, %c0_24] : memref<9x4x4xf32, #tpu.memory_space<vmem>>, vector<1x4x4xf32>
    %47 = vector.shape_cast %46 : vector<1x4x4xf32> to vector<4x4xf32>
    %cst_25 = arith.constant dense<0.000000e+00> : vector<256x4xf32>
    %48 = tpu.matmul %45, %47, %cst_25 {dimension_numbers = #tpu.dot_dimension_numbers<[1], [0], [0], [1], [0, 0, 1, 1], [], []>} : vector<256x4xf32>, vector<4x4xf32>, vector<256x4xf32> -> vector<256x4xf32>
    %49 = arith.addf %44, %48 : vector<256x4xf32>
    %50 = vector.extract_strided_slice %11 {offsets = [0, 1, 0], sizes = [16, 15, 4], strides = [1, 1, 1]} : vector<16x16x4xf32> to vector<16x15x4xf32>
    %51 = tpu.concatenate %50, %13 in 1 : vector<16x15x4xf32>, vector<16x1x4xf32> -> vector<16x16x4xf32>
    %52 = vector.shape_cast %51 : vector<16x16x4xf32> to vector<256x4xf32>
    %c5 = arith.constant 5 : index
    %c0_26 = arith.constant 0 : index
    %c0_27 = arith.constant 0 : index
    %53 = vector.load %arg2[%c5, %c0_26, %c0_27] : memref<9x4x4xf32, #tpu.memory_space<vmem>>, vector<1x4x4xf32>
    %54 = vector.shape_cast %53 : vector<1x4x4xf32> to vector<4x4xf32>
    %cst_28 = arith.constant dense<0.000000e+00> : vector<256x4xf32>
    %55 = tpu.matmul %52, %54, %cst_28 {dimension_numbers = #tpu.dot_dimension_numbers<[1], [0], [0], [1], [0, 0, 1, 1], [], []>} : vector<256x4xf32>, vector<4x4xf32>, vector<256x4xf32> -> vector<256x4xf32>
    %56 = arith.addf %49, %55 : vector<256x4xf32>
    %57 = vector.extract_strided_slice %17 {offsets = [0, 0, 0], sizes = [16, 15, 4], strides = [1, 1, 1]} : vector<16x16x4xf32> to vector<16x15x4xf32>
    %58 = tpu.concatenate %13, %57 in 1 : vector<16x1x4xf32>, vector<16x15x4xf32> -> vector<16x16x4xf32>
    %59 = vector.shape_cast %58 : vector<16x16x4xf32> to vector<256x4xf32>
    %c6 = arith.constant 6 : index
    %c0_29 = arith.constant 0 : index
    %c0_30 = arith.constant 0 : index
    %60 = vector.load %arg2[%c6, %c0_29, %c0_30] : memref<9x4x4xf32, #tpu.memory_space<vmem>>, vector<1x4x4xf32>
    %61 = vector.shape_cast %60 : vector<1x4x4xf32> to vector<4x4xf32>
    %cst_31 = arith.constant dense<0.000000e+00> : vector<256x4xf32>
    %62 = tpu.matmul %59, %61, %cst_31 {dimension_numbers = #tpu.dot_dimension_numbers<[1], [0], [0], [1], [0, 0, 1, 1], [], []>} : vector<256x4xf32>, vector<4x4xf32>, vector<256x4xf32> -> vector<256x4xf32>
    %63 = arith.addf %56, %62 : vector<256x4xf32>
    %64 = vector.shape_cast %17 : vector<16x16x4xf32> to vector<256x4xf32>
    %c7 = arith.constant 7 : index
    %c0_32 = arith.constant 0 : index
    %c0_33 = arith.constant 0 : index
    %65 = vector.load %arg2[%c7, %c0_32, %c0_33] : memref<9x4x4xf32, #tpu.memory_space<vmem>>, vector<1x4x4xf32>
    %66 = vector.shape_cast %65 : vector<1x4x4xf32> to vector<4x4xf32>
    %cst_34 = arith.constant dense<0.000000e+00> : vector<256x4xf32>
    %67 = tpu.matmul %64, %66, %cst_34 {dimension_numbers = #tpu.dot_dimension_numbers<[1], [0], [0], [1], [0, 0, 1, 1], [], []>} : vector<256x4xf32>, vector<4x4xf32>, vector<256x4xf32> -> vector<256x4xf32>
    %68 = arith.addf %63, %67 : vector<256x4xf32>
    %69 = vector.extract_strided_slice %17 {offsets = [0, 1, 0], sizes = [16, 15, 4], strides = [1, 1, 1]} : vector<16x16x4xf32> to vector<16x15x4xf32>
    %70 = tpu.concatenate %69, %13 in 1 : vector<16x15x4xf32>, vector<16x1x4xf32> -> vector<16x16x4xf32>
    %71 = vector.shape_cast %70 : vector<16x16x4xf32> to vector<256x4xf32>
    %c8 = arith.constant 8 : index
    %c0_35 = arith.constant 0 : index
    %c0_36 = arith.constant 0 : index
    %72 = vector.load %arg2[%c8, %c0_35, %c0_36] : memref<9x4x4xf32, #tpu.memory_space<vmem>>, vector<1x4x4xf32>
    %73 = vector.shape_cast %72 : vector<1x4x4xf32> to vector<4x4xf32>
    %cst_37 = arith.constant dense<0.000000e+00> : vector<256x4xf32>
    %74 = tpu.matmul %71, %73, %cst_37 {dimension_numbers = #tpu.dot_dimension_numbers<[1], [0], [0], [1], [0, 0, 1, 1], [], []>} : vector<256x4xf32>, vector<4x4xf32>, vector<256x4xf32> -> vector<256x4xf32>
    %75 = arith.addf %68, %74 : vector<256x4xf32>
    %76 = vector.shape_cast %75 : vector<256x4xf32> to vector<1x256x4xf32>
    %c0_38 = arith.constant 0 : index
    %c0_39 = arith.constant 0 : index
    %c0_40 = arith.constant 0 : index
    %77 = vector.load %arg5[%c0_38, %c0_39, %c0_40] : memref<1x256x4xf32, #tpu.memory_space<vmem>>, vector<1x256x4xf32>
    tpu.vector_store %arg5[%c0_38, %c0_39, %c0_40], %76 {strides = array<i32>} : memref<1x256x4xf32, #tpu.memory_space<vmem>>, vector<1x256x4xf32>,
    %cst_41 = arith.constant dense<0.000000e+00> : vector<4xf32>
    %78 = vector.multi_reduction <add>, %75, %cst_41 [0] : vector<256x4xf32> to vector<4xf32>
    %79 = vector.shape_cast %78 : vector<4xf32> to vector<1x1x4xf32>
    %c0_42 = arith.constant 0 : index
    %c0_43 = arith.constant 0 : index
    %c0_44 = arith.constant 0 : index
    %80 = vector.load %arg6[%c0_42, %c0_43, %c0_44] : memref<1x1x4xf32, #tpu.memory_space<vmem>>, vector<1x1x4xf32>
    tpu.vector_store %arg6[%c0_42, %c0_43, %c0_44], %79 {strides = array<i32>} : memref<1x1x4xf32, #tpu.memory_space<vmem>>, vector<1x1x4xf32>,
    %81 = arith.mulf %75, %75 : vector<256x4xf32>
    %cst_45 = arith.constant dense<0.000000e+00> : vector<4xf32>
    %82 = vector.multi_reduction <add>, %81, %cst_45 [0] : vector<256x4xf32> to vector<4xf32>
    %83 = vector.shape_cast %82 : vector<4xf32> to vector<1x1x4xf32>
    %c0_46 = arith.constant 0 : index
    %c0_47 = arith.constant 0 : index
    %c0_48 = arith.constant 0 : index
    %84 = vector.load %arg7[%c0_46, %c0_47, %c0_48] : memref<1x1x4xf32, #tpu.memory_space<vmem>>, vector<1x1x4xf32>
    tpu.vector_store %arg7[%c0_46, %c0_47, %c0_48], %83 {strides = array<i32>} : memref<1x1x4xf32, #tpu.memory_space<vmem>>, vector<1x1x4xf32>,
    return
  }
  func.func @transform_0(%arg0: i32) -> (i32, i32, i32, i32) {
    %c0_i32 = arith.constant 0 : i32
    %c0_i32_0 = arith.constant 0 : i32
    %c0_i32_1 = arith.constant 0 : i32
    %c0_i32_2 = arith.constant 0 : i32
    return %arg0, %c0_i32, %c0_i32_0, %c0_i32_1 : i32, i32, i32, i32
  }
  func.func @transform_1(%arg0: i32) -> (i32, i32, i32) {
    %c0_i32 = arith.constant 0 : i32
    %c0_i32_0 = arith.constant 0 : i32
    %c0_i32_1 = arith.constant 0 : i32
    %c0_i32_2 = arith.constant 0 : i32
    return %c0_i32, %c0_i32_0, %c0_i32_1 : i32, i32, i32
  }
  func.func @transform_2(%arg0: i32) -> (i32, i32) {
    %c0_i32 = arith.constant 0 : i32
    %c0_i32_0 = arith.constant 0 : i32
    %c0_i32_1 = arith.constant 0 : i32
    return %c0_i32, %c0_i32_0 : i32, i32
  }
  func.func @transform_3(%arg0: i32) -> (i32, i32) {
    %c0_i32 = arith.constant 0 : i32
    %c0_i32_0 = arith.constant 0 : i32
    %c0_i32_1 = arith.constant 0 : i32
    return %c0_i32, %c0_i32_0 : i32, i32
  }
  func.func @transform_4(%arg0: i32) -> (i32, i32, i32) {
    %c0_i32 = arith.constant 0 : i32
    %c0_i32_0 = arith.constant 0 : i32
    %c0_i32_1 = arith.constant 0 : i32
    return %arg0, %c0_i32, %c0_i32_0 : i32, i32, i32
  }
  func.func @transform_5(%arg0: i32) -> (i32, i32, i32) {
    %c0_i32 = arith.constant 0 : i32
    %c0_i32_0 = arith.constant 0 : i32
    %c0_i32_1 = arith.constant 0 : i32
    return %arg0, %c0_i32, %c0_i32_0 : i32, i32, i32
  }
  func.func @transform_6(%arg0: i32) -> (i32, i32, i32) {
    %c0_i32 = arith.constant 0 : i32
    %c0_i32_0 = arith.constant 0 : i32
    %c0_i32_1 = arith.constant 0 : i32
    return %arg0, %c0_i32, %c0_i32_0 : i32, i32, i32
  }
}

module attributes {stable_mosaic.version = 11 : i64} {
  func.func @_mm_stats_kernel(%arg0: i32, %arg1: memref<512x16xf32, #tpu.memory_space<vmem>>, %arg2: memref<16x4xf32, #tpu.memory_space<vmem>>, %arg3: memref<512x4xf32, #tpu.memory_space<vmem>>, %arg4: memref<1x1x4xf32, #tpu.memory_space<vmem>>, %arg5: memref<1x1x4xf32, #tpu.memory_space<vmem>>) attributes {dimension_semantics = [#tpu.dimension_semantics<parallel>], iteration_bounds = array<i64: 1>, scalar_prefetch = 0 : i64, scratch_operands = 0 : i64, tpu.core_type = #tpu.core_type<tc>, window_params = [{transform_indices = @transform_0, window_bounds = array<i64: 512, 16>}, {pipeline_mode = #tpu.pipeline_mode<synchronous>, transform_indices = @transform_1, window_bounds = array<i64: 16, 4>}, {transform_indices = @transform_2, window_bounds = array<i64: 512, 4>}, {transform_indices = @transform_3, window_bounds = array<i64: 1, 1, 4>}, {transform_indices = @transform_4, window_bounds = array<i64: 1, 1, 4>}]} {
    %c0 = arith.constant 0 : index
    %c0_0 = arith.constant 0 : index
    %0 = vector.load %arg1[%c0, %c0_0] : memref<512x16xf32, #tpu.memory_space<vmem>>, vector<512x16xf32>
    %c0_1 = arith.constant 0 : index
    %c0_2 = arith.constant 0 : index
    %1 = vector.load %arg2[%c0_1, %c0_2] : memref<16x4xf32, #tpu.memory_space<vmem>>, vector<16x4xf32>
    %cst = arith.constant dense<0.000000e+00> : vector<512x4xf32>
    %2 = tpu.matmul %0, %1, %cst {dimension_numbers = #tpu.dot_dimension_numbers<[1], [0], [0], [1], [0, 0, 1, 1], [], []>} : vector<512x16xf32>, vector<16x4xf32>, vector<512x4xf32> -> vector<512x4xf32>
    %c0_3 = arith.constant 0 : index
    %c0_4 = arith.constant 0 : index
    %3 = vector.load %arg3[%c0_3, %c0_4] : memref<512x4xf32, #tpu.memory_space<vmem>>, vector<512x4xf32>
    tpu.vector_store %arg3[%c0_3, %c0_4], %2 {strides = array<i32>} : memref<512x4xf32, #tpu.memory_space<vmem>>, vector<512x4xf32>,
    %cst_5 = arith.constant dense<0.000000e+00> : vector<4xf32>
    %4 = vector.multi_reduction <add>, %2, %cst_5 [0] : vector<512x4xf32> to vector<4xf32>
    %5 = vector.shape_cast %4 : vector<4xf32> to vector<1x1x4xf32>
    %c0_6 = arith.constant 0 : index
    %c0_7 = arith.constant 0 : index
    %c0_8 = arith.constant 0 : index
    %6 = vector.load %arg4[%c0_6, %c0_7, %c0_8] : memref<1x1x4xf32, #tpu.memory_space<vmem>>, vector<1x1x4xf32>
    tpu.vector_store %arg4[%c0_6, %c0_7, %c0_8], %5 {strides = array<i32>} : memref<1x1x4xf32, #tpu.memory_space<vmem>>, vector<1x1x4xf32>,
    %7 = arith.mulf %2, %2 : vector<512x4xf32>
    %cst_9 = arith.constant dense<0.000000e+00> : vector<4xf32>
    %8 = vector.multi_reduction <add>, %7, %cst_9 [0] : vector<512x4xf32> to vector<4xf32>
    %9 = vector.shape_cast %8 : vector<4xf32> to vector<1x1x4xf32>
    %c0_10 = arith.constant 0 : index
    %c0_11 = arith.constant 0 : index
    %c0_12 = arith.constant 0 : index
    %10 = vector.load %arg5[%c0_10, %c0_11, %c0_12] : memref<1x1x4xf32, #tpu.memory_space<vmem>>, vector<1x1x4xf32>
    tpu.vector_store %arg5[%c0_10, %c0_11, %c0_12], %9 {strides = array<i32>} : memref<1x1x4xf32, #tpu.memory_space<vmem>>, vector<1x1x4xf32>,
    return
  }
  func.func @transform_0(%arg0: i32) -> (i32, i32) {
    %c0_i32 = arith.constant 0 : i32
    %c0_i32_0 = arith.constant 0 : i32
    return %arg0, %c0_i32 : i32, i32
  }
  func.func @transform_1(%arg0: i32) -> (i32, i32) {
    %c0_i32 = arith.constant 0 : i32
    %c0_i32_0 = arith.constant 0 : i32
    %c0_i32_1 = arith.constant 0 : i32
    return %c0_i32, %c0_i32_0 : i32, i32
  }
  func.func @transform_2(%arg0: i32) -> (i32, i32) {
    %c0_i32 = arith.constant 0 : i32
    %c0_i32_0 = arith.constant 0 : i32
    return %arg0, %c0_i32 : i32, i32
  }
  func.func @transform_3(%arg0: i32) -> (i32, i32, i32) {
    %c0_i32 = arith.constant 0 : i32
    %c0_i32_0 = arith.constant 0 : i32
    %c0_i32_1 = arith.constant 0 : i32
    return %arg0, %c0_i32, %c0_i32_0 : i32, i32, i32
  }
  func.func @transform_4(%arg0: i32) -> (i32, i32, i32) {
    %c0_i32 = arith.constant 0 : i32
    %c0_i32_0 = arith.constant 0 : i32
    %c0_i32_1 = arith.constant 0 : i32
    return %arg0, %c0_i32, %c0_i32_0 : i32, i32, i32
  }
}

module attributes {stable_mosaic.version = 11 : i64} {
  func.func @_mm_stats_kernel(%arg0: i32, %arg1: memref<512x4xf32, #tpu.memory_space<vmem>>, %arg2: memref<4x16xf32, #tpu.memory_space<vmem>>, %arg3: memref<1x4xf32, #tpu.memory_space<vmem>>, %arg4: memref<1x4xf32, #tpu.memory_space<vmem>>, %arg5: memref<512x16xf32, #tpu.memory_space<vmem>>, %arg6: memref<1x1x16xf32, #tpu.memory_space<vmem>>, %arg7: memref<1x1x16xf32, #tpu.memory_space<vmem>>) attributes {dimension_semantics = [#tpu.dimension_semantics<parallel>], iteration_bounds = array<i64: 1>, scalar_prefetch = 0 : i64, scratch_operands = 0 : i64, tpu.core_type = #tpu.core_type<tc>, window_params = [{transform_indices = @transform_0, window_bounds = array<i64: 512, 4>}, {pipeline_mode = #tpu.pipeline_mode<synchronous>, transform_indices = @transform_1, window_bounds = array<i64: 4, 16>}, {pipeline_mode = #tpu.pipeline_mode<synchronous>, transform_indices = @transform_2, window_bounds = array<i64: 1, 4>}, {pipeline_mode = #tpu.pipeline_mode<synchronous>, transform_indices = @transform_3, window_bounds = array<i64: 1, 4>}, {transform_indices = @transform_4, window_bounds = array<i64: 512, 16>}, {transform_indices = @transform_5, window_bounds = array<i64: 1, 1, 16>}, {transform_indices = @transform_6, window_bounds = array<i64: 1, 1, 16>}]} {
    %c0 = arith.constant 0 : index
    %c0_0 = arith.constant 0 : index
    %0 = vector.load %arg1[%c0, %c0_0] : memref<512x4xf32, #tpu.memory_space<vmem>>, vector<512x4xf32>
    %c0_1 = arith.constant 0 : index
    %c0_2 = arith.constant 0 : index
    %1 = vector.load %arg3[%c0_1, %c0_2] : memref<1x4xf32, #tpu.memory_space<vmem>>, vector<1x4xf32>
    %2 = vector.broadcast %1 : vector<1x4xf32> to vector<512x4xf32>
    %3 = arith.mulf %0, %2 : vector<512x4xf32>
    %c0_3 = arith.constant 0 : index
    %c0_4 = arith.constant 0 : index
    %4 = vector.load %arg4[%c0_3, %c0_4] : memref<1x4xf32, #tpu.memory_space<vmem>>, vector<1x4xf32>
    %5 = vector.broadcast %4 : vector<1x4xf32> to vector<512x4xf32>
    %6 = arith.addf %3, %5 : vector<512x4xf32>
    %cst = arith.constant 0.000000e+00 : f32
    %7 = vector.broadcast %cst : f32 to vector<512x4xf32>
    %8 = arith.maximumf %6, %7 : vector<512x4xf32>
    %c0_5 = arith.constant 0 : index
    %c0_6 = arith.constant 0 : index
    %9 = vector.load %arg2[%c0_5, %c0_6] : memref<4x16xf32, #tpu.memory_space<vmem>>, vector<4x16xf32>
    %cst_7 = arith.constant dense<0.000000e+00> : vector<512x16xf32>
    %10 = tpu.matmul %8, %9, %cst_7 {dimension_numbers = #tpu.dot_dimension_numbers<[1], [0], [0], [1], [0, 0, 1, 1], [], []>} : vector<512x4xf32>, vector<4x16xf32>, vector<512x16xf32> -> vector<512x16xf32>
    %c0_8 = arith.constant 0 : index
    %c0_9 = arith.constant 0 : index
    %11 = vector.load %arg5[%c0_8, %c0_9] : memref<512x16xf32, #tpu.memory_space<vmem>>, vector<512x16xf32>
    tpu.vector_store %arg5[%c0_8, %c0_9], %10 {strides = array<i32>} : memref<512x16xf32, #tpu.memory_space<vmem>>, vector<512x16xf32>,
    %cst_10 = arith.constant dense<0.000000e+00> : vector<16xf32>
    %12 = vector.multi_reduction <add>, %10, %cst_10 [0] : vector<512x16xf32> to vector<16xf32>
    %13 = vector.shape_cast %12 : vector<16xf32> to vector<1x1x16xf32>
    %c0_11 = arith.constant 0 : index
    %c0_12 = arith.constant 0 : index
    %c0_13 = arith.constant 0 : index
    %14 = vector.load %arg6[%c0_11, %c0_12, %c0_13] : memref<1x1x16xf32, #tpu.memory_space<vmem>>, vector<1x1x16xf32>
    tpu.vector_store %arg6[%c0_11, %c0_12, %c0_13], %13 {strides = array<i32>} : memref<1x1x16xf32, #tpu.memory_space<vmem>>, vector<1x1x16xf32>,
    %15 = arith.mulf %10, %10 : vector<512x16xf32>
    %cst_14 = arith.constant dense<0.000000e+00> : vector<16xf32>
    %16 = vector.multi_reduction <add>, %15, %cst_14 [0] : vector<512x16xf32> to vector<16xf32>
    %17 = vector.shape_cast %16 : vector<16xf32> to vector<1x1x16xf32>
    %c0_15 = arith.constant 0 : index
    %c0_16 = arith.constant 0 : index
    %c0_17 = arith.constant 0 : index
    %18 = vector.load %arg7[%c0_15, %c0_16, %c0_17] : memref<1x1x16xf32, #tpu.memory_space<vmem>>, vector<1x1x16xf32>
    tpu.vector_store %arg7[%c0_15, %c0_16, %c0_17], %17 {strides = array<i32>} : memref<1x1x16xf32, #tpu.memory_space<vmem>>, vector<1x1x16xf32>,
    return
  }
  func.func @transform_0(%arg0: i32) -> (i32, i32) {
    %c0_i32 = arith.constant 0 : i32
    %c0_i32_0 = arith.constant 0 : i32
    return %arg0, %c0_i32 : i32, i32
  }
  func.func @transform_1(%arg0: i32) -> (i32, i32) {
    %c0_i32 = arith.constant 0 : i32
    %c0_i32_0 = arith.constant 0 : i32
    %c0_i32_1 = arith.constant 0 : i32
    return %c0_i32, %c0_i32_0 : i32, i32
  }
  func.func @transform_2(%arg0: i32) -> (i32, i32) {
    %c0_i32 = arith.constant 0 : i32
    %c0_i32_0 = arith.constant 0 : i32
    %c0_i32_1 = arith.constant 0 : i32
    return %c0_i32, %c0_i32_0 : i32, i32
  }
  func.func @transform_3(%arg0: i32) -> (i32, i32) {
    %c0_i32 = arith.constant 0 : i32
    %c0_i32_0 = arith.constant 0 : i32
    %c0_i32_1 = arith.constant 0 : i32
    return %c0_i32, %c0_i32_0 : i32, i32
  }
  func.func @transform_4(%arg0: i32) -> (i32, i32) {
    %c0_i32 = arith.constant 0 : i32
    %c0_i32_0 = arith.constant 0 : i32
    return %arg0, %c0_i32 : i32, i32
  }
  func.func @transform_5(%arg0: i32) -> (i32, i32, i32) {
    %c0_i32 = arith.constant 0 : i32
    %c0_i32_0 = arith.constant 0 : i32
    %c0_i32_1 = arith.constant 0 : i32
    return %arg0, %c0_i32, %c0_i32_0 : i32, i32, i32
  }
  func.func @transform_6(%arg0: i32) -> (i32, i32, i32) {
    %c0_i32 = arith.constant 0 : i32
    %c0_i32_0 = arith.constant 0 : i32
    %c0_i32_1 = arith.constant 0 : i32
    return %arg0, %c0_i32, %c0_i32_0 : i32, i32, i32
  }
}

module attributes {stable_mosaic.version = 11 : i64} {
  func.func @_finalize_kernel(%arg0: i32, %arg1: memref<32x256xf32, #tpu.memory_space<vmem>>, %arg2: memref<32x256xf32, #tpu.memory_space<vmem>>, %arg3: memref<1x256xf32, #tpu.memory_space<vmem>>, %arg4: memref<1x256xf32, #tpu.memory_space<vmem>>, %arg5: memref<32x256xf32, #tpu.memory_space<vmem>>) attributes {dimension_semantics = [#tpu.dimension_semantics<parallel>], iteration_bounds = array<i64: 1>, scalar_prefetch = 0 : i64, scratch_operands = 0 : i64, tpu.core_type = #tpu.core_type<tc>, window_params = [{transform_indices = @transform_0, window_bounds = array<i64: 32, 256>}, {transform_indices = @transform_1, window_bounds = array<i64: 32, 256>}, {pipeline_mode = #tpu.pipeline_mode<synchronous>, transform_indices = @transform_2, window_bounds = array<i64: 1, 256>}, {pipeline_mode = #tpu.pipeline_mode<synchronous>, transform_indices = @transform_3, window_bounds = array<i64: 1, 256>}, {transform_indices = @transform_4, window_bounds = array<i64: 32, 256>}]} {
    %c0 = arith.constant 0 : index
    %c0_0 = arith.constant 0 : index
    %0 = vector.load %arg1[%c0, %c0_0] : memref<32x256xf32, #tpu.memory_space<vmem>>, vector<32x256xf32>
    %c0_1 = arith.constant 0 : index
    %c0_2 = arith.constant 0 : index
    %1 = vector.load %arg2[%c0_1, %c0_2] : memref<32x256xf32, #tpu.memory_space<vmem>>, vector<32x256xf32>
    %c0_3 = arith.constant 0 : index
    %c0_4 = arith.constant 0 : index
    %2 = vector.load %arg3[%c0_3, %c0_4] : memref<1x256xf32, #tpu.memory_space<vmem>>, vector<1x256xf32>
    %3 = vector.broadcast %2 : vector<1x256xf32> to vector<32x256xf32>
    %4 = arith.mulf %0, %3 : vector<32x256xf32>
    %c0_5 = arith.constant 0 : index
    %c0_6 = arith.constant 0 : index
    %5 = vector.load %arg4[%c0_5, %c0_6] : memref<1x256xf32, #tpu.memory_space<vmem>>, vector<1x256xf32>
    %6 = vector.broadcast %5 : vector<1x256xf32> to vector<32x256xf32>
    %7 = arith.addf %4, %6 : vector<32x256xf32>
    %8 = arith.addf %7, %1 : vector<32x256xf32>
    %cst = arith.constant 0.000000e+00 : f32
    %9 = vector.broadcast %cst : f32 to vector<32x256xf32>
    %10 = arith.maximumf %8, %9 : vector<32x256xf32>
    %c0_7 = arith.constant 0 : index
    %c0_8 = arith.constant 0 : index
    %11 = vector.load %arg5[%c0_7, %c0_8] : memref<32x256xf32, #tpu.memory_space<vmem>>, vector<32x256xf32>
    tpu.vector_store %arg5[%c0_7, %c0_8], %10 {strides = array<i32>} : memref<32x256xf32, #tpu.memory_space<vmem>>, vector<32x256xf32>,
    return
  }
  func.func @transform_0(%arg0: i32) -> (i32, i32) {
    %c0_i32 = arith.constant 0 : i32
    %c0_i32_0 = arith.constant 0 : i32
    return %arg0, %c0_i32 : i32, i32
  }
  func.func @transform_1(%arg0: i32) -> (i32, i32) {
    %c0_i32 = arith.constant 0 : i32
    %c0_i32_0 = arith.constant 0 : i32
    return %arg0, %c0_i32 : i32, i32
  }
  func.func @transform_2(%arg0: i32) -> (i32, i32) {
    %c0_i32 = arith.constant 0 : i32
    %c0_i32_0 = arith.constant 0 : i32
    %c0_i32_1 = arith.constant 0 : i32
    return %c0_i32, %c0_i32_0 : i32, i32
  }
  func.func @transform_3(%arg0: i32) -> (i32, i32) {
    %c0_i32 = arith.constant 0 : i32
    %c0_i32_0 = arith.constant 0 : i32
    %c0_i32_1 = arith.constant 0 : i32
    return %c0_i32, %c0_i32_0 : i32, i32
  }
  func.func @transform_4(%arg0: i32) -> (i32, i32) {
    %c0_i32 = arith.constant 0 : i32
    %c0_i32_0 = arith.constant 0 : i32
    return %arg0, %c0_i32 : i32, i32
  }
}

</mosaic_0001>

<bundles_post_ra>
// kernel: bottleneck_pallas.4
= control target key start
LH: loop header
LB: loop body
LE: loop exit
PB: predicated region body
PF: predicated region fallthrough
CT: control target
= control target key end

     0   :  { %10 = vsyncpa [#allocation3], 0  ;;  %s1008_s18 = smov [#allocation2]   ;;  %s1009_s20 = smov 128   ;;  %s1793_s0 = inlined_call_operand.hbm [shape: f32[512,16], index: 0, kind: input, shape index: {}]   ;;  %s1794_s1 = inlined_call_operand.vmem [shape: f32[16,4], index: 1, kind: input, shape index: {}]   ;;  %s1795_s2 = inlined_call_operand.vmem [shape: f32[512,4], index: 2, kind: output, shape index: {0}]   ;;  %s1796_s3 = inlined_call_operand.vmem [shape: f32[1,1,4], index: 3, kind: output, shape index: {1}]   ;;  %s1797_s4 = inlined_call_operand.vmem [shape: f32[1,1,4], index: 4, kind: output, shape index: {2}]  }
   0x1   :  { %s15_s17 = sshll.u32 %s1793_s0, 4  ;;  %s17_s19 = sshll.u32 %s1008_s18, 4  ;;  %s16_s17 = int_to_ptr.hbm [resolvable:$true] %s15_s17  ;;  %s18_s19 = int_to_ptr.vmem [resolvable:$true] %s17_s19 }
   0x2   :  { %s1010_s21 = smov 8  }
   0x3   :  { %23 = dma.hbm_to_vmem [thread:$0]  %s16_s17, 8192, %s18_s19, [#allocation3], %s1009_s20, %s1009_s20, %s1010_s21  }
   0x4   :  { %1006 = dma.done.wait [#allocation3], 8192  }
   0x5   :  { %1007 = vsyncadd [#allocation3], 4294959104  ;;  %v95_v0 = vld [vmem:[%s1794_s1 + $0x8] sm:$0xff]  ;;  %v94_v1 = vld [vmem:[%s1794_s1] sm:$0xff]  ;;  %vm96_vm0 = vcmask 130048   ;;  %vm498_vm1 = vcmask 31744  }
   0x6   :  { %303 = vmatpush.msra.mxu0 %v95_v0  ;;  %v30_v2 = vld [vmem:[#allocation2] sm:$0xff]  ;;  %973 = vmatpush.msra.mxu1 %v95_v0  ;;  %v31_v4 = vld [vmem:[#allocation2 + $0x8] sm:$0xff]  ;;  %v32_v6 = vld [vmem:[#allocation2 + $0x10] sm:$0xff]  ;;  %vm696_vm2 = vcmask 24576  }
   0x7   :  { %974 = vmatpush.msra.mxu2 %v95_v0  ;;  %975 = vmatpush.msra.mxu3 %v95_v0  ;;  %v46_v3 = vld [vmem:[#allocation2 + $0x80] sm:$0xff]  ;;  %v47_v5 = vld [vmem:[#allocation2 + $0x88] sm:$0xff]  ;;  %v48_v7 = vld [vmem:[#allocation2 + $0x90] sm:$0xff] }
   0x8   :  { %304 = vmatpush.msra.mxu0 %v94_v1  ;;  %976 = vmatpush.msra.mxu1 %v94_v1  ;;  %v33_v8 = vld [vmem:[#allocation2 + $0x18] sm:$0xff]  ;;  %v62_v10 = vld [vmem:[#allocation2 + $0x100] sm:$0xff]  ;;  %v63_v13 = vld [vmem:[#allocation2 + $0x108] sm:$0xff] }
   0x9   :  { %909 = vmatmul.msk.f32.vlgmr.msra.gmra.mxu0 %vm96_vm0, %v30_v2  ;;  %925 = vmatmul.msk.f32.vlgmr.msra.gmra.mxu1 %vm96_vm0, %v46_v3  ;;  %v49_v9 = vld [vmem:[#allocation2 + $0x98] sm:$0xff]  ;;  %v34_v11 = vld [vmem:[#allocation2 + $0x20] sm:$0xff]  ;;  %v35_v14 = vld [vmem:[#allocation2 + $0x28] sm:$0xff] }
   0xa   :  { %977 = vmatpush.msra.mxu2 %v94_v1  ;;  %978 = vmatpush.msra.mxu3 %v94_v1  ;;  %v50_v12 = vld [vmem:[#allocation2 + $0xa0] sm:$0xff]  ;;  %v51_v15 = vld [vmem:[#allocation2 + $0xa8] sm:$0xff]  ;;  %v64_v16 = vld [vmem:[#allocation2 + $0x110] sm:$0xff] }
   0xb   :  { %941 = vmatmul.msk.f32.vlgmr.msra.gmra.mxu2 %vm96_vm0, %v62_v10  ;;  %v36_v17 = vld [vmem:[#allocation2 + $0x30] sm:$0xff]  ;;  %v65_v19 = vld [vmem:[#allocation2 + $0x118] sm:$0xff]  ;;  %v66_v22 = vld [vmem:[#allocation2 + $0x120] sm:$0xff] }
   0xc   :  { %v52_v18 = vld [vmem:[#allocation2 + $0xb0] sm:$0xff]  ;;  %v37_v20 = vld [vmem:[#allocation2 + $0x38] sm:$0xff]  ;;  %v78_v23 = vld [vmem:[#allocation2 + $0x180] sm:$0xff] }
   0xd   :  { %v53_v21 = vld [vmem:[#allocation2 + $0xb8] sm:$0xff]  ;;  %957 = vmatmul.msk.f32.vlgmr.msra.gmra.mxu3 %vm96_vm0, %v78_v23  ;;  %v38_v24 = vld [vmem:[#allocation2 + $0x40] sm:$0xff]  ;;  %v67_v26 = vld [vmem:[#allocation2 + $0x128] sm:$0xff] }
   0xe   :  { %v54_v25 = vld [vmem:[#allocation2 + $0xc0] sm:$0xff]  ;;  %v79_v27 = vld [vmem:[#allocation2 + $0x188] sm:$0xff]  ;;  %v68_v30 = vld [vmem:[#allocation2 + $0x130] sm:$0xff] }
   0xf   :  { %v39_v28 = vld [vmem:[#allocation2 + $0x48] sm:$0xff]  ;;  %v80_v31 = vld [vmem:[#allocation2 + $0x190] sm:$0xff]  ;;  %v69_v34 = vld [vmem:[#allocation2 + $0x138] sm:$0xff] }
  0x10   :  { %v55_v29 = vld [vmem:[#allocation2 + $0xc8] sm:$0xff]  ;;  %v40_v32 = vld [vmem:[#allocation2 + $0x50] sm:$0xff]  ;;  %v81_v35 = vld [vmem:[#allocation2 + $0x198] sm:$0xff] }
  0x11   :  { %910 = vmatmul.msk.f32.gmra.mxu0 %vm96_vm0, %v31_v4  ;;  %926 = vmatmul.msk.f32.gmra.mxu1 %vm96_vm0, %v47_v5  ;;  %v56_v33 = vld [vmem:[#allocation2 + $0xd0] sm:$0xff]  ;;  %v41_v36 = vld [vmem:[#allocation2 + $0x58] sm:$0xff]  ;;  %v70_v38 = vld [vmem:[#allocation2 + $0x140] sm:$0xff] }
  0x12   :  { %v57_v37 = vld [vmem:[#allocation2 + $0xd8] sm:$0xff]  ;;  %v82_v39 = vld [vmem:[#allocation2 + $0x1a0] sm:$0xff]  ;;  %v71_v42 = vld [vmem:[#allocation2 + $0x148] sm:$0xff] }
  0x13   :  { %942 = vmatmul.msk.f32.gmra.mxu2 %vm96_vm0, %v63_v13  ;;  %v42_v40 = vld [vmem:[#allocation2 + $0x60] sm:$0xff]  ;;  %v83_v43 = vld [vmem:[#allocation2 + $0x1a8] sm:$0xff]  ;;  %v72_v46 = vld [vmem:[#allocation2 + $0x150] sm:$0xff] }
  0x14   :  { %v58_v41 = vld [vmem:[#allocation2 + $0xe0] sm:$0xff]  ;;  %v43_v44 = vld [vmem:[#allocation2 + $0x68] sm:$0xff]  ;;  %v84_v47 = vld [vmem:[#allocation2 + $0x1b0] sm:$0xff] }
  0x15   :  { %958 = vmatmul.msk.f32.gmra.mxu3 %vm96_vm0, %v79_v27  ;;  %v59_v45 = vld [vmem:[#allocation2 + $0xe8] sm:$0xff]  ;;  %v44_v48 = vld [vmem:[#allocation2 + $0x70] sm:$0xff]  ;;  %v73_v50 = vld [vmem:[#allocation2 + $0x158] sm:$0xff] }
  0x16   :  { %v60_v49 = vld [vmem:[#allocation2 + $0xf0] sm:$0xff]  ;;  %v85_v51 = vld [vmem:[#allocation2 + $0x1b8] sm:$0xff]  ;;  %v74_v54 = vld [vmem:[#allocation2 + $0x160] sm:$0xff] }
  0x17   :  { %v45_v52 = vld [vmem:[#allocation2 + $0x78] sm:$0xff]  ;;  %v86_v55 = vld [vmem:[#allocation2 + $0x1c0] sm:$0xff]  ;;  %v75_v58 = vld [vmem:[#allocation2 + $0x168] sm:$0xff] }
  0x18   :  { %v61_v53 = vld [vmem:[#allocation2 + $0xf8] sm:$0xff]  ;;  %v87_v59 = vld [vmem:[#allocation2 + $0x1c8] sm:$0xff] }
  0x19   :  { %911 = vmatmul.msk.f32.gmra.mxu0 %vm96_vm0, %v32_v6  ;;  %927 = vmatmul.msk.f32.gmra.mxu1 %vm96_vm0, %v48_v7  ;;  %v76_v6 = vld [vmem:[#allocation2 + $0x170] sm:$0xff] }
  0x1a   :  { %v88_v7 = vld [vmem:[#allocation2 + $0x1d0] sm:$0xff] }
  0x1b   :  { %943 = vmatmul.msk.f32.gmra.mxu2 %vm96_vm0, %v64_v16  ;;  %v89_v16 = vld [vmem:[#allocation2 + $0x1d8] sm:$0xff] }
  0x1d   :  { %959 = vmatmul.msk.f32.gmra.mxu3 %vm96_vm0, %v80_v31 }
  0x21   :  { %912 = vmatmul.msk.f32.gmra.mxu0 %vm96_vm0, %v33_v8  ;;  %928 = vmatmul.msk.f32.gmra.mxu1 %vm96_vm0, %v49_v9 }
  0x23   :  { %944 = vmatmul.msk.f32.gmra.mxu2 %vm96_vm0, %v65_v19 }
  0x25   :  { %960 = vmatmul.msk.f32.gmra.mxu3 %vm96_vm0, %v81_v35 }
  0x29   :  { %913 = vmatmul.msk.f32.gmra.mxu0 %vm96_vm0, %v34_v11  ;;  %929 = vmatmul.msk.f32.gmra.mxu1 %vm96_vm0, %v50_v12 }
  0x2b   :  { %945 = vmatmul.msk.f32.gmra.mxu2 %vm96_vm0, %v66_v22 }
  0x2d   :  { %961 = vmatmul.msk.f32.gmra.mxu3 %vm96_vm0, %v82_v39 }
  0x31   :  { %914 = vmatmul.msk.f32.gmra.mxu0 %vm96_vm0, %v35_v14  ;;  %930 = vmatmul.msk.f32.gmra.mxu1 %vm96_vm0, %v51_v15  ;;  %v77_v15 = vld [vmem:[#allocation2 + $0x178] sm:$0xff] }
  0x33   :  { %946 = vmatmul.msk.f32.gmra.mxu2 %vm96_vm0, %v67_v26 }
  0x35   :  { %962 = vmatmul.msk.f32.gmra.mxu3 %vm96_vm0, %v83_v43 }
  0x39   :  { %915 = vmatmul.msk.f32.gmra.mxu0 %vm96_vm0, %v36_v17  ;;  %931 = vmatmul.msk.f32.gmra.mxu1 %vm96_vm0, %v52_v18 }
  0x3b   :  { %947 = vmatmul.msk.f32.gmra.mxu2 %vm96_vm0, %v68_v30 }
  0x3d   :  { %963 = vmatmul.msk.f32.gmra.mxu3 %vm96_vm0, %v84_v47 }
  0x41   :  { %916 = vmatmul.msk.f32.gmra.mxu0 %vm96_vm0, %v37_v20  ;;  %932 = vmatmul.msk.f32.gmra.mxu1 %vm96_vm0, %v53_v21 }
  0x43   :  { %948 = vmatmul.msk.f32.gmra.mxu2 %vm96_vm0, %v69_v34 }
  0x45   :  { %964 = vmatmul.msk.f32.gmra.mxu3 %vm96_vm0, %v85_v51 }
  0x49   :  { %917 = vmatmul.msk.f32.gmra.mxu0 %vm96_vm0, %v38_v24  ;;  %933 = vmatmul.msk.f32.gmra.mxu1 %vm96_vm0, %v54_v25  ;;  %v90_v24 = vld [vmem:[#allocation2 + $0x1e0] sm:$0xff] }
  0x4b   :  { %949 = vmatmul.msk.f32.gmra.mxu2 %vm96_vm0, %v70_v38 }
  0x4d   :  { %965 = vmatmul.msk.f32.gmra.mxu3 %vm96_vm0, %v86_v55 }
  0x51   :  { %918 = vmatmul.msk.f32.gmra.mxu0 %vm96_vm0, %v39_v28  ;;  %934 = vmatmul.msk.f32.gmra.mxu1 %vm96_vm0, %v55_v29 }
  0x53   :  { %950 = vmatmul.msk.f32.gmra.mxu2 %vm96_vm0, %v71_v42 }
  0x55   :  { %966 = vmatmul.msk.f32.gmra.mxu3 %vm96_vm0, %v87_v59 }
  0x59   :  { %919 = vmatmul.msk.f32.gmra.mxu0 %vm96_vm0, %v40_v32  ;;  %935 = vmatmul.msk.f32.gmra.mxu1 %vm96_vm0, %v56_v33  ;;  %v91_v33 = vld [vmem:[#allocation2 + $0x1e8] sm:$0xff] }
  0x5b   :  { %951 = vmatmul.msk.f32.gmra.mxu2 %vm96_vm0, %v72_v46 }
  0x5d   :  { %967 = vmatmul.msk.f32.gmra.mxu3 %vm96_vm0, %v88_v7 }
  0x61   :  { %920 = vmatmul.msk.f32.gmra.mxu0 %vm96_vm0, %v41_v36  ;;  %936 = vmatmul.msk.f32.gmra.mxu1 %vm96_vm0, %v57_v37  ;;  %v92_v37 = vld [vmem:[#allocation2 + $0x1f0] sm:$0xff] }
  0x63   :  { %952 = vmatmul.msk.f32.gmra.mxu2 %vm96_vm0, %v73_v50 }
  0x65   :  { %968 = vmatmul.msk.f32.gmra.mxu3 %vm96_vm0, %v89_v16 }
  0x69   :  { %921 = vmatmul.msk.f32.gmra.mxu0 %vm96_vm0, %v42_v40  ;;  %937 = vmatmul.msk.f32.gmra.mxu1 %vm96_vm0, %v58_v41  ;;  %v93_v41 = vld [vmem:[#allocation2 + $0x1f8] sm:$0xff] }
  0x6b   :  { %953 = vmatmul.msk.f32.gmra.mxu2 %vm96_vm0, %v74_v54 }
  0x6d   :  { %969 = vmatmul.msk.f32.gmra.mxu3 %vm96_vm0, %v90_v24 }
  0x71   :  { %922 = vmatmul.msk.f32.gmra.mxu0 %vm96_vm0, %v43_v44  ;;  %938 = vmatmul.msk.f32.gmra.mxu1 %vm96_vm0, %v59_v45 }
  0x73   :  { %954 = vmatmul.msk.f32.gmra.mxu2 %vm96_vm0, %v75_v58 }
  0x75   :  { %970 = vmatmul.msk.f32.gmra.mxu3 %vm96_vm0, %v91_v33 }
  0x79   :  { %923 = vmatmul.msk.f32.gmra.mxu0 %vm96_vm0, %v44_v48  ;;  %939 = vmatmul.msk.f32.gmra.mxu1 %vm96_vm0, %v60_v49 }
  0x7b   :  { %955 = vmatmul.msk.f32.gmra.mxu2 %vm96_vm0, %v76_v6 }
  0x7d   :  { %971 = vmatmul.msk.f32.gmra.mxu3 %vm96_vm0, %v92_v37 }
  0x81   :  { %924 = vmatmul.msk.f32.gmra.mxu0 %vm96_vm0, %v45_v52  ;;  %940 = vmatmul.msk.f32.gmra.mxu1 %vm96_vm0, %v61_v53 }
  0x83   :  { %956 = vmatmul.msk.f32.gmra.mxu2 %vm96_vm0, %v77_v15 }
  0x85   :  { %972 = vmatmul.msk.f32.gmra.mxu3 %vm96_vm0, %v93_v41 }
  0x86   :  { %v306_v56 = vpop.f32.mrf.mxu0  ;;  %v1099_v57 = vpop.f32.mrf.mxu1 }
  0x87   :  { %499 = vst.msk [vmem:[%s1795_s2] sm:$0xff] %vm498_vm1, %v306_v56  ;;  %v698_v60 = vmul.f32 %v306_v56, %v306_v56  ;;  %v563_v63 = vsel %vm498_vm1, %v306_v56, 0.0 }
  0x88   :  { %515 = vst.msk [vmem:[%s1795_s2 + $0x80] sm:$0xff] %vm498_vm1, %v1099_v57 }
  0x89   :  { %v762_v3 = vsel %vm498_vm1, %v698_v60, 0.0 }
  0x8e   :  { %v309_v61 = vpop.f32.mrf.mxu0  ;;  %v1112_v62 = vpop.f32.mrf.mxu1 }
  0x8f   :  { %500 = vst.msk [vmem:[%s1795_s2 + $0x8] sm:$0xff] %vm498_vm1, %v309_v61  ;;  %v564_v0 = vsel %vm498_vm1, %v309_v61, 0.0  ;;  %v699_v1 = vmul.f32 %v309_v61, %v309_v61  ;;  %v1165_v29 = vpop.f32.mrf.mxu2 }
  0x90   :  { %v565_v2 = vadd.f32 %v564_v0, %v563_v63  ;;  %516 = vst.msk [vmem:[%s1795_s2 + $0x88] sm:$0xff] %vm498_vm1, %v1112_v62  ;;  %v1247_v48 = vpop.f32.mrf.mxu3 }
  0x91   :  { %v763_v4 = vsel %vm498_vm1, %v699_v1, 0.0  ;;  %531 = vst.msk [vmem:[%s1795_s2 + $0x100] sm:$0xff] %vm498_vm1, %v1165_v29 }
  0x92   :  { %v764_v5 = vadd.f32 %v763_v4, %v762_v3  ;;  %547 = vst.msk [vmem:[%s1795_s2 + $0x180] sm:$0xff] %vm498_vm1, %v1247_v48 }
  0x96   :  { %v312_v8 = vpop.f32.mrf.mxu0  ;;  %v1129_v9 = vpop.f32.mrf.mxu1 }
  0x97   :  { %501 = vst.msk [vmem:[%s1795_s2 + $0x10] sm:$0xff] %vm498_vm1, %v312_v8  ;;  %v566_v10 = vsel %vm498_vm1, %v312_v8, 0.0  ;;  %v700_v11 = vmul.f32 %v312_v8, %v312_v8  ;;  %v1189_v36 = vpop.f32.mrf.mxu2 }
  0x98   :  { %v567_v12 = vadd.f32 %v566_v10, %v565_v2  ;;  %517 = vst.msk [vmem:[%s1795_s2 + $0x90] sm:$0xff] %vm498_vm1, %v1129_v9  ;;  %v1272_v52 = vpop.f32.mrf.mxu3 }
  0x99   :  { %v765_v13 = vsel %vm498_vm1, %v700_v11, 0.0  ;;  %532 = vst.msk [vmem:[%s1795_s2 + $0x108] sm:$0xff] %vm498_vm1, %v1189_v36 }
  0x9a   :  { %v766_v14 = vadd.f32 %v765_v13, %v764_v5  ;;  %548 = vst.msk [vmem:[%s1795_s2 + $0x188] sm:$0xff] %vm498_vm1, %v1272_v52 }
  0x9e   :  { %v315_v17 = vpop.f32.mrf.mxu0  ;;  %v1144_v18 = vpop.f32.mrf.mxu1 }
  0x9f   :  { %502 = vst.msk [vmem:[%s1795_s2 + $0x18] sm:$0xff] %vm498_vm1, %v315_v17  ;;  %v568_v19 = vsel %vm498_vm1, %v315_v17, 0.0  ;;  %v701_v20 = vmul.f32 %v315_v17, %v315_v17  ;;  %v1208_v40 = vpop.f32.mrf.mxu2 }
  0xa0   :  { %v569_v21 = vadd.f32 %v568_v19, %v567_v12  ;;  %518 = vst.msk [vmem:[%s1795_s2 + $0x98] sm:$0xff] %vm498_vm1, %v1144_v18  ;;  %v1297_v56 = vpop.f32.mrf.mxu3 }
  0xa1   :  { %v767_v22 = vsel %vm498_vm1, %v701_v20, 0.0  ;;  %533 = vst.msk [vmem:[%s1795_s2 + $0x110] sm:$0xff] %vm498_vm1, %v1208_v40 }
  0xa2   :  { %v768_v23 = vadd.f32 %v767_v22, %v766_v14  ;;  %549 = vst.msk [vmem:[%s1795_s2 + $0x190] sm:$0xff] %vm498_vm1, %v1297_v56 }
  0xa6   :  { %v318_v25 = vpop.f32.mrf.mxu0  ;;  %v1158_v26 = vpop.f32.mrf.mxu1 }
  0xa7   :  { %503 = vst.msk [vmem:[%s1795_s2 + $0x20] sm:$0xff] %vm498_vm1, %v318_v25  ;;  %v570_v27 = vsel %vm498_vm1, %v318_v25, 0.0  ;;  %v702_v28 = vmul.f32 %v318_v25, %v318_v25  ;;  %v1227_v44 = vpop.f32.mrf.mxu2 }
  0xa8   :  { %v1167_v30 = vadd.f32 %v570_v27, %v569_v21  ;;  %519 = vst.msk [vmem:[%s1795_s2 + $0xa0] sm:$0xff] %vm498_vm1, %v1158_v26  ;;  %v1322_v61 = vpop.f32.mrf.mxu3 }
  0xa9   :  { %v769_v31 = vsel %vm498_vm1, %v702_v28, 0.0  ;;  %534 = vst.msk [vmem:[%s1795_s2 + $0x118] sm:$0xff] %vm498_vm1, %v1227_v44 }
  0xaa   :  { %v1180_v32 = vadd.f32 %v769_v31, %v768_v23  ;;  %550 = vst.msk [vmem:[%s1795_s2 + $0x198] sm:$0xff] %vm498_vm1, %v1322_v61 }
  0xae   :  { %v321_v34 = vpop.f32.mrf.mxu0  ;;  %v1183_v35 = vpop.f32.mrf.mxu1 }
  0xaf   :  { %504 = vst.msk [vmem:[%s1795_s2 + $0x28] sm:$0xff] %vm498_vm1, %v321_v34  ;;  %v1245_v47 = vpop.f32.mrf.mxu2  ;;  %v703_v1 = vmul.f32 %v321_v34, %v321_v34  ;;  %v572_v4 = vsel %vm498_vm1, %v321_v34, 0.0 }
  0xb0   :  { %520 = vst.msk [vmem:[%s1795_s2 + $0xa8] sm:$0xff] %vm498_vm1, %v1183_v35  ;;  %v1347_v3 = vpop.f32.mrf.mxu3  ;;  %v573_v10 = vadd.f32 %v572_v4, %v1167_v30 }
  0xb1   :  { %535 = vst.msk [vmem:[%s1795_s2 + $0x120] sm:$0xff] %vm498_vm1, %v1245_v47  ;;  %v771_v6 = vsel %vm498_vm1, %v703_v1, 0.0 }
  0xb2   :  { %551 = vst.msk [vmem:[%s1795_s2 + $0x1a0] sm:$0xff] %vm498_vm1, %v1347_v3  ;;  %v772_v14 = vadd.f32 %v771_v6, %v1180_v32 }
  0xb6   :  { %v324_v38 = vpop.f32.mrf.mxu0  ;;  %v1202_v39 = vpop.f32.mrf.mxu1 }
  0xb7   :  { %505 = vst.msk [vmem:[%s1795_s2 + $0x30] sm:$0xff] %vm498_vm1, %v324_v38  ;;  %v1270_v51 = vpop.f32.mrf.mxu2  ;;  %v704_v5 = vmul.f32 %v324_v38, %v324_v38  ;;  %v574_v7 = vsel %vm498_vm1, %v324_v38, 0.0 }
  0xb8   :  { %521 = vst.msk [vmem:[%s1795_s2 + $0xb0] sm:$0xff] %vm498_vm1, %v1202_v39  ;;  %v575_v15 = vadd.f32 %v574_v7, %v573_v10  ;;  %v1381_v23 = vpop.f32.mrf.mxu3 }
  0xb9   :  { %536 = vst.msk [vmem:[%s1795_s2 + $0x128] sm:$0xff] %vm498_vm1, %v1270_v51  ;;  %v773_v11 = vsel %vm498_vm1, %v704_v5, 0.0 }
  0xba   :  { %v774_v24 = vadd.f32 %v773_v11, %v772_v14  ;;  %552 = vst.msk [vmem:[%s1795_s2 + $0x1a8] sm:$0xff] %vm498_vm1, %v1381_v23 }
  0xbe   :  { %v327_v42 = vpop.f32.mrf.mxu0  ;;  %v1221_v43 = vpop.f32.mrf.mxu1 }
  0xbf   :  { %506 = vst.msk [vmem:[%s1795_s2 + $0x38] sm:$0xff] %vm498_vm1, %v327_v42  ;;  %v1295_v55 = vpop.f32.mrf.mxu2  ;;  %v705_v8 = vmul.f32 %v327_v42, %v327_v42  ;;  %v576_v12 = vsel %vm498_vm1, %v327_v42, 0.0 }
  0xc0   :  { %522 = vst.msk [vmem:[%s1795_s2 + $0xb8] sm:$0xff] %vm498_vm1, %v1221_v43  ;;  %v577_v25 = vadd.f32 %v576_v12, %v575_v15  ;;  %v1414_v11 = vpop.f32.mrf.mxu3 }
  0xc1   :  { %537 = vst.msk [vmem:[%s1795_s2 + $0x130] sm:$0xff] %vm498_vm1, %v1295_v55  ;;  %v775_v19 = vsel %vm498_vm1, %v705_v8, 0.0 }
  0xc2   :  { %v776_v31 = vadd.f32 %v775_v19, %v774_v24  ;;  %553 = vst.msk [vmem:[%s1795_s2 + $0x1b0] sm:$0xff] %vm498_vm1, %v1414_v11 }
  0xc6   :  { %v330_v45 = vpop.f32.mrf.mxu0  ;;  %v1239_v46 = vpop.f32.mrf.mxu1 }
  0xc7   :  { %507 = vst.msk [vmem:[%s1795_s2 + $0x40] sm:$0xff] %vm498_vm1, %v330_v45  ;;  %v1320_v60 = vpop.f32.mrf.mxu2  ;;  %v706_v13 = vmul.f32 %v330_v45, %v330_v45  ;;  %v578_v20 = vsel %vm498_vm1, %v330_v45, 0.0 }
  0xc8   :  { %523 = vst.msk [vmem:[%s1795_s2 + $0xc0] sm:$0xff] %vm498_vm1, %v1239_v46  ;;  %v579_v32 = vadd.f32 %v578_v20, %v577_v25 }
  0xc9   :  { %538 = vst.msk [vmem:[%s1795_s2 + $0x138] sm:$0xff] %vm498_vm1, %v1320_v60  ;;  %v777_v27 = vsel %vm498_vm1, %v706_v13, 0.0 }
  0xca   :  { %v778_v38 = vadd.f32 %v777_v27, %v776_v31 }
  0xce   :  { %v333_v49 = vpop.f32.mrf.mxu0  ;;  %v1264_v50 = vpop.f32.mrf.mxu1 }
  0xcf   :  { %508 = vst.msk [vmem:[%s1795_s2 + $0x48] sm:$0xff] %vm498_vm1, %v333_v49  ;;  %v1345_v2 = vpop.f32.mrf.mxu2  ;;  %v707_v21 = vmul.f32 %v333_v49, %v333_v49  ;;  %v580_v28 = vsel %vm498_vm1, %v333_v49, 0.0 }
  0xd0   :  { %524 = vst.msk [vmem:[%s1795_s2 + $0xc8] sm:$0xff] %vm498_vm1, %v1264_v50  ;;  %v581_v41 = vadd.f32 %v580_v28, %v579_v32  ;;  %v714_v32 = vmul.f32 %v1099_v57, %v1099_v57 }
  0xd1   :  { %539 = vst.msk [vmem:[%s1795_s2 + $0x140] sm:$0xff] %vm498_vm1, %v1345_v2  ;;  %v779_v33 = vsel %vm498_vm1, %v707_v21, 0.0 }
  0xd2   :  { %v780_v1 = vadd.f32 %v779_v33, %v778_v38  ;;  %v1447_v38 = vpop.f32.mrf.mxu3 }
  0xd3   :  { %554 = vst.msk [vmem:[%s1795_s2 + $0x1b8] sm:$0xff] %vm498_vm1, %v1447_v38 }
  0xd6   :  { %v336_v53 = vpop.f32.mrf.mxu0  ;;  %v1289_v54 = vpop.f32.mrf.mxu1 }
  0xd7   :  { %509 = vst.msk [vmem:[%s1795_s2 + $0x50] sm:$0xff] %vm498_vm1, %v336_v53  ;;  %v1379_v22 = vpop.f32.mrf.mxu2  ;;  %v708_v30 = vmul.f32 %v336_v53, %v336_v53  ;;  %v582_v34 = vsel %vm498_vm1, %v336_v53, 0.0 }
  0xd8   :  { %525 = vst.msk [vmem:[%s1795_s2 + $0xd0] sm:$0xff] %vm498_vm1, %v1289_v54  ;;  %v583_v4 = vadd.f32 %v582_v34, %v581_v41 }
  0xd9   :  { %540 = vst.msk [vmem:[%s1795_s2 + $0x148] sm:$0xff] %vm498_vm1, %v1379_v22  ;;  %v781_v42 = vsel %vm498_vm1, %v708_v30, 0.0 }
  0xde   :  { %v339_v58 = vpop.f32.mrf.mxu0  ;;  %v1314_v59 = vpop.f32.mrf.mxu1 }
  0xdf   :  { %510 = vst.msk [vmem:[%s1795_s2 + $0x58] sm:$0xff] %vm498_vm1, %v339_v58  ;;  %v709_v37 = vmul.f32 %v339_v58, %v339_v58  ;;  %v584_v45 = vsel %vm498_vm1, %v339_v58, 0.0  ;;  %v1412_v53 = vpop.f32.mrf.mxu2  ;;  %v782_v58 = vadd.f32 %v781_v42, %v780_v1 }
  0xe0   :  { %526 = vst.msk [vmem:[%s1795_s2 + $0xd8] sm:$0xff] %vm498_vm1, %v1314_v59  ;;  %v585_v12 = vadd.f32 %v584_v45, %v583_v4  ;;  %v594_v45 = vsel %vm498_vm1, %v1099_v57, 0.0  ;;  %v793_v57 = vsel %vm498_vm1, %v714_v32, 0.0 }
  0xe1   :  { %v783_v7 = vsel %vm498_vm1, %v709_v37, 0.0  ;;  %541 = vst.msk [vmem:[%s1795_s2 + $0x150] sm:$0xff] %vm498_vm1, %v1412_v53 }
  0xe2   :  { %v784_v15 = vadd.f32 %v783_v7, %v782_v58  ;;  %v596_v7 = vsel %vm498_vm1, %v1112_v62, 0.0 }
  0xe6   :  { %v342_v63 = vpop.f32.mrf.mxu0  ;;  %v1339_v0 = vpop.f32.mrf.mxu1 }
  0xe7   :  { %511 = vst.msk [vmem:[%s1795_s2 + $0x60] sm:$0xff] %vm498_vm1, %v342_v63  ;;  %v710_v49 = vmul.f32 %v342_v63, %v342_v63  ;;  %v586_v8 = vsel %vm498_vm1, %v342_v63, 0.0  ;;  %v1445_v37 = vpop.f32.mrf.mxu2 }
  0xe8   :  { %527 = vst.msk [vmem:[%s1795_s2 + $0xe0] sm:$0xff] %vm498_vm1, %v1339_v0  ;;  %v587_v19 = vadd.f32 %v586_v8, %v585_v12  ;;  %v716_v8 = vmul.f32 %v1129_v9, %v1129_v9 }
  0xe9   :  { %v785_v63 = vsel %vm498_vm1, %v710_v49, 0.0  ;;  %v715_v49 = vmul.f32 %v1112_v62, %v1112_v62  ;;  %542 = vst.msk [vmem:[%s1795_s2 + $0x158] sm:$0xff] %vm498_vm1, %v1445_v37  ;;  %v600_v62 = vsel %vm498_vm1, %v1144_v18, 0.0 }
  0xeb   :  { %v795_v12 = vsel %vm498_vm1, %v715_v49, 0.0  ;;  %v721_v49 = vmul.f32 %v1221_v43, %v1221_v43 }
  0xee   :  { %v345_v16 = vpop.f32.mrf.mxu0  ;;  %v1371_v17 = vpop.f32.mrf.mxu1 }
  0xef   :  { %512 = vst.msk [vmem:[%s1795_s2 + $0x68] sm:$0xff] %vm498_vm1, %v345_v16  ;;  %v711_v10 = vmul.f32 %v345_v16, %v345_v16  ;;  %v588_v13 = vsel %vm498_vm1, %v345_v16, 0.0  ;;  %v786_v16 = vadd.f32 %v785_v63, %v784_v15  ;;  %v598_v63 = vsel %vm498_vm1, %v1129_v9, 0.0 }
  0xf0   :  { %528 = vst.msk [vmem:[%s1795_s2 + $0xe8] sm:$0xff] %vm498_vm1, %v1371_v17  ;;  %v589_v24 = vadd.f32 %v588_v13, %v587_v19  ;;  %v717_v13 = vmul.f32 %v1144_v18, %v1144_v18  ;;  %v797_v19 = vsel %vm498_vm1, %v716_v8, 0.0  ;;  %v602_v18 = vsel %vm498_vm1, %v1158_v26, 0.0 }
  0xf1   :  { %v787_v20 = vsel %vm498_vm1, %v711_v10, 0.0 }
  0xf2   :  { %v788_v27 = vadd.f32 %v787_v20, %v786_v16  ;;  %v718_v20 = vmul.f32 %v1158_v26, %v1158_v26  ;;  %v1486_v16 = vpop.f32.mrf.mxu3  ;;  %v799_v9 = vsel %vm498_vm1, %v717_v13, 0.0 }
  0xf3   :  { %555 = vst.msk [vmem:[%s1795_s2 + $0x1c0] sm:$0xff] %vm498_vm1, %v1486_v16 }
  0xf4   :  { %v801_v32 = vsel %vm498_vm1, %v718_v20, 0.0 }
  0xf6   :  { %v348_v5 = vpop.f32.mrf.mxu0  ;;  %v1404_v6 = vpop.f32.mrf.mxu1 }
  0xf7   :  { %513 = vst.msk [vmem:[%s1795_s2 + $0x70] sm:$0xff] %vm498_vm1, %v348_v5  ;;  %v712_v14 = vmul.f32 %v348_v5, %v348_v5  ;;  %v590_v21 = vsel %vm498_vm1, %v348_v5, 0.0 }
  0xf8   :  { %529 = vst.msk [vmem:[%s1795_s2 + $0xf0] sm:$0xff] %vm498_vm1, %v1404_v6  ;;  %v591_v28 = vadd.f32 %v590_v21, %v589_v24  ;;  %v1484_v21 = vpop.f32.mrf.mxu2 }
  0xf9   :  { %v789_v25 = vsel %vm498_vm1, %v712_v14, 0.0  ;;  %543 = vst.msk [vmem:[%s1795_s2 + $0x160] sm:$0xff] %vm498_vm1, %v1484_v21 }
  0xfa   :  { %v790_v41 = vadd.f32 %v789_v25, %v788_v27  ;;  %v719_v27 = vmul.f32 %v1183_v35, %v1183_v35  ;;  %v1520_v8 = vpop.f32.mrf.mxu3 }
  0xfb   :  { %556 = vst.msk [vmem:[%s1795_s2 + $0x1c8] sm:$0xff] %vm498_vm1, %v1520_v8 }
  0xfe   :  { %v351_v30 = vpop.f32.mrf.mxu0  ;;  %v1436_v31 = vpop.f32.mrf.mxu1 }
  0xff   :  { %514 = vst.msk [vmem:[%s1795_s2 + $0x78] sm:$0xff] %vm498_vm1, %v351_v30  ;;  %v592_v33 = vsel %vm498_vm1, %v351_v30, 0.0  ;;  %v713_v34 = vmul.f32 %v351_v30, %v351_v30 }
 0x100   :  { %v593_v42 = vadd.f32 %v592_v33, %v591_v28  ;;  %530 = vst.msk [vmem:[%s1795_s2 + $0xf8] sm:$0xff] %vm498_vm1, %v1436_v31  ;;  %v604_v33 = vsel %vm498_vm1, %v1183_v35, 0.0  ;;  %v608_v35 = vsel %vm498_vm1, %v1221_v43, 0.0  ;;  %v610_v43 = vsel %vm498_vm1, %v1239_v46, 0.0 }
 0x101   :  { %v791_v1 = vsel %vm498_vm1, %v713_v34, 0.0  ;;  %v720_v34 = vmul.f32 %v1202_v39, %v1202_v39 }
 0x102   :  { %v595_v4 = vadd.f32 %v594_v45, %v593_v42  ;;  %v792_v5 = vadd.f32 %v791_v1, %v790_v41  ;;  %v803_v42 = vsel %vm498_vm1, %v719_v27, 0.0  ;;  %v606_v45 = vsel %vm498_vm1, %v1202_v39, 0.0 }
 0x103   :  { %v807_v39 = vsel %vm498_vm1, %v721_v49, 0.0  ;;  %v620_v49 = vsel %vm498_vm1, %v1371_v17, 0.0 }
 0x104   :  { %v597_v10 = vadd.f32 %v596_v7, %v595_v4  ;;  %v794_v58 = vadd.f32 %v793_v57, %v792_v5  ;;  %v805_v5 = vsel %vm498_vm1, %v720_v34, 0.0  ;;  %v722_v57 = vmul.f32 %v1239_v46, %v1239_v46  ;;  %v1518_v7 = vpop.f32.mrf.mxu2 }
 0x105   :  { %544 = vst.msk [vmem:[%s1795_s2 + $0x168] sm:$0xff] %vm498_vm1, %v1518_v7 }
 0x106   :  { %v599_v14 = vadd.f32 %v598_v63, %v597_v10  ;;  %v796_v15 = vadd.f32 %v795_v12, %v794_v58  ;;  %v723_v12 = vmul.f32 %v1264_v50, %v1264_v50 }
 0x108   :  { %v601_v24 = vadd.f32 %v600_v62, %v599_v14  ;;  %v798_v25 = vadd.f32 %v797_v19, %v796_v15  ;;  %v809_v14 = vsel %vm498_vm1, %v722_v57, 0.0  ;;  %v612_v15 = vsel %vm498_vm1, %v1264_v50, 0.0 }
 0x109   :  { %v724_v19 = vmul.f32 %v1289_v54, %v1289_v54  ;;  %v811_v20 = vsel %vm498_vm1, %v723_v12, 0.0  ;;  %v616_v50 = vsel %vm498_vm1, %v1314_v59, 0.0  ;;  %v622_v57 = vsel %vm498_vm1, %v1404_v6, 0.0 }
 0x10a   :  { %v603_v28 = vadd.f32 %v602_v18, %v601_v24  ;;  %v800_v30 = vadd.f32 %v799_v9, %v798_v25  ;;  %v614_v24 = vsel %vm498_vm1, %v1289_v54, 0.0  ;;  %v725_v25 = vmul.f32 %v1314_v59, %v1314_v59 }
 0x10b   :  { %v813_v27 = vsel %vm498_vm1, %v724_v19, 0.0  ;;  %v618_v59 = vsel %vm498_vm1, %v1339_v0, 0.0 }
 0x10c   :  { %v605_v26 = vadd.f32 %v604_v33, %v603_v28  ;;  %v802_v41 = vadd.f32 %v801_v32, %v800_v30  ;;  %v726_v28 = vmul.f32 %v1339_v0, %v1339_v0  ;;  %v1552_v30 = vpop.f32.mrf.mxu2  ;;  %v1554_v32 = vpop.f32.mrf.mxu3  ;;  %v815_v54 = vsel %vm498_vm1, %v725_v25, 0.0 }
 0x10d   :  { %545 = vst.msk [vmem:[%s1795_s2 + $0x170] sm:$0xff] %vm498_vm1, %v1552_v30  ;;  %v729_v0 = vmul.f32 %v1436_v31, %v1436_v31 }
 0x10e   :  { %v804_v1 = vadd.f32 %v803_v42, %v802_v41  ;;  %v607_v4 = vadd.f32 %v606_v45, %v605_v26  ;;  %v727_v26 = vmul.f32 %v1371_v17, %v1371_v17  ;;  %557 = vst.msk [vmem:[%s1795_s2 + $0x1d0] sm:$0xff] %vm498_vm1, %v1554_v32  ;;  %v817_v45 = vsel %vm498_vm1, %v726_v28, 0.0 }
 0x10f   :  { %v730_v17 = vmul.f32 %v1165_v29, %v1165_v29  ;;  %v823_v12 = vsel %vm498_vm1, %v729_v0, 0.0  ;;  %v736_v0 = vmul.f32 %v1295_v55, %v1295_v55 }
 0x110   :  { %v609_v10 = vadd.f32 %v608_v35, %v607_v4  ;;  %v806_v58 = vadd.f32 %v805_v5, %v804_v1  ;;  %v728_v1 = vmul.f32 %v1404_v6, %v1404_v6  ;;  %v819_v35 = vsel %vm498_vm1, %v727_v26, 0.0 }
 0x111   :  { %v626_v6 = vsel %vm498_vm1, %v1165_v29, 0.0 }
 0x112   :  { %v611_v63 = vadd.f32 %v610_v43, %v609_v10  ;;  %v808_v13 = vadd.f32 %v807_v39, %v806_v58  ;;  %v624_v10 = vsel %vm498_vm1, %v1436_v31, 0.0  ;;  %v821_v43 = vsel %vm498_vm1, %v728_v1, 0.0 }
 0x113   :  { %v731_v31 = vmul.f32 %v1189_v36, %v1189_v36  ;;  %v636_v1 = vsel %vm498_vm1, %v1270_v51, 0.0 }
 0x114   :  { %v613_v46 = vadd.f32 %v612_v15, %v611_v63  ;;  %v810_v62 = vadd.f32 %v809_v14, %v808_v13  ;;  %v1587_v63 = vpop.f32.mrf.mxu2  ;;  %v1589_v13 = vpop.f32.mrf.mxu3 }
 0x115   :  { %546 = vst.msk [vmem:[%s1795_s2 + $0x178] sm:$0xff] %vm498_vm1, %v1587_v63 }
 0x116   :  { %v615_v9 = vadd.f32 %v614_v24, %v613_v46  ;;  %v812_v18 = vadd.f32 %v811_v20, %v810_v62  ;;  %558 = vst.msk [vmem:[%s1795_s2 + $0x1d8] sm:$0xff] %vm498_vm1, %v1589_v13  ;;  %v825_v62 = vsel %vm498_vm1, %v730_v17, 0.0  ;;  %v628_v20 = vsel %vm498_vm1, %v1189_v36, 0.0 }
 0x117   :  { %v732_v24 = vmul.f32 %v1208_v40, %v1208_v40  ;;  %v632_v36 = vsel %vm498_vm1, %v1227_v44, 0.0  ;;  %v738_v17 = vmul.f32 %v1345_v2, %v1345_v2 }
 0x118   :  { %v617_v33 = vadd.f32 %v616_v50, %v615_v9  ;;  %v814_v34 = vadd.f32 %v813_v27, %v812_v18  ;;  %v827_v9 = vsel %vm498_vm1, %v731_v31, 0.0  ;;  %v630_v18 = vsel %vm498_vm1, %v1208_v40, 0.0 }
 0x119   :  { %v733_v27 = vmul.f32 %v1227_v44, %v1227_v44  ;;  %v735_v44 = vmul.f32 %v1270_v51, %v1270_v51  ;;  %v640_v51 = vsel %vm498_vm1, %v1320_v60, 0.0 }
 0x11a   :  { %v816_v41 = vadd.f32 %v815_v54, %v814_v34  ;;  %v619_v42 = vadd.f32 %v618_v59, %v617_v33  ;;  %v829_v33 = vsel %vm498_vm1, %v732_v24, 0.0  ;;  %v734_v34 = vmul.f32 %v1245_v47, %v1245_v47 }
 0x11b   :  { %v831_v40 = vsel %vm498_vm1, %v733_v27, 0.0 }
 0x11c   :  { %v818_v4 = vadd.f32 %v817_v45, %v816_v41  ;;  %v621_v5 = vadd.f32 %v620_v49, %v619_v42  ;;  %v1620_v54 = vpop.f32.mrf.mxu3  ;;  %v634_v41 = vsel %vm498_vm1, %v1245_v47, 0.0  ;;  %v833_v49 = vsel %vm498_vm1, %v734_v34, 0.0 }
 0x11d   :  { %559 = vst.msk [vmem:[%s1795_s2 + $0x1e0] sm:$0xff] %vm498_vm1, %v1620_v54  ;;  %v638_v47 = vsel %vm498_vm1, %v1295_v55, 0.0  ;;  %v650_v34 = vsel %vm498_vm1, %v1484_v21, 0.0 }
 0x11e   :  { %v820_v58 = vadd.f32 %v819_v35, %v818_v4  ;;  %v623_v39 = vadd.f32 %v622_v57, %v621_v5  ;;  %v835_v35 = vsel %vm498_vm1, %v735_v44, 0.0  ;;  %v737_v57 = vmul.f32 %v1320_v60, %v1320_v60 }
 0x11f   :  { %v739_v60 = vmul.f32 %v1379_v22, %v1379_v22  ;;  %v744_v44 = vmul.f32 %v1552_v30, %v1552_v30 }
 0x120   :  { %v822_v14 = vadd.f32 %v821_v43, %v820_v58  ;;  %v625_v15 = vadd.f32 %v624_v10, %v623_v39  ;;  %v837_v39 = vsel %vm498_vm1, %v736_v0, 0.0  ;;  %v839_v55 = vsel %vm498_vm1, %v737_v57, 0.0 }
 0x121   :  { %v656_v0 = vsel %vm498_vm1, %v1587_v63, 0.0 }
 0x122   :  { %v627_v19 = vadd.f32 %v626_v6, %v625_v15  ;;  %v824_v46 = vadd.f32 %v823_v12, %v822_v14  ;;  %v642_v15 = vsel %vm498_vm1, %v1345_v2, 0.0  ;;  %v646_v2 = vsel %vm498_vm1, %v1412_v53, 0.0 }
 0x124   :  { %v629_v29 = vadd.f32 %v628_v20, %v627_v19  ;;  %v826_v25 = vadd.f32 %v825_v62, %v824_v46  ;;  %v1647_v43 = vpop.f32.mrf.mxu3  ;;  %v841_v19 = vsel %vm498_vm1, %v738_v17, 0.0  ;;  %v644_v46 = vsel %vm498_vm1, %v1379_v22, 0.0 }
 0x125   :  { %560 = vst.msk [vmem:[%s1795_s2 + $0x1e8] sm:$0xff] %vm498_vm1, %v1647_v43  ;;  %v740_v62 = vmul.f32 %v1412_v53, %v1412_v53  ;;  %v648_v22 = vsel %vm498_vm1, %v1445_v37, 0.0 }
 0x126   :  { %v631_v50 = vadd.f32 %v630_v18, %v629_v29  ;;  %v828_v28 = vadd.f32 %v827_v9, %v826_v25  ;;  %v843_v29 = vsel %vm498_vm1, %v739_v60, 0.0  ;;  %v741_v25 = vmul.f32 %v1445_v37, %v1445_v37 }
 0x127   :  { %v845_v27 = vsel %vm498_vm1, %v740_v62, 0.0  ;;  %v743_v37 = vmul.f32 %v1518_v7, %v1518_v7  ;;  %v750_v62 = vmul.f32 %v1347_v3, %v1347_v3 }
 0x128   :  { %v633_v59 = vadd.f32 %v632_v36, %v631_v50  ;;  %v830_v26 = vadd.f32 %v829_v33, %v828_v28  ;;  %v742_v50 = vmul.f32 %v1484_v21, %v1484_v21  ;;  %v847_v53 = vsel %vm498_vm1, %v741_v25, 0.0 }
 0x129   :  { %v851_v21 = vsel %vm498_vm1, %v743_v37, 0.0 }
 0x12a   :  { %v635_v42 = vadd.f32 %v634_v41, %v633_v59  ;;  %v832_v45 = vadd.f32 %v831_v40, %v830_v26  ;;  %v849_v40 = vsel %vm498_vm1, %v742_v50, 0.0  ;;  %v652_v41 = vsel %vm498_vm1, %v1518_v7, 0.0 }
 0x12b   :  { %v746_v7 = vmul.f32 %v1247_v48, %v1247_v48 }
 0x12c   :  { %v637_v4 = vadd.f32 %v636_v1, %v635_v42  ;;  %v834_v5 = vadd.f32 %v833_v49, %v832_v45  ;;  %v1674_v28 = vpop.f32.mrf.mxu3  ;;  %v745_v42 = vmul.f32 %v1587_v63, %v1587_v63  ;;  %v654_v1 = vsel %vm498_vm1, %v1552_v30, 0.0 }
 0x12d   :  { %561 = vst.msk [vmem:[%s1795_s2 + $0x1f0] sm:$0xff] %vm498_vm1, %v1674_v28  ;;  %v658_v30 = vsel %vm498_vm1, %v1247_v48, 0.0  ;;  %v747_v63 = vmul.f32 %v1272_v52, %v1272_v52  ;;  %v857_v17 = vsel %vm498_vm1, %v746_v7, 0.0  ;;  %v662_v48 = vsel %vm498_vm1, %v1297_v56, 0.0 }
 0x12e   :  { %v836_v10 = vadd.f32 %v835_v35, %v834_v5  ;;  %v639_v58 = vadd.f32 %v638_v47, %v637_v4  ;;  %v853_v35 = vsel %vm498_vm1, %v744_v44, 0.0  ;;  %v855_v47 = vsel %vm498_vm1, %v745_v42, 0.0 }
 0x12f   :  { %v859_v60 = vsel %vm498_vm1, %v747_v63, 0.0  ;;  %v755_v44 = vmul.f32 %v1520_v8, %v1520_v8 }
 0x130   :  { %v641_v12 = vadd.f32 %v640_v51, %v639_v58  ;;  %v838_v14 = vadd.f32 %v837_v39, %v836_v10 }
 0x132   :  { %v643_v6 = vadd.f32 %v642_v15, %v641_v12  ;;  %v840_v31 = vadd.f32 %v839_v55, %v838_v14  ;;  %v660_v12 = vsel %vm498_vm1, %v1272_v52, 0.0  ;;  %v748_v14 = vmul.f32 %v1297_v56, %v1297_v56 }
 0x133   :  { %v664_v52 = vsel %vm498_vm1, %v1322_v61, 0.0  ;;  %v666_v56 = vsel %vm498_vm1, %v1347_v3, 0.0  ;;  %v670_v3 = vsel %vm498_vm1, %v1414_v11, 0.0 }
 0x134   :  { %v645_v20 = vadd.f32 %v644_v46, %v643_v6  ;;  %v842_v24 = vadd.f32 %v841_v19, %v840_v31  ;;  %v1702_v57 = vpop.f32.mrf.mxu3  ;;  %v749_v6 = vmul.f32 %v1322_v61, %v1322_v61  ;;  %v861_v46 = vsel %vm498_vm1, %v748_v14, 0.0 }
 0x135   :  { %562 = vst.msk [vmem:[%s1795_s2 + $0x1f8] sm:$0xff] %vm498_vm1, %v1702_v57  ;;  %v668_v61 = vsel %vm498_vm1, %v1381_v23, 0.0  ;;  %v760_v14 = vmul.f32 %v1674_v28, %v1674_v28 }
 0x136   :  { %v647_v9 = vadd.f32 %v646_v2, %v645_v20  ;;  %v844_v18 = vadd.f32 %v843_v29, %v842_v24  ;;  %v863_v29 = vsel %vm498_vm1, %v749_v6, 0.0  ;;  %v751_v2 = vmul.f32 %v1381_v23, %v1381_v23 }
 0x137   :  { %v672_v23 = vsel %vm498_vm1, %v1447_v38, 0.0  ;;  %v688_v6 = vsel %vm498_vm1, %v1702_v57, 0.0 }
 0x138   :  { %v649_v33 = vadd.f32 %v648_v22, %v647_v9  ;;  %v846_v36 = vadd.f32 %v845_v27, %v844_v18  ;;  %v865_v18 = vsel %vm498_vm1, %v750_v62, 0.0  ;;  %v752_v27 = vmul.f32 %v1414_v11, %v1414_v11 }
 0x139   :  { %v674_v11 = vsel %vm498_vm1, %v1486_v16, 0.0 }
 0x13a   :  { %v848_v59 = vadd.f32 %v847_v53, %v846_v36  ;;  %v651_v26 = vadd.f32 %v650_v34, %v649_v33  ;;  %v867_v33 = vsel %vm498_vm1, %v751_v2, 0.0  ;;  %v753_v36 = vmul.f32 %v1447_v38, %v1447_v38 }
 0x13b   :  { %v869_v37 = vsel %vm498_vm1, %v752_v27, 0.0  ;;  %v676_v38 = vsel %vm498_vm1, %v1520_v8, 0.0  ;;  %v680_v8 = vsel %vm498_vm1, %v1589_v13, 0.0 }
 0x13c   :  { %v850_v45 = vadd.f32 %v849_v40, %v848_v59  ;;  %v653_v49 = vadd.f32 %v652_v41, %v651_v26  ;;  %v754_v59 = vmul.f32 %v1486_v16, %v1486_v16  ;;  %v871_v41 = vsel %vm498_vm1, %v753_v36, 0.0 }
 0x13d   :  { %v678_v16 = vsel %vm498_vm1, %v1554_v32, 0.0 }
 0x13e   :  { %v852_v4 = vadd.f32 %v851_v21, %v850_v45  ;;  %v655_v5 = vadd.f32 %v654_v1, %v653_v49  ;;  %v873_v49 = vsel %vm498_vm1, %v754_v59, 0.0  ;;  %v756_v21 = vmul.f32 %v1554_v32, %v1554_v32 }
 0x13f   :  { %v682_v32 = vsel %vm498_vm1, %v1620_v54, 0.0 }
 0x140   :  { %v854_v10 = vadd.f32 %v853_v35, %v852_v4  ;;  %v657_v58 = vadd.f32 %v656_v0, %v655_v5  ;;  %v875_v4 = vsel %vm498_vm1, %v755_v44, 0.0  ;;  %v757_v5 = vmul.f32 %v1589_v13, %v1589_v13 }
 0x141   :  { %v684_v13 = vsel %vm498_vm1, %v1647_v43, 0.0 }
 0x142   :  { %v659_v39 = vadd.f32 %v658_v30, %v657_v58  ;;  %v856_v51 = vadd.f32 %v855_v47, %v854_v10  ;;  %v877_v47 = vsel %vm498_vm1, %v756_v21, 0.0  ;;  %v758_v10 = vmul.f32 %v1620_v54, %v1620_v54 }
 0x143   :  { %v879_v63 = vsel %vm498_vm1, %v757_v5, 0.0 }
 0x144   :  { %v661_v55 = vadd.f32 %v660_v12, %v659_v39  ;;  %v858_v15 = vadd.f32 %v857_v17, %v856_v51  ;;  %v759_v39 = vmul.f32 %v1647_v43, %v1647_v43  ;;  %v881_v12 = vsel %vm498_vm1, %v758_v10, 0.0 }
 0x145   :  { %v885_v43 = vsel %vm498_vm1, %v760_v14, 0.0 }
 0x146   :  { %v663_v31 = vadd.f32 %v662_v48, %v661_v55  ;;  %v860_v19 = vadd.f32 %v859_v60, %v858_v15  ;;  %v761_v55 = vmul.f32 %v1702_v57, %v1702_v57  ;;  %v883_v54 = vsel %vm498_vm1, %v759_v39, 0.0 }
 0x147   :  { %v686_v48 = vsel %vm498_vm1, %v1674_v28, 0.0 }
 0x148   :  { %v665_v20 = vadd.f32 %v664_v52, %v663_v31  ;;  %v862_v24 = vadd.f32 %v861_v46, %v860_v19  ;;  %v887_v46 = vsel %vm498_vm1, %v761_v55, 0.0 }
 0x14a   :  { %v667_v25 = vadd.f32 %v666_v56, %v665_v20  ;;  %v864_v9 = vadd.f32 %v863_v29, %v862_v24 }
 0x14c   :  { %v669_v22 = vadd.f32 %v668_v61, %v667_v25  ;;  %v866_v50 = vadd.f32 %v865_v18, %v864_v9 }
 0x14e   :  { %v868_v53 = vadd.f32 %v867_v33, %v866_v50  ;;  %v671_v34 = vadd.f32 %v670_v3, %v669_v22 }
 0x150   :  { %v673_v26 = vadd.f32 %v672_v23, %v671_v34  ;;  %v870_v40 = vadd.f32 %v869_v37, %v868_v53 }
 0x152   :  { %v675_v42 = vadd.f32 %v674_v11, %v673_v26  ;;  %v872_v45 = vadd.f32 %v871_v41, %v870_v40 }
 0x154   :  { %v677_v1 = vadd.f32 %v676_v38, %v675_v42  ;;  %v874_v0 = vadd.f32 %v873_v49, %v872_v45 }
 0x156   :  { %v679_v7 = vadd.f32 %v678_v16, %v677_v1  ;;  %v876_v35 = vadd.f32 %v875_v4, %v874_v0 }
 0x158   :  { %v681_v58 = vadd.f32 %v680_v8, %v679_v7  ;;  %v878_v30 = vadd.f32 %v877_v47, %v876_v35 }
 0x15a   :  { %v880_v51 = vadd.f32 %v879_v63, %v878_v30  ;;  %v683_v17 = vadd.f32 %v682_v32, %v681_v58 }
 0x15c   :  { %v882_v15 = vadd.f32 %v881_v12, %v880_v51  ;;  %v685_v60 = vadd.f32 %v684_v13, %v683_v17 }
 0x15e   :  { %v884_v31 = vadd.f32 %v883_v54, %v882_v15  ;;  %v687_v19 = vadd.f32 %v686_v48, %v685_v60 }
 0x160   :  { %v886_v52 = vadd.f32 %v885_v43, %v884_v31  ;;  %v689_v62 = vadd.f32 %v688_v6, %v687_v19 }
 0x162   :  { %v690_v20 = vrot.slane %v689_v62, 4  ;;  %v888_v24 = vadd.f32 %v887_v46, %v886_v52 }
 0x164   :  { %v691_v29 = vadd.f32 %v690_v20, %v689_v62  ;;  %v889_v56 = vrot.slane %v888_v24, 4 }
 0x166   :  { %v692_v2 = vrot.slane %v691_v29, 2  ;;  %v890_v25 = vadd.f32 %v889_v56, %v888_v24 }
 0x168   :  { %v693_v9 = vadd.f32 %v692_v2, %v691_v29  ;;  %v891_v18 = vrot.slane %v890_v25, 2 }
 0x16a   :  { %v694_v28 = vrot.slane %v693_v9, 1  ;;  %v892_v61 = vadd.f32 %v891_v18, %v890_v25 }
 0x16c   :  { %v695_v57 = vadd.f32 %v694_v28, %v693_v9  ;;  %v893_v27 = vrot.slane %v892_v61, 1 }
 0x16e   :  { %697 = vst.msk [vmem:[%s1796_s3] sm:$0x1] %vm696_vm2, %v695_v57  ;;  %v894_v22 = vadd.f32 %v893_v27, %v892_v61 }
 0x170   :  { %895 = vst.msk [vmem:[%s1797_s4] sm:$0x1] %vm696_vm2, %v894_v22 }
 0x171   :  { %908 = vsyncpa [#allocation3], 1 }

// kernel: bottleneck_pallas.6
= control target key start
LH: loop header
LB: loop body
LE: loop exit
PB: predicated region body
PF: predicated region fallthrough
CT: control target
= control target key end

     0   :  { %12 = vsyncpa [#allocation3], 0  ;;  %s1213_s24 = smov [#allocation2]   ;;  %s2336_s0 = inlined_call_operand.vmem [shape: f32[512,4], index: 0, kind: input, shape index: {}]   ;;  %s2337_s1 = inlined_call_operand.hbm [shape: f32[4,16], index: 1, kind: input, shape index: {}]   ;;  %s2338_s2 = inlined_call_operand.vmem [shape: f32[1,4], index: 2, kind: input, shape index: {}]   ;;  %s2339_s3 = inlined_call_operand.vmem [shape: f32[1,4], index: 3, kind: input, shape index: {}]   ;;  %s2340_s4 = inlined_call_operand.vmem [shape: f32[512,16], index: 4, kind: output, shape index: {0}]   ;;  %s2341_s5 = inlined_call_operand.vmem [shape: f32[1,1,16], index: 5, kind: output, shape index: {1}]   ;;  %s2342_s6 = inlined_call_operand.vmem [shape: f32[1,1,16], index: 6, kind: output, shape index: {2}]  }
   0x1   :  { %s20_s23 = sshll.u32 %s2337_s1, 4  ;;  %s22_s25 = sshll.u32 %s1213_s24, 4  ;;  %s21_s23 = int_to_ptr.hbm [resolvable:$true] %s20_s23  ;;  %s23_s25 = int_to_ptr.vmem [resolvable:$true] %s22_s25 }
   0x2   :  { %25 = dma.hbm_to_vmem [thread:$0]  %s21_s23, 64, %s23_s25, [#allocation3]  }
   0x3   :  { %1211 = dma.done.wait [#allocation3], 64  }
   0x4   :  { %1212 = vsyncadd [#allocation3], 4294967232  ;;  %vm492_vm0 = vcmask 1043456   ;;  %v298_v0 = vld [vmem:[#allocation2] sm:$0xf]  ;;  %v35_v4 = vld [vmem:[%s2336_s0 + $0x8] sm:$0xff] }
   0x5   :  { %v34_v1 = vld [vmem:[%s2336_s0] sm:$0xff]  ;;  %1116 = vmatpush.msk.msra.mxu0 %vm492_vm0, %v298_v0  ;;  %1181 = vmatpush.msk.msra.mxu1 %vm492_vm0, %v298_v0  ;;  %vm299_vm1 = vcmask 31744   ;;  %v36_v14 = vld [vmem:[%s2336_s0 + $0x10] sm:$0xff]  ;;  %v51_v15 = vld [vmem:[%s2336_s0 + $0x88] sm:$0xff]  ;;  %vm705_vm2 = vcmask 130048   ;;  %vm903_vm3 = vcmask 122880  }
   0x6   :  { %v1258_v2 = vld [vmem:[%s2338_s2] ss:$0 sm:$0xff]  ;;  %1182 = vmatpush.msk.msra.mxu2 %vm492_vm0, %v298_v0  ;;  %1183 = vmatpush.msk.msra.mxu3 %vm492_vm0, %v298_v0  ;;  %v37_v22 = vld [vmem:[%s2336_s0 + $0x18] sm:$0xff]  ;;  %v52_v23 = vld [vmem:[%s2336_s0 + $0x90] sm:$0xff] }
   0x7   :  { %v1263_v3 = vld [vmem:[%s2339_s3] ss:$0 sm:$0xff]  ;;  %v102_v5 = vmul.f32 %v1258_v2, %v34_v1  ;;  %v103_v9 = vmul.f32 %v1258_v2, %v35_v4  ;;  %v119_v16 = vmul.f32 %v1258_v2, %v51_v15  ;;  %v104_v18 = vmul.f32 %v1258_v2, %v36_v14  ;;  %v53_v31 = vld [vmem:[%s2336_s0 + $0x98] sm:$0xff]  ;;  %v39_v42 = vld [vmem:[%s2336_s0 + $0x28] sm:$0xff] }
   0x8   :  { %v50_v6 = vld [vmem:[%s2336_s0 + $0x80] sm:$0xff]  ;;  %v120_v24 = vmul.f32 %v1258_v2, %v52_v23  ;;  %v105_v26 = vmul.f32 %v1258_v2, %v37_v22  ;;  %v121_v32 = vmul.f32 %v1258_v2, %v53_v31  ;;  %v67_v45 = vld [vmem:[%s2336_s0 + $0x108] sm:$0xff]  ;;  %v107_v47 = vmul.f32 %v1258_v2, %v39_v42  ;;  %v40_v54 = vld [vmem:[%s2336_s0 + $0x30] sm:$0xff] }
   0x9   :  { %v118_v7 = vmul.f32 %v1258_v2, %v50_v6  ;;  %v170_v8 = vadd.f32 %v1263_v3, %v102_v5  ;;  %v171_v13 = vadd.f32 %v1263_v3, %v103_v9  ;;  %v187_v19 = vadd.f32 %v1263_v3, %v119_v16  ;;  %v38_v30 = vld [vmem:[%s2336_s0 + $0x20] sm:$0xff]  ;;  %v55_v55 = vld [vmem:[%s2336_s0 + $0xa8] sm:$0xff]  ;;  %v68_v57 = vld [vmem:[%s2336_s0 + $0x110] sm:$0xff] }
   0xa   :  { %v172_v21 = vadd.f32 %v1263_v3, %v104_v18  ;;  %v188_v27 = vadd.f32 %v1263_v3, %v120_v24  ;;  %v173_v29 = vadd.f32 %v1263_v3, %v105_v26  ;;  %v66_v33 = vld [vmem:[%s2336_s0 + $0x100] sm:$0xff]  ;;  %v106_v35 = vmul.f32 %v1258_v2, %v38_v30  ;;  %v41_v4 = vld [vmem:[%s2336_s0 + $0x38] sm:$0xff]  ;;  %v56_v5 = vld [vmem:[%s2336_s0 + $0xb0] sm:$0xff] }
   0xb   :  { %v186_v10 = vadd.f32 %v1263_v3, %v118_v7  ;;  %v234_v11 = vmax.f32 %v170_v8, 0.0  ;;  %v235_v17 = vmax.f32 %v171_v13, 0.0  ;;  %v251_v20 = vmax.f32 %v187_v19, 0.0  ;;  %v54_v43 = vld [vmem:[%s2336_s0 + $0xa0] sm:$0xff]  ;;  %v69_v7 = vld [vmem:[%s2336_s0 + $0x118] sm:$0xff] }
   0xc   :  { %v236_v25 = vmax.f32 %v172_v21, 0.0  ;;  %v252_v28 = vmax.f32 %v188_v27, 0.0  ;;  %v237_v34 = vmax.f32 %v173_v29, 0.0  ;;  %v189_v36 = vadd.f32 %v1263_v3, %v121_v32  ;;  %v42_v15 = vld [vmem:[%s2336_s0 + $0x40] sm:$0xff]  ;;  %v43_v32 = vld [vmem:[%s2336_s0 + $0x48] sm:$0xff] }
   0xd   :  { %v250_v12 = vmax.f32 %v186_v10, 0.0  ;;  %1117 = vmatmul.msk.f32.vlgmr.msra.gmra.mxu0 %vm299_vm1, %v234_v11  ;;  %v134_v37 = vmul.f32 %v1258_v2, %v66_v33  ;;  %v174_v40 = vadd.f32 %v1263_v3, %v106_v35  ;;  %v122_v44 = vmul.f32 %v1258_v2, %v54_v43  ;;  %v82_v21 = vld [vmem:[%s2336_s0 + $0x180] sm:$0xff] }
   0xe   :  { %v253_v38 = vmax.f32 %v189_v36, 0.0  ;;  %v135_v49 = vmul.f32 %v1258_v2, %v67_v45  ;;  %v175_v52 = vadd.f32 %v1263_v3, %v107_v47  ;;  %v123_v56 = vmul.f32 %v1258_v2, %v55_v55  ;;  %v58_v33 = vld [vmem:[%s2336_s0 + $0xc0] sm:$0xff]  ;;  %v71_v36 = vld [vmem:[%s2336_s0 + $0x128] sm:$0xff] }
   0xf   :  { %1133 = vmatmul.msk.f32.vlgmr.msra.gmra.mxu1 %vm299_vm1, %v250_v12  ;;  %v202_v39 = vadd.f32 %v1263_v3, %v134_v37  ;;  %v238_v46 = vmax.f32 %v174_v40, 0.0  ;;  %v190_v48 = vadd.f32 %v1263_v3, %v122_v44  ;;  %v108_v59 = vmul.f32 %v1258_v2, %v40_v54  ;;  %v83_v37 = vld [vmem:[%s2336_s0 + $0x188] sm:$0xff] }
  0x10   :  { %v203_v51 = vadd.f32 %v1263_v3, %v135_v49  ;;  %v239_v58 = vmax.f32 %v175_v52, 0.0  ;;  %v191_v60 = vadd.f32 %v1263_v3, %v123_v56  ;;  %v136_v61 = vmul.f32 %v1258_v2, %v68_v57  ;;  %v59_v49 = vld [vmem:[%s2336_s0 + $0xc8] sm:$0xff]  ;;  %v72_v52 = vld [vmem:[%s2336_s0 + $0x130] sm:$0xff] }
  0x11   :  { %v266_v41 = vmax.f32 %v202_v39, 0.0  ;;  %v254_v50 = vmax.f32 %v190_v48, 0.0  ;;  %v176_v0 = vadd.f32 %v1263_v3, %v108_v59  ;;  %v124_v6 = vmul.f32 %v1258_v2, %v56_v5 }
  0x12   :  { %v267_v53 = vmax.f32 %v203_v51, 0.0  ;;  %v255_v62 = vmax.f32 %v191_v60, 0.0  ;;  %v204_v63 = vadd.f32 %v1263_v3, %v136_v61  ;;  %v109_v9 = vmul.f32 %v1258_v2, %v41_v4 }
  0x13   :  { %1149 = vmatmul.msk.f32.vlgmr.msra.gmra.mxu2 %vm299_vm1, %v266_v41  ;;  %v240_v8 = vmax.f32 %v176_v0, 0.0  ;;  %v192_v10 = vadd.f32 %v1263_v3, %v124_v6  ;;  %v137_v11 = vmul.f32 %v1258_v2, %v69_v7  ;;  %v110_v19 = vmul.f32 %v1258_v2, %v42_v15  ;;  %v45_v0 = vld [vmem:[%s2336_s0 + $0x58] sm:$0xff] }
  0x14   :  { %v268_v1 = vmax.f32 %v204_v63, 0.0  ;;  %v177_v14 = vadd.f32 %v1263_v3, %v109_v9  ;;  %v139_v40 = vmul.f32 %v1258_v2, %v71_v36  ;;  %v151_v41 = vmul.f32 %v1258_v2, %v83_v37  ;;  %v73_v6 = vld [vmem:[%s2336_s0 + $0x138] sm:$0xff] }
  0x15   :  { %1118 = vmatmul.msk.f32.gmra.mxu0 %vm299_vm1, %v235_v17  ;;  %v256_v12 = vmax.f32 %v192_v10, 0.0  ;;  %v205_v13 = vadd.f32 %v1263_v3, %v137_v11  ;;  %v57_v17 = vld [vmem:[%s2336_s0 + $0xb8] sm:$0xff]  ;;  %v178_v29 = vadd.f32 %v1263_v3, %v110_v19  ;;  %v140_v56 = vmul.f32 %v1258_v2, %v72_v52 }
  0x16   :  { %v125_v18 = vmul.f32 %v1258_v2, %v57_v17  ;;  %v241_v22 = vmax.f32 %v177_v14, 0.0  ;;  %v207_v43 = vadd.f32 %v1263_v3, %v139_v40  ;;  %v219_v44 = vadd.f32 %v1263_v3, %v151_v41  ;;  %v85_v7 = vld [vmem:[%s2336_s0 + $0x198] sm:$0xff] }
  0x17   :  { %1134 = vmatmul.msk.f32.gmra.mxu1 %vm299_vm1, %v251_v20  ;;  %v269_v16 = vmax.f32 %v205_v13, 0.0  ;;  %v70_v20 = vld [vmem:[%s2336_s0 + $0x120] sm:$0xff]  ;;  %v242_v35 = vmax.f32 %v178_v29, 0.0  ;;  %v208_v59 = vadd.f32 %v1263_v3, %v140_v56  ;;  %v141_v10 = vmul.f32 %v1258_v2, %v73_v6  ;;  %v61_v19 = vld [vmem:[%s2336_s0 + $0xd8] sm:$0xff] }
  0x18   :  { %v193_v23 = vadd.f32 %v1263_v3, %v125_v18  ;;  %v138_v24 = vmul.f32 %v1258_v2, %v70_v20  ;;  %v271_v47 = vmax.f32 %v207_v43, 0.0  ;;  %v283_v48 = vmax.f32 %v219_v44, 0.0 }
  0x19   :  { %v153_v11 = vmul.f32 %v1258_v2, %v85_v7  ;;  %v209_v13 = vadd.f32 %v1263_v3, %v141_v10  ;;  %v129_v20 = vmul.f32 %v1258_v2, %v61_v19 }
  0x1a   :  { %v257_v26 = vmax.f32 %v193_v23, 0.0  ;;  %v206_v27 = vadd.f32 %v1263_v3, %v138_v24  ;;  %v86_v23 = vld [vmem:[%s2336_s0 + $0x1a0] sm:$0xff] }
  0x1b   :  { %1150 = vmatmul.msk.f32.gmra.mxu2 %vm299_vm1, %v267_v53  ;;  %v84_v53 = vld [vmem:[%s2336_s0 + $0x190] sm:$0xff]  ;;  %v221_v14 = vadd.f32 %v1263_v3, %v153_v11  ;;  %v273_v17 = vmax.f32 %v209_v13, 0.0 }
  0x1c   :  { %v270_v30 = vmax.f32 %v206_v27, 0.0  ;;  %v152_v57 = vmul.f32 %v1258_v2, %v84_v53  ;;  %v154_v27 = vmul.f32 %v1258_v2, %v86_v23  ;;  %v90_v23 = vld [vmem:[%s2336_s0 + $0x1c0] sm:$0xff] }
  0x1d   :  { %1119 = vmatmul.msk.f32.gmra.mxu0 %vm299_vm1, %v236_v25  ;;  %v150_v25 = vmul.f32 %v1258_v2, %v82_v21  ;;  %v285_v18 = vmax.f32 %v221_v14, 0.0 }
  0x1e   :  { %v220_v60 = vadd.f32 %v1263_v3, %v152_v57 }
  0x1f   :  { %1135 = vmatmul.msk.f32.gmra.mxu1 %vm299_vm1, %v252_v28  ;;  %v218_v28 = vadd.f32 %v1263_v3, %v150_v25  ;;  %v197_v25 = vadd.f32 %v1263_v3, %v129_v20  ;;  %v65_v20 = vld [vmem:[%s2336_s0 + $0xf8] sm:$0xff] }
  0x20   :  { %v284_v63 = vmax.f32 %v220_v60, 0.0 }
  0x21   :  { %v282_v31 = vmax.f32 %v218_v28, 0.0  ;;  %v261_v28 = vmax.f32 %v197_v25, 0.0 }
  0x23   :  { %1151 = vmatmul.msk.f32.gmra.mxu2 %vm299_vm1, %v268_v1  ;;  %1165 = vmatmul.msk.f32.vlgmr.msra.gmra.mxu3 %vm299_vm1, %v282_v31  ;;  %v60_v1 = vld [vmem:[%s2336_s0 + $0xd0] sm:$0xff] }
  0x24   :  { %v128_v4 = vmul.f32 %v1258_v2, %v60_v1 }
  0x25   :  { %1120 = vmatmul.msk.f32.gmra.mxu0 %vm299_vm1, %v237_v34  ;;  %v126_v34 = vmul.f32 %v1258_v2, %v58_v33 }
  0x26   :  { %v196_v9 = vadd.f32 %v1263_v3, %v128_v4  ;;  %v49_v4 = vld [vmem:[%s2336_s0 + $0x78] sm:$0xff] }
  0x27   :  { %1136 = vmatmul.msk.f32.gmra.mxu1 %vm299_vm1, %v253_v38  ;;  %v111_v38 = vmul.f32 %v1258_v2, %v43_v32  ;;  %v194_v39 = vadd.f32 %v1263_v3, %v126_v34  ;;  %v47_v34 = vld [vmem:[%s2336_s0 + $0x68] sm:$0xff]  ;;  %v117_v10 = vmul.f32 %v1258_v2, %v49_v4 }
  0x28   :  { %v115_v40 = vmul.f32 %v1258_v2, %v47_v34  ;;  %v91_v34 = vld [vmem:[%s2336_s0 + $0x1c8] sm:$0xff] }
  0x29   :  { %v258_v42 = vmax.f32 %v194_v39, 0.0  ;;  %v179_v45 = vadd.f32 %v1263_v3, %v111_v38  ;;  %v75_v38 = vld [vmem:[%s2336_s0 + $0x148] sm:$0xff] }
  0x2a   :  { %v87_v39 = vld [vmem:[%s2336_s0 + $0x1a8] sm:$0xff] }
  0x2b   :  { %1152 = vmatmul.msk.f32.gmra.mxu2 %vm299_vm1, %v269_v16  ;;  %1166 = vmatmul.msk.f32.gmra.mxu3 %vm299_vm1, %v283_v48  ;;  %v243_v54 = vmax.f32 %v179_v45, 0.0  ;;  %v46_v16 = vld [vmem:[%s2336_s0 + $0x60] sm:$0xff]  ;;  %v155_v43 = vmul.f32 %v1258_v2, %v87_v39  ;;  %v48_v48 = vld [vmem:[%s2336_s0 + $0x70] sm:$0xff] }
  0x2c   :  { %v114_v21 = vmul.f32 %v1258_v2, %v46_v16  ;;  %v116_v53 = vmul.f32 %v1258_v2, %v48_v48 }
  0x2d   :  { %1121 = vmatmul.msk.f32.gmra.mxu0 %vm299_vm1, %v238_v46  ;;  %v44_v46 = vld [vmem:[%s2336_s0 + $0x50] sm:$0xff] }
  0x2e   :  { %v112_v51 = vmul.f32 %v1258_v2, %v44_v46  ;;  %v182_v31 = vadd.f32 %v1263_v3, %v114_v21  ;;  %v223_v46 = vadd.f32 %v1263_v3, %v155_v43  ;;  %v133_v21 = vmul.f32 %v1258_v2, %v65_v20  ;;  %v80_v43 = vld [vmem:[%s2336_s0 + $0x170] sm:$0xff] }
  0x2f   :  { %1137 = vmatmul.msk.f32.gmra.mxu1 %vm299_vm1, %v254_v50  ;;  %v127_v50 = vmul.f32 %v1258_v2, %v59_v49 }
  0x30   :  { %v180_v61 = vadd.f32 %v1263_v3, %v112_v51  ;;  %v246_v37 = vmax.f32 %v182_v31, 0.0  ;;  %v63_v51 = vld [vmem:[%s2336_s0 + $0xe8] sm:$0xff]  ;;  %v201_v25 = vadd.f32 %v1263_v3, %v133_v21 }
  0x31   :  { %v195_v55 = vadd.f32 %v1263_v3, %v127_v50  ;;  %v287_v50 = vmax.f32 %v223_v46, 0.0  ;;  %v131_v52 = vmul.f32 %v1258_v2, %v63_v51  ;;  %v148_v46 = vmul.f32 %v1258_v2, %v80_v43 }
  0x32   :  { %v244_v5 = vmax.f32 %v180_v61, 0.0 }
  0x33   :  { %1153 = vmatmul.msk.f32.gmra.mxu2 %vm299_vm1, %v270_v30  ;;  %1167 = vmatmul.msk.f32.gmra.mxu3 %vm299_vm1, %v284_v63  ;;  %v222_v30 = vadd.f32 %v1263_v3, %v154_v27  ;;  %v199_v57 = vadd.f32 %v1263_v3, %v131_v52  ;;  %v184_v63 = vadd.f32 %v1263_v3, %v116_v53 }
  0x34   :  { %v158_v27 = vmul.f32 %v1258_v2, %v90_v23  ;;  %v216_v53 = vadd.f32 %v1263_v3, %v148_v46 }
  0x35   :  { %1122 = vmatmul.msk.f32.gmra.mxu0 %vm299_vm1, %v239_v58  ;;  %v259_v58 = vmax.f32 %v195_v55, 0.0  ;;  %v286_v33 = vmax.f32 %v222_v30, 0.0  ;;  %v88_v55 = vld [vmem:[%s2336_s0 + $0x1b0] sm:$0xff]  ;;  %v263_v60 = vmax.f32 %v199_v57, 0.0  ;;  %v248_v7 = vmax.f32 %v184_v63, 0.0 }
  0x36   :  { %v226_v30 = vadd.f32 %v1263_v3, %v158_v27 }
  0x37   :  { %1138 = vmatmul.msk.f32.gmra.mxu1 %vm299_vm1, %v255_v62  ;;  %v272_v62 = vmax.f32 %v208_v59, 0.0  ;;  %v156_v59 = vmul.f32 %v1258_v2, %v88_v55 }
  0x3b   :  { %1154 = vmatmul.msk.f32.gmra.mxu2 %vm299_vm1, %v271_v47  ;;  %1168 = vmatmul.msk.f32.gmra.mxu3 %vm299_vm1, %v285_v18  ;;  %v183_v47 = vadd.f32 %v1263_v3, %v115_v40 }
  0x3d   :  { %1123 = vmatmul.msk.f32.gmra.mxu0 %vm299_vm1, %v240_v8  ;;  %v113_v8 = vmul.f32 %v1258_v2, %v45_v0  ;;  %v247_v56 = vmax.f32 %v183_v47, 0.0 }
  0x3f   :  { %1139 = vmatmul.msk.f32.gmra.mxu1 %vm299_vm1, %v256_v12  ;;  %v260_v12 = vmax.f32 %v196_v9, 0.0  ;;  %v181_v15 = vadd.f32 %v1263_v3, %v113_v8  ;;  %v77_v8 = vld [vmem:[%s2336_s0 + $0x158] sm:$0xff] }
  0x40   :  { %v89_v9 = vld [vmem:[%s2336_s0 + $0x1b8] sm:$0xff] }
  0x41   :  { %v245_v24 = vmax.f32 %v181_v15, 0.0  ;;  %v157_v13 = vmul.f32 %v1258_v2, %v89_v9 }
  0x43   :  { %1155 = vmatmul.msk.f32.gmra.mxu2 %vm299_vm1, %v272_v62  ;;  %1169 = vmatmul.msk.f32.gmra.mxu3 %vm299_vm1, %v286_v33  ;;  %v224_v62 = vadd.f32 %v1263_v3, %v156_v59  ;;  %v225_v16 = vadd.f32 %v1263_v3, %v157_v13  ;;  %v79_v33 = vld [vmem:[%s2336_s0 + $0x168] sm:$0xff] }
  0x45   :  { %1124 = vmatmul.msk.f32.gmra.mxu0 %vm299_vm1, %v241_v22  ;;  %v74_v22 = vld [vmem:[%s2336_s0 + $0x140] sm:$0xff]  ;;  %v288_v1 = vmax.f32 %v224_v62, 0.0  ;;  %v289_v19 = vmax.f32 %v225_v16, 0.0  ;;  %v93_v62 = vld [vmem:[%s2336_s0 + $0x1d8] sm:$0xff] }
  0x47   :  { %1140 = vmatmul.msk.f32.gmra.mxu1 %vm299_vm1, %v257_v26  ;;  %v142_v26 = vmul.f32 %v1258_v2, %v74_v22  ;;  %v78_v22 = vld [vmem:[%s2336_s0 + $0x160] sm:$0xff] }
  0x49   :  { %v210_v29 = vadd.f32 %v1263_v3, %v142_v26  ;;  %v146_v26 = vmul.f32 %v1258_v2, %v78_v22 }
  0x4b   :  { %1156 = vmatmul.msk.f32.gmra.mxu2 %vm299_vm1, %v273_v17  ;;  %v274_v32 = vmax.f32 %v210_v29, 0.0  ;;  %1170 = vmatmul.msk.f32.gmra.mxu3 %vm299_vm1, %v287_v50  ;;  %v185_v17 = vadd.f32 %v1263_v3, %v117_v10  ;;  %v214_v29 = vadd.f32 %v1263_v3, %v146_v26 }
  0x4d   :  { %1125 = vmatmul.msk.f32.gmra.mxu0 %vm299_vm1, %v242_v35  ;;  %v62_v35 = vld [vmem:[%s2336_s0 + $0xe0] sm:$0xff]  ;;  %v278_v31 = vmax.f32 %v214_v29, 0.0 }
  0x4e   :  { %v130_v36 = vmul.f32 %v1258_v2, %v62_v35  ;;  %v147_v35 = vmul.f32 %v1258_v2, %v79_v33 }
  0x4f   :  { %1141 = vmatmul.msk.f32.gmra.mxu1 %vm299_vm1, %v258_v42  ;;  %v143_v42 = vmul.f32 %v1258_v2, %v75_v38 }
  0x50   :  { %v198_v41 = vadd.f32 %v1263_v3, %v130_v36  ;;  %v159_v36 = vmul.f32 %v1258_v2, %v91_v34  ;;  %v215_v39 = vadd.f32 %v1263_v3, %v147_v35 }
  0x51   :  { %v211_v45 = vadd.f32 %v1263_v3, %v143_v42 }
  0x52   :  { %v262_v44 = vmax.f32 %v198_v41, 0.0  ;;  %v227_v40 = vadd.f32 %v1263_v3, %v159_v36  ;;  %v279_v41 = vmax.f32 %v215_v39, 0.0 }
  0x53   :  { %1157 = vmatmul.msk.f32.gmra.mxu2 %vm299_vm1, %v274_v32  ;;  %v275_v49 = vmax.f32 %v211_v45, 0.0  ;;  %1171 = vmatmul.msk.f32.gmra.mxu3 %vm299_vm1, %v288_v1  ;;  %v290_v32 = vmax.f32 %v226_v30, 0.0 }
  0x54   :  { %v291_v42 = vmax.f32 %v227_v40, 0.0 }
  0x55   :  { %1126 = vmatmul.msk.f32.gmra.mxu0 %vm299_vm1, %v243_v54  ;;  %v76_v54 = vld [vmem:[%s2336_s0 + $0x150] sm:$0xff] }
  0x57   :  { %1142 = vmatmul.msk.f32.gmra.mxu1 %vm299_vm1, %v259_v58  ;;  %v144_v58 = vmul.f32 %v1258_v2, %v76_v54 }
  0x59   :  { %v212_v61 = vadd.f32 %v1263_v3, %v144_v58  ;;  %v280_v58 = vmax.f32 %v216_v53, 0.0 }
  0x5b   :  { %1158 = vmatmul.msk.f32.gmra.mxu2 %vm299_vm1, %v275_v49  ;;  %v276_v0 = vmax.f32 %v212_v61, 0.0  ;;  %1172 = vmatmul.msk.f32.gmra.mxu3 %vm299_vm1, %v289_v19  ;;  %v81_v61 = vld [vmem:[%s2336_s0 + $0x178] sm:$0xff] }
  0x5c   :  { %v149_v63 = vmul.f32 %v1258_v2, %v81_v61 }
  0x5d   :  { %1127 = vmatmul.msk.f32.gmra.mxu0 %vm299_vm1, %v244_v5  ;;  %v64_v5 = vld [vmem:[%s2336_s0 + $0xf0] sm:$0xff] }
  0x5e   :  { %v132_v6 = vmul.f32 %v1258_v2, %v64_v5 }
  0x5f   :  { %1143 = vmatmul.msk.f32.gmra.mxu1 %vm299_vm1, %v260_v12  ;;  %v145_v12 = vmul.f32 %v1258_v2, %v77_v8 }
  0x60   :  { %v200_v11 = vadd.f32 %v1263_v3, %v132_v6 }
  0x61   :  { %v213_v15 = vadd.f32 %v1263_v3, %v145_v12 }
  0x62   :  { %v264_v14 = vmax.f32 %v200_v11, 0.0 }
  0x63   :  { %1159 = vmatmul.msk.f32.gmra.mxu2 %vm299_vm1, %v276_v0  ;;  %v277_v18 = vmax.f32 %v213_v15, 0.0  ;;  %1173 = vmatmul.msk.f32.gmra.mxu3 %vm299_vm1, %v290_v32  ;;  %v161_v0 = vmul.f32 %v1258_v2, %v93_v62 }
  0x65   :  { %1128 = vmatmul.msk.f32.gmra.mxu0 %vm299_vm1, %v245_v24  ;;  %v249_v24 = vmax.f32 %v185_v17, 0.0  ;;  %v229_v8 = vadd.f32 %v1263_v3, %v161_v0 }
  0x67   :  { %1144 = vmatmul.msk.f32.gmra.mxu1 %vm299_vm1, %v261_v28  ;;  %v265_v28 = vmax.f32 %v201_v25, 0.0  ;;  %v293_v12 = vmax.f32 %v229_v8, 0.0  ;;  %v95_v25 = vld [vmem:[%s2336_s0 + $0x1e8] sm:$0xff] }
  0x68   :  { %v163_v26 = vmul.f32 %v1258_v2, %v95_v25 }
  0x6a   :  { %v231_v33 = vadd.f32 %v1263_v3, %v163_v26 }
  0x6b   :  { %1160 = vmatmul.msk.f32.gmra.mxu2 %vm299_vm1, %v277_v18  ;;  %1174 = vmatmul.msk.f32.gmra.mxu3 %vm299_vm1, %v291_v42 }
  0x6c   :  { %v295_v36 = vmax.f32 %v231_v33, 0.0 }
  0x6d   :  { %1129 = vmatmul.msk.f32.gmra.mxu0 %vm299_vm1, %v246_v37 }
  0x6f   :  { %1145 = vmatmul.msk.f32.gmra.mxu1 %vm299_vm1, %v262_v44  ;;  %v92_v44 = vld [vmem:[%s2336_s0 + $0x1d0] sm:$0xff] }
  0x70   :  { %v160_v47 = vmul.f32 %v1258_v2, %v92_v44 }
  0x72   :  { %v228_v54 = vadd.f32 %v1263_v3, %v160_v47 }
  0x73   :  { %1161 = vmatmul.msk.f32.gmra.mxu2 %vm299_vm1, %v278_v31 }
  0x74   :  { %v292_v59 = vmax.f32 %v228_v54, 0.0 }
  0x75   :  { %1130 = vmatmul.msk.f32.gmra.mxu0 %vm299_vm1, %v247_v56 }
  0x76   :  { %1175 = vmatmul.msk.f32.gmra.mxu3 %vm299_vm1, %v292_v59 }
  0x77   :  { %1146 = vmatmul.msk.f32.gmra.mxu1 %vm299_vm1, %v263_v60 }
  0x7b   :  { %1162 = vmatmul.msk.f32.gmra.mxu2 %vm299_vm1, %v279_v41 }
  0x7d   :  { %1131 = vmatmul.msk.f32.gmra.mxu0 %vm299_vm1, %v248_v7  ;;  %v217_v7 = vadd.f32 %v1263_v3, %v149_v63 }
  0x7e   :  { %1176 = vmatmul.msk.f32.gmra.mxu3 %vm299_vm1, %v293_v12 }
  0x7f   :  { %1147 = vmatmul.msk.f32.gmra.mxu1 %vm299_vm1, %v264_v14  ;;  %v281_v11 = vmax.f32 %v217_v7, 0.0  ;;  %v94_v14 = vld [vmem:[%s2336_s0 + $0x1e0] sm:$0xff] }
  0x80   :  { %v162_v15 = vmul.f32 %v1258_v2, %v94_v14 }
  0x82   :  { %v230_v20 = vadd.f32 %v1263_v3, %v162_v15 }
  0x83   :  { %1163 = vmatmul.msk.f32.gmra.mxu2 %vm299_vm1, %v280_v58 }
  0x84   :  { %v294_v23 = vmax.f32 %v230_v20, 0.0 }
  0x85   :  { %1132 = vmatmul.msk.f32.gmra.mxu0 %vm299_vm1, %v249_v24 }
  0x86   :  { %1177 = vmatmul.msk.f32.gmra.mxu3 %vm299_vm1, %v294_v23 }
  0x87   :  { %1148 = vmatmul.msk.f32.gmra.mxu1 %vm299_vm1, %v265_v28 }
  0x8a   :  { %v513_v37 = vpop.f32.mrf.mxu0 }
  0x8b   :  { %706 = vst.msk [vmem:[%s2340_s4] sm:$0xff] %vm705_vm2, %v513_v37  ;;  %v905_v45 = vmul.f32 %v513_v37, %v513_v37  ;;  %v770_v48 = vsel %vm705_vm2, %v513_v37, 0.0  ;;  %1164 = vmatmul.msk.f32.gmra.mxu2 %vm299_vm1, %v281_v11  ;;  %v96_v37 = vld [vmem:[%s2336_s0 + $0x1f0] sm:$0xff] }
  0x8c   :  { %v1598_v38 = vpop.f32.mrf.mxu1  ;;  %v164_v39 = vmul.f32 %v1258_v2, %v96_v37 }
  0x8d   :  { %722 = vst.msk [vmem:[%s2340_s4 + $0x80] sm:$0xff] %vm705_vm2, %v1598_v38  ;;  %v969_v56 = vsel %vm705_vm2, %v905_v45, 0.0  ;;  %v97_v45 = vld [vmem:[%s2336_s0 + $0x1f8] sm:$0xff] }
  0x8e   :  { %1178 = vmatmul.msk.f32.gmra.mxu3 %vm299_vm1, %v295_v36  ;;  %v232_v43 = vadd.f32 %v1263_v3, %v164_v39  ;;  %v165_v46 = vmul.f32 %v1258_v2, %v97_v45 }
  0x90   :  { %v296_v44 = vmax.f32 %v232_v43, 0.0 }
  0x92   :  { %v516_v49 = vpop.f32.mrf.mxu0 }
  0x93   :  { %707 = vst.msk [vmem:[%s2340_s4 + $0x8] sm:$0xff] %vm705_vm2, %v516_v49  ;;  %v771_v50 = vsel %vm705_vm2, %v516_v49, 0.0  ;;  %v906_v51 = vmul.f32 %v516_v49, %v516_v49 }
  0x94   :  { %v1623_v52 = vpop.f32.mrf.mxu1  ;;  %v772_v55 = vadd.f32 %v771_v50, %v770_v48  ;;  %v233_v50 = vadd.f32 %v1263_v3, %v165_v46 }
  0x95   :  { %723 = vst.msk [vmem:[%s2340_s4 + $0x88] sm:$0xff] %vm705_vm2, %v1623_v52  ;;  %v970_v57 = vsel %vm705_vm2, %v906_v51, 0.0 }
  0x96   :  { %v971_v60 = vadd.f32 %v970_v57, %v969_v56  ;;  %v1684_v28 = vpop.f32.mrf.mxu2  ;;  %1179 = vmatmul.msk.f32.gmra.mxu3 %vm299_vm1, %v296_v44  ;;  %v297_v2 = vmax.f32 %v233_v50, 0.0 }
  0x97   :  { %738 = vst.msk [vmem:[%s2340_s4 + $0x100] sm:$0xff] %vm705_vm2, %v1684_v28 }
  0x9a   :  { %v519_v1 = vpop.f32.mrf.mxu0 }
  0x9b   :  { %708 = vst.msk [vmem:[%s2340_s4 + $0x10] sm:$0xff] %vm705_vm2, %v519_v1  ;;  %v773_v4 = vsel %vm705_vm2, %v519_v1, 0.0  ;;  %v907_v5 = vmul.f32 %v519_v1, %v519_v1 }
  0x9c   :  { %v1649_v6 = vpop.f32.mrf.mxu1  ;;  %v774_v9 = vadd.f32 %v773_v4, %v772_v55 }
  0x9d   :  { %724 = vst.msk [vmem:[%s2340_s4 + $0x90] sm:$0xff] %vm705_vm2, %v1649_v6  ;;  %v972_v10 = vsel %vm705_vm2, %v907_v5, 0.0 }
  0x9e   :  { %v973_v13 = vadd.f32 %v972_v10, %v971_v60  ;;  %v1716_v41 = vpop.f32.mrf.mxu2  ;;  %1180 = vmatmul.msk.f32.gmra.mxu3 %vm299_vm1, %v297_v2 }
  0x9f   :  { %739 = vst.msk [vmem:[%s2340_s4 + $0x108] sm:$0xff] %vm705_vm2, %v1716_v41 }
  0xa2   :  { %v522_v16 = vpop.f32.mrf.mxu0 }
  0xa3   :  { %709 = vst.msk [vmem:[%s2340_s4 + $0x18] sm:$0xff] %vm705_vm2, %v522_v16  ;;  %v775_v17 = vsel %vm705_vm2, %v522_v16, 0.0  ;;  %v908_v18 = vmul.f32 %v522_v16, %v522_v16 }
  0xa4   :  { %v1670_v19 = vpop.f32.mrf.mxu1  ;;  %v776_v21 = vadd.f32 %v775_v17, %v774_v9 }
  0xa5   :  { %725 = vst.msk [vmem:[%s2340_s4 + $0x98] sm:$0xff] %vm705_vm2, %v1670_v19  ;;  %v974_v22 = vsel %vm705_vm2, %v908_v18, 0.0 }
  0xa6   :  { %v975_v24 = vadd.f32 %v974_v22, %v973_v13  ;;  %v1741_v48 = vpop.f32.mrf.mxu2  ;;  %v1787_v57 = vpop.f32.mrf.mxu3 }
  0xa7   :  { %740 = vst.msk [vmem:[%s2340_s4 + $0x110] sm:$0xff] %vm705_vm2, %v1741_v48 }
  0xa8   :  { %754 = vst.msk [vmem:[%s2340_s4 + $0x180] sm:$0xff] %vm705_vm2, %v1787_v57 }
  0xaa   :  { %v525_v27 = vpop.f32.mrf.mxu0 }
  0xab   :  { %710 = vst.msk [vmem:[%s2340_s4 + $0x20] sm:$0xff] %vm705_vm2, %v525_v27  ;;  %v777_v29 = vsel %vm705_vm2, %v525_v27, 0.0  ;;  %v909_v30 = vmul.f32 %v525_v27, %v525_v27 }
  0xac   :  { %v1691_v31 = vpop.f32.mrf.mxu1  ;;  %v1693_v32 = vadd.f32 %v777_v29, %v776_v21 }
  0xad   :  { %726 = vst.msk [vmem:[%s2340_s4 + $0xa0] sm:$0xff] %vm705_vm2, %v1691_v31  ;;  %v976_v34 = vsel %vm705_vm2, %v909_v30, 0.0 }
  0xae   :  { %v1707_v35 = vadd.f32 %v976_v34, %v975_v24  ;;  %v1761_v53 = vpop.f32.mrf.mxu2  ;;  %v1812_v61 = vpop.f32.mrf.mxu3 }
  0xaf   :  { %741 = vst.msk [vmem:[%s2340_s4 + $0x118] sm:$0xff] %vm705_vm2, %v1761_v53 }
  0xb0   :  { %755 = vst.msk [vmem:[%s2340_s4 + $0x188] sm:$0xff] %vm705_vm2, %v1812_v61 }
  0xb2   :  { %v1714_v40 = vpop.f32.mrf.mxu0 }
  0xb3   :  { %711 = vst.msk [vmem:[%s2340_s4 + $0x28] sm:$0xff] %vm705_vm2, %v1714_v40  ;;  %v910_v11 = vmul.f32 %v1714_v40, %v1714_v40  ;;  %v779_v14 = vsel %vm705_vm2, %v1714_v40, 0.0 }
  0xb4   :  { %v1723_v42 = vpop.f32.mrf.mxu1  ;;  %v780_v20 = vadd.f32 %v779_v14, %v1693_v32 }
  0xb5   :  { %727 = vst.msk [vmem:[%s2340_s4 + $0xa8] sm:$0xff] %vm705_vm2, %v1723_v42  ;;  %v978_v16 = vsel %vm705_vm2, %v910_v11, 0.0 }
  0xb6   :  { %v1779_v55 = vpop.f32.mrf.mxu2  ;;  %v1837_v1 = vpop.f32.mrf.mxu3  ;;  %v979_v24 = vadd.f32 %v978_v16, %v1707_v35 }
  0xb7   :  { %742 = vst.msk [vmem:[%s2340_s4 + $0x120] sm:$0xff] %vm705_vm2, %v1779_v55 }
  0xb8   :  { %756 = vst.msk [vmem:[%s2340_s4 + $0x190] sm:$0xff] %vm705_vm2, %v1837_v1 }
  0xba   :  { %v531_v47 = vpop.f32.mrf.mxu0 }
  0xbb   :  { %712 = vst.msk [vmem:[%s2340_s4 + $0x30] sm:$0xff] %vm705_vm2, %v531_v47  ;;  %v911_v15 = vmul.f32 %v531_v47, %v531_v47  ;;  %v781_v17 = vsel %vm705_vm2, %v531_v47, 0.0 }
  0xbc   :  { %v1747_v49 = vpop.f32.mrf.mxu1  ;;  %v782_v25 = vadd.f32 %v781_v17, %v780_v20 }
  0xbd   :  { %728 = vst.msk [vmem:[%s2340_s4 + $0xb0] sm:$0xff] %vm705_vm2, %v1747_v49  ;;  %v980_v21 = vsel %vm705_vm2, %v911_v15, 0.0 }
  0xbe   :  { %v1804_v59 = vpop.f32.mrf.mxu2  ;;  %v1862_v8 = vpop.f32.mrf.mxu3  ;;  %v981_v36 = vadd.f32 %v980_v21, %v979_v24 }
  0xbf   :  { %743 = vst.msk [vmem:[%s2340_s4 + $0x128] sm:$0xff] %vm705_vm2, %v1804_v59 }
  0xc0   :  { %757 = vst.msk [vmem:[%s2340_s4 + $0x198] sm:$0xff] %vm705_vm2, %v1862_v8 }
  0xc2   :  { %v534_v51 = vpop.f32.mrf.mxu0 }
  0xc3   :  { %713 = vst.msk [vmem:[%s2340_s4 + $0x38] sm:$0xff] %vm705_vm2, %v534_v51  ;;  %v912_v18 = vmul.f32 %v534_v51, %v534_v51  ;;  %v783_v22 = vsel %vm705_vm2, %v534_v51, 0.0 }
  0xc4   :  { %v1767_v54 = vpop.f32.mrf.mxu1  ;;  %v784_v35 = vadd.f32 %v783_v22, %v782_v25 }
  0xc5   :  { %729 = vst.msk [vmem:[%s2340_s4 + $0xb8] sm:$0xff] %vm705_vm2, %v1767_v54  ;;  %v982_v29 = vsel %vm705_vm2, %v912_v18, 0.0 }
  0xc6   :  { %v1829_v63 = vpop.f32.mrf.mxu2  ;;  %v1889_v13 = vpop.f32.mrf.mxu3  ;;  %v983_v43 = vadd.f32 %v982_v29, %v981_v36 }
  0xc7   :  { %744 = vst.msk [vmem:[%s2340_s4 + $0x130] sm:$0xff] %vm705_vm2, %v1829_v63 }
  0xc8   :  { %758 = vst.msk [vmem:[%s2340_s4 + $0x1a0] sm:$0xff] %vm705_vm2, %v1889_v13 }
  0xca   :  { %v537_v3 = vpop.f32.mrf.mxu0 }
  0xcb   :  { %714 = vst.msk [vmem:[%s2340_s4 + $0x40] sm:$0xff] %vm705_vm2, %v537_v3  ;;  %v913_v23 = vmul.f32 %v537_v3, %v537_v3  ;;  %v785_v30 = vsel %vm705_vm2, %v537_v3, 0.0 }
  0xcc   :  { %v1785_v56 = vpop.f32.mrf.mxu1  ;;  %v786_v44 = vadd.f32 %v785_v30, %v784_v35 }
  0xcd   :  { %730 = vst.msk [vmem:[%s2340_s4 + $0xc0] sm:$0xff] %vm705_vm2, %v1785_v56  ;;  %v984_v37 = vsel %vm705_vm2, %v913_v23, 0.0 }
  0xce   :  { %v1854_v5 = vpop.f32.mrf.mxu2  ;;  %v1924_v34 = vpop.f32.mrf.mxu3  ;;  %v985_v50 = vadd.f32 %v984_v37, %v983_v43 }
  0xcf   :  { %745 = vst.msk [vmem:[%s2340_s4 + $0x138] sm:$0xff] %vm705_vm2, %v1854_v5 }
  0xd0   :  { %759 = vst.msk [vmem:[%s2340_s4 + $0x1a8] sm:$0xff] %vm705_vm2, %v1924_v34 }
  0xd2   :  { %v540_v58 = vpop.f32.mrf.mxu0 }
  0xd3   :  { %715 = vst.msk [vmem:[%s2340_s4 + $0x48] sm:$0xff] %vm705_vm2, %v540_v58  ;;  %v914_v33 = vmul.f32 %v540_v58, %v540_v58  ;;  %v787_v39 = vsel %vm705_vm2, %v540_v58, 0.0 }
  0xd4   :  { %v1810_v60 = vpop.f32.mrf.mxu1  ;;  %v788_v2 = vadd.f32 %v787_v39, %v786_v44  ;;  %v921_v44 = vmul.f32 %v1598_v38, %v1598_v38 }
  0xd5   :  { %731 = vst.msk [vmem:[%s2340_s4 + $0xc8] sm:$0xff] %vm705_vm2, %v1810_v60  ;;  %v986_v45 = vsel %vm705_vm2, %v914_v33, 0.0 }
  0xd6   :  { %v1879_v10 = vpop.f32.mrf.mxu2  ;;  %v987_v11 = vadd.f32 %v986_v45, %v985_v50  ;;  %v1957_v21 = vpop.f32.mrf.mxu3 }
  0xd7   :  { %746 = vst.msk [vmem:[%s2340_s4 + $0x140] sm:$0xff] %vm705_vm2, %v1879_v10 }
  0xd8   :  { %760 = vst.msk [vmem:[%s2340_s4 + $0x1b0] sm:$0xff] %vm705_vm2, %v1957_v21 }
  0xda   :  { %v543_v62 = vpop.f32.mrf.mxu0 }
  0xdb   :  { %716 = vst.msk [vmem:[%s2340_s4 + $0x50] sm:$0xff] %vm705_vm2, %v543_v62  ;;  %v915_v40 = vmul.f32 %v543_v62, %v543_v62  ;;  %v789_v46 = vsel %vm705_vm2, %v543_v62, 0.0 }
  0xdc   :  { %v1835_v0 = vpop.f32.mrf.mxu1  ;;  %v790_v14 = vadd.f32 %v789_v46, %v788_v2 }
  0xdd   :  { %732 = vst.msk [vmem:[%s2340_s4 + $0xd0] sm:$0xff] %vm705_vm2, %v1835_v0  ;;  %v988_v51 = vsel %vm705_vm2, %v915_v40, 0.0 }
  0xde   :  { %v1914_v27 = vpop.f32.mrf.mxu2  ;;  %v1990_v50 = vpop.f32.mrf.mxu3 }
  0xdf   :  { %747 = vst.msk [vmem:[%s2340_s4 + $0x148] sm:$0xff] %vm705_vm2, %v1914_v27 }
  0xe0   :  { %761 = vst.msk [vmem:[%s2340_s4 + $0x1b8] sm:$0xff] %vm705_vm2, %v1990_v50 }
  0xe2   :  { %v546_v4 = vpop.f32.mrf.mxu0 }
  0xe3   :  { %717 = vst.msk [vmem:[%s2340_s4 + $0x58] sm:$0xff] %vm705_vm2, %v546_v4  ;;  %v916_v47 = vmul.f32 %v546_v4, %v546_v4  ;;  %v791_v3 = vsel %vm705_vm2, %v546_v4, 0.0  ;;  %v989_v4 = vadd.f32 %v988_v51, %v987_v11 }
  0xe4   :  { %v1860_v7 = vpop.f32.mrf.mxu1  ;;  %v792_v22 = vadd.f32 %v791_v3, %v790_v14  ;;  %v801_v3 = vsel %vm705_vm2, %v1598_v38, 0.0  ;;  %v1000_v38 = vsel %vm705_vm2, %v921_v44, 0.0 }
  0xe5   :  { %733 = vst.msk [vmem:[%s2340_s4 + $0xd8] sm:$0xff] %vm705_vm2, %v1860_v7  ;;  %v990_v17 = vsel %vm705_vm2, %v916_v47, 0.0 }
  0xe6   :  { %v1947_v16 = vpop.f32.mrf.mxu2  ;;  %v991_v25 = vadd.f32 %v990_v17, %v989_v4  ;;  %v803_v17 = vsel %vm705_vm2, %v1623_v52, 0.0 }
  0xe7   :  { %748 = vst.msk [vmem:[%s2340_s4 + $0x150] sm:$0xff] %vm705_vm2, %v1947_v16 }
  0xea   :  { %v549_v9 = vpop.f32.mrf.mxu0 }
  0xeb   :  { %718 = vst.msk [vmem:[%s2340_s4 + $0x60] sm:$0xff] %vm705_vm2, %v549_v9  ;;  %v917_v58 = vmul.f32 %v549_v9, %v549_v9  ;;  %v793_v18 = vsel %vm705_vm2, %v549_v9, 0.0 }
  0xec   :  { %v1887_v12 = vpop.f32.mrf.mxu1  ;;  %v794_v29 = vadd.f32 %v793_v18, %v792_v22  ;;  %v923_v18 = vmul.f32 %v1649_v6, %v1649_v6 }
  0xed   :  { %734 = vst.msk [vmem:[%s2340_s4 + $0xe0] sm:$0xff] %vm705_vm2, %v1887_v12  ;;  %v992_v9 = vsel %vm705_vm2, %v917_v58, 0.0  ;;  %v922_v58 = vmul.f32 %v1623_v52, %v1623_v52  ;;  %v807_v52 = vsel %vm705_vm2, %v1670_v19, 0.0 }
  0xee   :  { %v1979_v43 = vpop.f32.mrf.mxu2 }
  0xef   :  { %749 = vst.msk [vmem:[%s2340_s4 + $0x158] sm:$0xff] %vm705_vm2, %v1979_v43  ;;  %v1002_v22 = vsel %vm705_vm2, %v922_v58, 0.0  ;;  %v928_v58 = vmul.f32 %v1767_v54, %v1767_v54 }
  0xf2   :  { %v552_v26 = vpop.f32.mrf.mxu0 }
  0xf3   :  { %719 = vst.msk [vmem:[%s2340_s4 + $0x68] sm:$0xff] %vm705_vm2, %v552_v26  ;;  %v918_v20 = vmul.f32 %v552_v26, %v552_v26  ;;  %v795_v23 = vsel %vm705_vm2, %v552_v26, 0.0  ;;  %v993_v26 = vadd.f32 %v992_v9, %v991_v25  ;;  %v805_v9 = vsel %vm705_vm2, %v1649_v6, 0.0  ;;  %v2034_v6 = vpop.f32.mrf.mxu3 }
  0xf4   :  { %v1922_v32 = vpop.f32.mrf.mxu1  ;;  %v796_v36 = vadd.f32 %v795_v23, %v794_v29  ;;  %v924_v23 = vmul.f32 %v1670_v19, %v1670_v19  ;;  %762 = vst.msk [vmem:[%s2340_s4 + $0x1c0] sm:$0xff] %vm705_vm2, %v2034_v6 }
  0xf5   :  { %735 = vst.msk [vmem:[%s2340_s4 + $0xe8] sm:$0xff] %vm705_vm2, %v1922_v32  ;;  %v994_v30 = vsel %vm705_vm2, %v918_v20, 0.0 }
  0xf6   :  { %v995_v37 = vadd.f32 %v994_v30, %v993_v26  ;;  %v2022_v29 = vpop.f32.mrf.mxu2  ;;  %v1004_v30 = vsel %vm705_vm2, %v923_v18, 0.0  ;;  %v1006_v19 = vsel %vm705_vm2, %v924_v23, 0.0 }
  0xf7   :  { %750 = vst.msk [vmem:[%s2340_s4 + $0x160] sm:$0xff] %vm705_vm2, %v2022_v29 }
  0xfa   :  { %v555_v15 = vpop.f32.mrf.mxu0 }
  0xfb   :  { %720 = vst.msk [vmem:[%s2340_s4 + $0x70] sm:$0xff] %vm705_vm2, %v555_v15  ;;  %v919_v24 = vmul.f32 %v555_v15, %v555_v15  ;;  %v797_v33 = vsel %vm705_vm2, %v555_v15, 0.0 }
  0xfc   :  { %v1955_v62 = vpop.f32.mrf.mxu1  ;;  %v798_v39 = vadd.f32 %v797_v33, %v796_v36  ;;  %v925_v33 = vmul.f32 %v1691_v31, %v1691_v31 }
  0xfd   :  { %736 = vst.msk [vmem:[%s2340_s4 + $0xf0] sm:$0xff] %vm705_vm2, %v1955_v62  ;;  %v996_v35 = vsel %vm705_vm2, %v919_v24, 0.0 }
  0xfe   :  { %v997_v2 = vadd.f32 %v996_v35, %v995_v37  ;;  %v809_v35 = vsel %vm705_vm2, %v1691_v31, 0.0  ;;  %v926_v37 = vmul.f32 %v1723_v42, %v1723_v42  ;;  %v1008_v44 = vsel %vm705_vm2, %v925_v33, 0.0 }
  0xff   :  { %v813_v31 = vsel %vm705_vm2, %v1747_v49, 0.0 }
 0x102   :  { %v558_v40 = vpop.f32.mrf.mxu0 }
 0x103   :  { %721 = vst.msk [vmem:[%s2340_s4 + $0x78] sm:$0xff] %vm705_vm2, %v558_v40  ;;  %v799_v45 = vsel %vm705_vm2, %v558_v40, 0.0  ;;  %v920_v46 = vmul.f32 %v558_v40, %v558_v40 }
 0x104   :  { %v1988_v47 = vpop.f32.mrf.mxu1  ;;  %v800_v51 = vadd.f32 %v799_v45, %v798_v39  ;;  %v811_v45 = vsel %vm705_vm2, %v1723_v42, 0.0  ;;  %v815_v42 = vsel %vm705_vm2, %v1767_v54, 0.0  ;;  %v1014_v54 = vsel %vm705_vm2, %v928_v58, 0.0 }
 0x105   :  { %737 = vst.msk [vmem:[%s2340_s4 + $0xf8] sm:$0xff] %vm705_vm2, %v1988_v47  ;;  %v998_v11 = vsel %vm705_vm2, %v920_v46, 0.0  ;;  %v927_v46 = vmul.f32 %v1747_v49, %v1747_v49  ;;  %v2068_v49 = vpop.f32.mrf.mxu3  ;;  %v827_v58 = vsel %vm705_vm2, %v1922_v32, 0.0 }
 0x106   :  { %v802_v14 = vadd.f32 %v801_v3, %v800_v51  ;;  %v999_v15 = vadd.f32 %v998_v11, %v997_v2  ;;  %v1010_v3 = vsel %vm705_vm2, %v926_v37, 0.0  ;;  %763 = vst.msk [vmem:[%s2340_s4 + $0x1c8] sm:$0xff] %vm705_vm2, %v2068_v49 }
 0x108   :  { %v804_v20 = vadd.f32 %v803_v17, %v802_v14  ;;  %v1001_v4 = vadd.f32 %v1000_v38, %v999_v15  ;;  %v2056_v15 = vpop.f32.mrf.mxu2  ;;  %v1012_v38 = vsel %vm705_vm2, %v927_v46, 0.0  ;;  %v929_v17 = vmul.f32 %v1785_v56, %v1785_v56 }
 0x109   :  { %751 = vst.msk [vmem:[%s2340_s4 + $0x168] sm:$0xff] %vm705_vm2, %v2056_v15  ;;  %v825_v46 = vsel %vm705_vm2, %v1887_v12, 0.0 }
 0x10a   :  { %v806_v24 = vadd.f32 %v805_v9, %v804_v20  ;;  %v1003_v25 = vadd.f32 %v1002_v22, %v1001_v4  ;;  %v817_v4 = vsel %vm705_vm2, %v1785_v56, 0.0  ;;  %v930_v22 = vmul.f32 %v1810_v60, %v1810_v60 }
 0x10b   :  { %v821_v56 = vsel %vm705_vm2, %v1835_v0, 0.0 }
 0x10c   :  { %v808_v26 = vadd.f32 %v807_v52, %v806_v24  ;;  %v1005_v36 = vadd.f32 %v1004_v30, %v1003_v25  ;;  %v1016_v24 = vsel %vm705_vm2, %v929_v17, 0.0  ;;  %v819_v25 = vsel %vm705_vm2, %v1810_v60, 0.0 }
 0x10d   :  { %v931_v30 = vmul.f32 %v1835_v0, %v1835_v0  ;;  %v823_v60 = vsel %vm705_vm2, %v1860_v7, 0.0  ;;  %v2102_v0 = vpop.f32.mrf.mxu3  ;;  %v829_v17 = vsel %vm705_vm2, %v1955_v62, 0.0 }
 0x10e   :  { %v810_v39 = vadd.f32 %v809_v35, %v808_v26  ;;  %v1007_v40 = vadd.f32 %v1006_v19, %v1005_v36  ;;  %v1018_v26 = vsel %vm705_vm2, %v930_v22, 0.0  ;;  %v932_v36 = vmul.f32 %v1860_v7, %v1860_v7  ;;  %764 = vst.msk [vmem:[%s2340_s4 + $0x1d0] sm:$0xff] %vm705_vm2, %v2102_v0 }
 0x110   :  { %v812_v2 = vadd.f32 %v811_v45, %v810_v39  ;;  %v1009_v51 = vadd.f32 %v1008_v44, %v1007_v40  ;;  %v2090_v37 = vpop.f32.mrf.mxu2  ;;  %v1020_v39 = vsel %vm705_vm2, %v931_v30, 0.0  ;;  %v933_v40 = vmul.f32 %v1887_v12, %v1887_v12 }
 0x111   :  { %752 = vst.msk [vmem:[%s2340_s4 + $0x170] sm:$0xff] %vm705_vm2, %v2090_v37  ;;  %v1022_v7 = vsel %vm705_vm2, %v932_v36, 0.0 }
 0x112   :  { %v1011_v11 = vadd.f32 %v1010_v3, %v1009_v51  ;;  %v814_v14 = vadd.f32 %v813_v31, %v812_v2  ;;  %v934_v2 = vmul.f32 %v1922_v32, %v1922_v32  ;;  %v1024_v31 = vsel %vm705_vm2, %v933_v40, 0.0 }
 0x113   :  { %v937_v32 = vmul.f32 %v1684_v28, %v1684_v28 }
 0x114   :  { %v816_v18 = vadd.f32 %v815_v42, %v814_v14  ;;  %v1013_v20 = vadd.f32 %v1012_v38, %v1011_v11  ;;  %v935_v11 = vmul.f32 %v1955_v62, %v1955_v62  ;;  %v936_v14 = vmul.f32 %v1988_v47, %v1988_v47 }
 0x115   :  { %v1026_v12 = vsel %vm705_vm2, %v934_v2, 0.0  ;;  %v2137_v62 = vpop.f32.mrf.mxu3 }
 0x116   :  { %v818_v9 = vadd.f32 %v817_v4, %v816_v18  ;;  %v1015_v23 = vadd.f32 %v1014_v54, %v1013_v20  ;;  %v831_v18 = vsel %vm705_vm2, %v1988_v47, 0.0  ;;  %v1028_v22 = vsel %vm705_vm2, %v935_v11, 0.0  ;;  %765 = vst.msk [vmem:[%s2340_s4 + $0x1d8] sm:$0xff] %vm705_vm2, %v2137_v62 }
 0x117   :  { %v843_v11 = vsel %vm705_vm2, %v1804_v59, 0.0 }
 0x118   :  { %v820_v52 = vadd.f32 %v819_v25, %v818_v9  ;;  %v1017_v33 = vadd.f32 %v1016_v24, %v1015_v23  ;;  %v2126_v4 = vpop.f32.mrf.mxu2  ;;  %v1030_v9 = vsel %vm705_vm2, %v936_v14, 0.0  ;;  %v833_v24 = vsel %vm705_vm2, %v1684_v28, 0.0 }
 0x119   :  { %753 = vst.msk [vmem:[%s2340_s4 + $0x178] sm:$0xff] %vm705_vm2, %v2126_v4  ;;  %v938_v25 = vmul.f32 %v1716_v41, %v1716_v41  ;;  %v837_v28 = vsel %vm705_vm2, %v1741_v48, 0.0  ;;  %v943_v14 = vmul.f32 %v1829_v63, %v1829_v63 }
 0x11a   :  { %v822_v19 = vadd.f32 %v821_v56, %v820_v52  ;;  %v1019_v35 = vadd.f32 %v1018_v26, %v1017_v33  ;;  %v1032_v33 = vsel %vm705_vm2, %v937_v32, 0.0  ;;  %v835_v26 = vsel %vm705_vm2, %v1716_v41, 0.0 }
 0x11b   :  { %v939_v56 = vmul.f32 %v1741_v48, %v1741_v48  ;;  %v839_v41 = vsel %vm705_vm2, %v1761_v53, 0.0  ;;  %v945_v32 = vmul.f32 %v1879_v10, %v1879_v10 }
 0x11c   :  { %v824_v44 = vadd.f32 %v823_v60, %v822_v19  ;;  %v1021_v45 = vadd.f32 %v1020_v39, %v1019_v35  ;;  %v1034_v35 = vsel %vm705_vm2, %v938_v25, 0.0  ;;  %v940_v39 = vmul.f32 %v1761_v53, %v1761_v53 }
 0x11d   :  { %v942_v53 = vmul.f32 %v1804_v59, %v1804_v59  ;;  %v847_v59 = vsel %vm705_vm2, %v1854_v5, 0.0 }
 0x11e   :  { %v1023_v51 = vadd.f32 %v1022_v7, %v1021_v45  ;;  %v826_v3 = vadd.f32 %v825_v46, %v824_v44  ;;  %v1036_v44 = vsel %vm705_vm2, %v939_v56, 0.0  ;;  %v941_v45 = vmul.f32 %v1779_v55, %v1779_v55  ;;  %v2163_v7 = vpop.f32.mrf.mxu3 }
 0x11f   :  { %766 = vst.msk [vmem:[%s2340_s4 + $0x1e0] sm:$0xff] %vm705_vm2, %v2163_v7  ;;  %v1038_v48 = vsel %vm705_vm2, %v940_v39, 0.0 }
 0x120   :  { %v1025_v38 = vadd.f32 %v1024_v31, %v1023_v51  ;;  %v828_v42 = vadd.f32 %v827_v58, %v826_v3  ;;  %v841_v51 = vsel %vm705_vm2, %v1779_v55, 0.0  ;;  %v1040_v58 = vsel %vm705_vm2, %v941_v45, 0.0 }
 0x121   :  { %v845_v55 = vsel %vm705_vm2, %v1829_v63, 0.0  ;;  %v857_v45 = vsel %vm705_vm2, %v2022_v29, 0.0 }
 0x122   :  { %v1027_v20 = vadd.f32 %v1026_v12, %v1025_v38  ;;  %v830_v54 = vadd.f32 %v829_v17, %v828_v42  ;;  %v1042_v12 = vsel %vm705_vm2, %v942_v53, 0.0  ;;  %v944_v17 = vmul.f32 %v1854_v5, %v1854_v5 }
 0x123   :  { %v946_v5 = vmul.f32 %v1914_v27, %v1914_v27  ;;  %v951_v53 = vmul.f32 %v2090_v37, %v2090_v37 }
 0x124   :  { %v1029_v47 = vadd.f32 %v1028_v22, %v1027_v20  ;;  %v832_v23 = vadd.f32 %v831_v18, %v830_v54  ;;  %v1044_v54 = vsel %vm705_vm2, %v943_v14, 0.0  ;;  %v1046_v63 = vsel %vm705_vm2, %v944_v17, 0.0 }
 0x125   :  { %v863_v14 = vsel %vm705_vm2, %v2126_v4, 0.0 }
 0x126   :  { %v834_v30 = vadd.f32 %v833_v24, %v832_v23  ;;  %v1031_v52 = vadd.f32 %v1030_v9, %v1029_v47  ;;  %v2190_v22 = vpop.f32.mrf.mxu3  ;;  %v849_v23 = vsel %vm705_vm2, %v1879_v10, 0.0  ;;  %v853_v10 = vsel %vm705_vm2, %v1947_v16, 0.0 }
 0x127   :  { %767 = vst.msk [vmem:[%s2340_s4 + $0x1e8] sm:$0xff] %vm705_vm2, %v2190_v22 }
 0x128   :  { %v836_v36 = vadd.f32 %v835_v26, %v834_v30  ;;  %v1033_v19 = vadd.f32 %v1032_v33, %v1031_v52  ;;  %v1048_v30 = vsel %vm705_vm2, %v945_v32, 0.0  ;;  %v851_v52 = vsel %vm705_vm2, %v1914_v27, 0.0 }
 0x129   :  { %v947_v33 = vmul.f32 %v1947_v16, %v1947_v16  ;;  %v855_v27 = vsel %vm705_vm2, %v1979_v43, 0.0 }
 0x12a   :  { %v838_v60 = vadd.f32 %v837_v28, %v836_v36  ;;  %v1035_v40 = vadd.f32 %v1034_v35, %v1033_v19  ;;  %v1050_v36 = vsel %vm705_vm2, %v946_v5, 0.0  ;;  %v948_v19 = vmul.f32 %v1979_v43, %v1979_v43 }
 0x12b   :  { %v1052_v39 = vsel %vm705_vm2, %v947_v33, 0.0  ;;  %v950_v43 = vmul.f32 %v2056_v15, %v2056_v15  ;;  %v957_v33 = vmul.f32 %v1889_v13, %v1889_v13 }
 0x12c   :  { %v840_v46 = vadd.f32 %v839_v41, %v838_v60  ;;  %v1037_v2 = vadd.f32 %v1036_v44, %v1035_v40  ;;  %v949_v60 = vmul.f32 %v2022_v29, %v2022_v29  ;;  %v1054_v16 = vsel %vm705_vm2, %v948_v19, 0.0 }
 0x12d   :  { %v1058_v29 = vsel %vm705_vm2, %v950_v43, 0.0 }
 0x12e   :  { %v842_v3 = vadd.f32 %v841_v51, %v840_v46  ;;  %v1039_v31 = vadd.f32 %v1038_v48, %v1037_v2  ;;  %v2217_v40 = vpop.f32.mrf.mxu3  ;;  %v1056_v48 = vsel %vm705_vm2, %v949_v60, 0.0  ;;  %v859_v51 = vsel %vm705_vm2, %v2056_v15, 0.0 }
 0x12f   :  { %768 = vst.msk [vmem:[%s2340_s4 + $0x1f0] sm:$0xff] %vm705_vm2, %v2217_v40  ;;  %v953_v15 = vmul.f32 %v1787_v57, %v1787_v57 }
 0x130   :  { %v844_v38 = vadd.f32 %v843_v11, %v842_v3  ;;  %v1041_v42 = vadd.f32 %v1040_v58, %v1039_v31  ;;  %v952_v3 = vmul.f32 %v2126_v4, %v2126_v4  ;;  %v861_v11 = vsel %vm705_vm2, %v2090_v37, 0.0 }
 0x131   :  { %v865_v37 = vsel %vm705_vm2, %v1787_v57, 0.0  ;;  %v954_v4 = vmul.f32 %v1812_v61, %v1812_v61  ;;  %v1064_v32 = vsel %vm705_vm2, %v953_v15, 0.0  ;;  %v869_v57 = vsel %vm705_vm2, %v1837_v1, 0.0 }
 0x132   :  { %v1043_v18 = vadd.f32 %v1042_v12, %v1041_v42  ;;  %v846_v20 = vadd.f32 %v845_v55, %v844_v38  ;;  %v1060_v12 = vsel %vm705_vm2, %v951_v53, 0.0  ;;  %v1062_v55 = vsel %vm705_vm2, %v952_v3, 0.0 }
 0x133   :  { %v1066_v5 = vsel %vm705_vm2, %v954_v4, 0.0  ;;  %v962_v53 = vmul.f32 %v2068_v49, %v2068_v49 }
 0x134   :  { %v848_v9 = vadd.f32 %v847_v59, %v846_v20  ;;  %v1045_v47 = vadd.f32 %v1044_v54, %v1043_v18 }
 0x136   :  { %v850_v24 = vadd.f32 %v849_v23, %v848_v9  ;;  %v1047_v25 = vadd.f32 %v1046_v63, %v1045_v47  ;;  %v2245_v17 = vpop.f32.mrf.mxu3  ;;  %v867_v9 = vsel %vm705_vm2, %v1812_v61, 0.0  ;;  %v955_v47 = vmul.f32 %v1837_v1, %v1837_v1 }
 0x137   :  { %769 = vst.msk [vmem:[%s2340_s4 + $0x1f8] sm:$0xff] %vm705_vm2, %v2245_v17  ;;  %v871_v61 = vsel %vm705_vm2, %v1862_v8, 0.0  ;;  %v873_v1 = vsel %vm705_vm2, %v1889_v13, 0.0  ;;  %v877_v13 = vsel %vm705_vm2, %v1957_v21, 0.0 }
 0x138   :  { %v852_v26 = vadd.f32 %v851_v52, %v850_v24  ;;  %v1049_v56 = vadd.f32 %v1048_v30, %v1047_v25  ;;  %v956_v24 = vmul.f32 %v1862_v8, %v1862_v8  ;;  %v1068_v52 = vsel %vm705_vm2, %v955_v47, 0.0 }
 0x139   :  { %v875_v8 = vsel %vm705_vm2, %v1924_v34, 0.0  ;;  %v967_v47 = vmul.f32 %v2217_v40, %v2217_v40 }
 0x13a   :  { %v854_v35 = vadd.f32 %v853_v10, %v852_v26  ;;  %v1051_v28 = vadd.f32 %v1050_v36, %v1049_v56  ;;  %v1070_v36 = vsel %vm705_vm2, %v956_v24, 0.0  ;;  %v958_v10 = vmul.f32 %v1924_v34, %v1924_v34 }
 0x13b   :  { %v879_v34 = vsel %vm705_vm2, %v1990_v50, 0.0  ;;  %v895_v24 = vsel %vm705_vm2, %v2245_v17, 0.0 }
 0x13c   :  { %v856_v44 = vadd.f32 %v855_v27, %v854_v35  ;;  %v1053_v41 = vadd.f32 %v1052_v39, %v1051_v28  ;;  %v1072_v28 = vsel %vm705_vm2, %v957_v33, 0.0  ;;  %v959_v39 = vmul.f32 %v1957_v21, %v1957_v21 }
 0x13d   :  { %v881_v21 = vsel %vm705_vm2, %v2034_v6, 0.0 }
 0x13e   :  { %v1055_v46 = vadd.f32 %v1054_v16, %v1053_v41  ;;  %v858_v2 = vadd.f32 %v857_v45, %v856_v44  ;;  %v1074_v44 = vsel %vm705_vm2, %v958_v10, 0.0  ;;  %v960_v41 = vmul.f32 %v1990_v50, %v1990_v50 }
 0x13f   :  { %v1076_v43 = vsel %vm705_vm2, %v959_v39, 0.0  ;;  %v883_v50 = vsel %vm705_vm2, %v2068_v49, 0.0  ;;  %v887_v49 = vsel %vm705_vm2, %v2137_v62, 0.0 }
 0x140   :  { %v1057_v31 = vadd.f32 %v1056_v48, %v1055_v46  ;;  %v860_v58 = vadd.f32 %v859_v51, %v858_v2  ;;  %v961_v46 = vmul.f32 %v2034_v6, %v2034_v6  ;;  %v1078_v51 = vsel %vm705_vm2, %v960_v41, 0.0 }
 0x141   :  { %v885_v6 = vsel %vm705_vm2, %v2102_v0, 0.0 }
 0x142   :  { %v1059_v38 = vadd.f32 %v1058_v29, %v1057_v31  ;;  %v862_v42 = vadd.f32 %v861_v11, %v860_v58  ;;  %v1080_v58 = vsel %vm705_vm2, %v961_v46, 0.0  ;;  %v963_v29 = vmul.f32 %v2102_v0, %v2102_v0 }
 0x143   :  { %v889_v0 = vsel %vm705_vm2, %v2163_v7, 0.0 }
 0x144   :  { %v1061_v18 = vadd.f32 %v1060_v12, %v1059_v38  ;;  %v864_v20 = vadd.f32 %v863_v14, %v862_v42  ;;  %v1082_v38 = vsel %vm705_vm2, %v962_v53, 0.0  ;;  %v964_v42 = vmul.f32 %v2137_v62, %v2137_v62 }
 0x145   :  { %v891_v62 = vsel %vm705_vm2, %v2190_v22, 0.0 }
 0x146   :  { %v866_v54 = vadd.f32 %v865_v37, %v864_v20  ;;  %v1063_v59 = vadd.f32 %v1062_v55, %v1061_v18  ;;  %v1084_v55 = vsel %vm705_vm2, %v963_v29, 0.0  ;;  %v965_v18 = vmul.f32 %v2163_v7, %v2163_v7 }
 0x147   :  { %v1086_v4 = vsel %vm705_vm2, %v964_v42, 0.0 }
 0x148   :  { %v868_v63 = vadd.f32 %v867_v9, %v866_v54  ;;  %v1065_v23 = vadd.f32 %v1064_v32, %v1063_v59  ;;  %v966_v54 = vmul.f32 %v2190_v22, %v2190_v22  ;;  %v1088_v9 = vsel %vm705_vm2, %v965_v18, 0.0 }
 0x149   :  { %v1092_v22 = vsel %vm705_vm2, %v967_v47, 0.0 }
 0x14a   :  { %v870_v25 = vadd.f32 %v869_v57, %v868_v63  ;;  %v1067_v30 = vadd.f32 %v1066_v5, %v1065_v23  ;;  %v968_v63 = vmul.f32 %v2245_v17, %v2245_v17  ;;  %v1090_v7 = vsel %vm705_vm2, %v966_v54, 0.0 }
 0x14b   :  { %v893_v57 = vsel %vm705_vm2, %v2217_v40, 0.0 }
 0x14c   :  { %v872_v26 = vadd.f32 %v871_v61, %v870_v25  ;;  %v1069_v56 = vadd.f32 %v1068_v52, %v1067_v30  ;;  %v1094_v52 = vsel %vm705_vm2, %v968_v63, 0.0 }
 0x14e   :  { %v874_v19 = vadd.f32 %v873_v1, %v872_v26  ;;  %v1071_v35 = vadd.f32 %v1070_v36, %v1069_v56 }
 0x150   :  { %v876_v27 = vadd.f32 %v875_v8, %v874_v19  ;;  %v1073_v60 = vadd.f32 %v1072_v28, %v1071_v35 }
 0x152   :  { %v1075_v16 = vadd.f32 %v1074_v44, %v1073_v60  ;;  %v878_v45 = vadd.f32 %v877_v13, %v876_v27 }
 0x154   :  { %v880_v2 = vadd.f32 %v879_v34, %v878_v45  ;;  %v1077_v48 = vadd.f32 %v1076_v43, %v1075_v16 }
 0x156   :  { %v882_v3 = vadd.f32 %v881_v21, %v880_v2  ;;  %v1079_v31 = vadd.f32 %v1078_v51, %v1077_v48 }
 0x158   :  { %v884_v11 = vadd.f32 %v883_v50, %v882_v3  ;;  %v1081_v14 = vadd.f32 %v1080_v58, %v1079_v31 }
 0x15a   :  { %v886_v15 = vadd.f32 %v885_v6, %v884_v11  ;;  %v1083_v12 = vadd.f32 %v1082_v38, %v1081_v14 }
 0x15c   :  { %v888_v20 = vadd.f32 %v887_v49, %v886_v15  ;;  %v1085_v37 = vadd.f32 %v1084_v55, %v1083_v12 }
 0x15e   :  { %v1087_v59 = vadd.f32 %v1086_v4, %v1085_v37  ;;  %v890_v32 = vadd.f32 %v889_v0, %v888_v20 }
 0x160   :  { %v1089_v23 = vadd.f32 %v1088_v9, %v1087_v59  ;;  %v892_v5 = vadd.f32 %v891_v62, %v890_v32 }
 0x162   :  { %v1091_v25 = vadd.f32 %v1090_v7, %v1089_v23  ;;  %v894_v30 = vadd.f32 %v893_v57, %v892_v5 }
 0x164   :  { %v1093_v61 = vadd.f32 %v1092_v22, %v1091_v25  ;;  %v896_v33 = vadd.f32 %v895_v24, %v894_v30 }
 0x166   :  { %v897_v26 = vrot.slane %v896_v33, 4  ;;  %v1095_v56 = vadd.f32 %v1094_v52, %v1093_v61 }
 0x168   :  { %v898_v36 = vadd.f32 %v897_v26, %v896_v33  ;;  %v1096_v1 = vrot.slane %v1095_v56, 4 }
 0x16a   :  { %v899_v10 = vrot.slane %v898_v36, 2  ;;  %v1097_v19 = vadd.f32 %v1096_v1, %v1095_v56 }
 0x16c   :  { %v900_v35 = vadd.f32 %v899_v10, %v898_v36  ;;  %v1098_v28 = vrot.slane %v1097_v19, 2 }
 0x16e   :  { %v901_v40 = vrot.slane %v900_v35, 1  ;;  %v1099_v8 = vadd.f32 %v1098_v28, %v1097_v19 }
 0x170   :  { %v902_v17 = vadd.f32 %v901_v40, %v900_v35  ;;  %v1100_v39 = vrot.slane %v1099_v8, 1 }
 0x172   :  { %904 = vst.msk [vmem:[%s2341_s5] sm:$0x1] %vm903_vm3, %v902_v17  ;;  %v1101_v27 = vadd.f32 %v1100_v39, %v1099_v8 }
 0x174   :  { %1102 = vst.msk [vmem:[%s2342_s6] sm:$0x1] %vm903_vm3, %v1101_v27 }
 0x175   :  { %1115 = vsyncpa [#allocation3], 1 }

// kernel: bottleneck_pallas.5
= control target key start
LH: loop header
LB: loop body
LE: loop exit
PB: predicated region body
PF: predicated region fallthrough
CT: control target
= control target key end

     0   :  { %12 = vsyncpa [#allocation3], 0  ;;  %s2888_s21 = smov 0   ;;  %s4257_s0 = inlined_call_operand.vmem [shape: f32[2,16,16,4], index: 0, kind: input, shape index: {}]   ;;  %s4258_s1 = inlined_call_operand.hbm [shape: f32[9,4,4], index: 1, kind: input, shape index: {}]   ;;  %s4259_s2 = inlined_call_operand.vmem [shape: f32[1,4], index: 2, kind: input, shape index: {}]   ;;  %s4260_s3 = inlined_call_operand.vmem [shape: f32[1,4], index: 3, kind: input, shape index: {}]   ;;  %s4261_s4 = inlined_call_operand.vmem [shape: f32[2,256,4], index: 4, kind: output, shape index: {0}]   ;;  %s4262_s5 = inlined_call_operand.vmem [shape: f32[2,1,4], index: 5, kind: output, shape index: {1}]   ;;  %s4263_s6 = inlined_call_operand.vmem [shape: f32[2,1,4], index: 6, kind: output, shape index: {2}]  }
   0x1 LB: > { %s201_s24 = sshll.u32 %s4258_s1, 4  ;;  %s2470_s25 = sadd.s32 4294967295, %s2847_s21   ;;  %s2847_s21 = sphi %s2888_s21, %s18_s21   ;;  %s202_s24 = int_to_ptr.hbm [resolvable:$true] %s201_s24 }
   0x2   : > { %p2472_p0 = scmp.ge.s32.totalorder %s2847_s21, 1  ;;  %p190_p1 = scmp.lt.s32.totalorder %s2847_s21, 3 }
   0x3   : > { %p2789_p2 = scmp.eq.s32.totalorder %s2470_s25, 0  ;;  %s2849_s26 = smov [#allocation2]  }
   0x4   : > { %p191_p3 = pnand %p2472_p0, %p190_p1  ;;  %s203_s27 = sshll.u32 %s2849_s26, 4  ;;  %s204_s27 = int_to_ptr.vmem [resolvable:$true] %s203_s27 }
   0x5   : > { %s2850_s28 = smov 64   ;;  %s2851_s29 = smov 4  }
   0x6   : > { %p2785_p4 = pneg %p191_p3  ;;  %233 = sbr.rel (%p191_p3) target bundleno = 749 (0x2ed), region = 36 }
   0x8   : > { %p2786_p5 = pnand %p2789_p2, %p2785_p4 }
   0xa   : > { %2788 = dma.hbm_to_vmem [thread:$0]  (!%p2786_p5), %s202_s24, 576, %s204_s27, [#allocation3], %s2850_s28, %s2850_s28, %s2851_s29  }
   0xb   : > { %2842 = dma.done.wait (%p2789_p2), [#allocation3], 576  }
   0xc   : > { %2844 = vsyncadd (%p2789_p2), [#allocation3], 4294966720  ;;  %p270_p6 = scmp.lt.s32.totalorder %s2470_s25, 1  ;;  %vm599_vm0 = vcmask 1043456   ;;  %v535_v0 = vld [vmem:[#allocation2 + $0x4] sm:$0xf] }
   0xd   : > { %2778 = vmatpush.msk.msra.mxu1 %vm599_vm0, %v535_v0  ;;  %2779 = vmatpush.msk.msra.mxu2 %vm599_vm0, %v535_v0  ;;  %v2915_v2 = vld [vmem:[%s4259_s2] ss:$0 sm:$0xff]  ;;  %v993_v5 = vld [vmem:[#allocation2 + $0x8] sm:$0xf]  ;;  %v1230_v10 = vld [vmem:[#allocation2 + $0xc] sm:$0xf] }
   0xe   : > { %s4480_s25 = smov (!%p270_p6, %s2470_s25), 1  ;;  %v2920_v3 = vld [vmem:[%s4260_s3] ss:$0 sm:$0xff]  ;;  %2780 = vmatpush.msk.msra.mxu3 %vm599_vm0, %v535_v0  ;;  %2481 = vmatpush.msk.msra.mxu0 %vm599_vm0, %v535_v0  ;;  %v4264_v13 = vmov 0.0   ;;  %v1385_v17 = vld [vmem:[#allocation2 + $0x10] sm:$0xf] }
   0xf   : > { %s2776_s30 = sshll.u32 %s4480_s25, 8  ;;  %2545 = vmatpush.msk.msrb.mxu2 %vm599_vm0, %v993_v5  ;;  %v533_v11 = vld [vmem:[#allocation2] sm:$0xf]  ;;  %619 = vmatmul.f32.vlgmr.msra.gmra.mxu0 %v4264_v13  ;;  %vm536_vm1 = vcmask 31744   ;;  %vm453_vm2 = vcmask 1040384   ;;  %vm912_vm3 = vcmask 1046528   ;;  %s282_s24 = scalar_lea.vmem %s4262_s5, %s4480_s25 }
  0x10   : > { %s2907_s9 = scalar_lea.vmem %s4257_s0, %s2776_s30  ;;  %2578 = vmatpush.msk.msrb.mxu3 %vm599_vm0, %v1230_v10  ;;  %2512 = vmatpush.msk.msrb.mxu1 %vm599_vm0, %v533_v11  ;;  %s3969_s20 = scalar_lea.vmem %s4261_s4, %s2776_s30  ;;  %vm2249_vm4 = vcmask 24576  }
  0x11   : > { %v292_v1 = vld [vmem:[%s2907_s9 + $0x30] sm:$0xff]  ;;  %v293_v12 = vld [vmem:[%s2907_s9 + $0x38] sm:$0xff]  ;;  %2611 = vmatpush.msk.msrb.mxu0 %vm599_vm0, %v1385_v17  ;;  %v286_v26 = vld [vmem:[%s2907_s9] sm:$0xff]  ;;  %s285_s28 = scalar_lea.vmem %s4263_s6, %s4480_s25 }
  0x12   : > { %v300_v4 = vld [vmem:[%s2907_s9 + $0x70] sm:$0xff]  ;;  %v328_v7 = vmul.f32 %v2915_v2, %v292_v1  ;;  %v329_v14 = vmul.f32 %v2915_v2, %v293_v12  ;;  %v301_v15 = vld [vmem:[%s2907_s9 + $0x78] sm:$0xff]  ;;  %v294_v30 = vld [vmem:[%s2907_s9 + $0x40] sm:$0xff]  ;;  %v322_v32 = vmul.f32 %v2915_v2, %v286_v26 }
  0x13   : > { %v308_v6 = vld [vmem:[%s2907_s9 + $0xb0] sm:$0xff]  ;;  %v336_v8 = vmul.f32 %v2915_v2, %v300_v4  ;;  %v309_v16 = vld [vmem:[%s2907_s9 + $0xb8] sm:$0xff]  ;;  %v337_v21 = vmul.f32 %v2915_v2, %v301_v15  ;;  %v302_v31 = vld [vmem:[%s2907_s9 + $0x80] sm:$0xff]  ;;  %v330_v38 = vmul.f32 %v2915_v2, %v294_v30 }
  0x14   : > { %v344_v9 = vmul.f32 %v2915_v2, %v308_v6  ;;  %v364_v18 = vadd.f32 %v2920_v3, %v328_v7  ;;  %v345_v22 = vmul.f32 %v2915_v2, %v309_v16  ;;  %v365_v27 = vadd.f32 %v2920_v3, %v329_v14  ;;  %v310_v33 = vld [vmem:[%s2907_s9 + $0xc0] sm:$0xff]  ;;  %v287_v35 = vld [vmem:[%s2907_s9 + $0x8] sm:$0xff]  ;;  %v288_v51 = vld [vmem:[%s2907_s9 + $0x10] sm:$0xff] }
  0x15   : > { %v372_v19 = vadd.f32 %v2920_v3, %v336_v8  ;;  %v373_v28 = vadd.f32 %v2920_v3, %v337_v21  ;;  %v358_v34 = vadd.f32 %v2920_v3, %v322_v32  ;;  %v338_v39 = vmul.f32 %v2915_v2, %v302_v31  ;;  %v295_v47 = vld [vmem:[%s2907_s9 + $0x48] sm:$0xff]  ;;  %v296_v63 = vld [vmem:[%s2907_s9 + $0x50] sm:$0xff]  ;;  %v289_v5 = vld [vmem:[%s2907_s9 + $0x18] sm:$0xff] }
  0x16   : > { %v380_v20 = vadd.f32 %v2920_v3, %v344_v9  ;;  %v2943_v23 = vmax.f32 %v364_v18, 0.0  ;;  %v381_v29 = vadd.f32 %v2920_v3, %v345_v22  ;;  %v2966_v36 = vmax.f32 %v365_v27, 0.0  ;;  %v303_v48 = vld [vmem:[%s2907_s9 + $0x88] sm:$0xff]  ;;  %v304_v0 = vld [vmem:[%s2907_s9 + $0x90] sm:$0xff]  ;;  %v297_v18 = vld [vmem:[%s2907_s9 + $0x58] sm:$0xff] }
  0x17   : > { %v2945_v24 = vmax.f32 %v372_v19, 0.0  ;;  %622 = vmatmul.f32.gmra.mxu0 %v4264_v13  ;;  %v2968_v37 = vmax.f32 %v373_v28, 0.0  ;;  %v346_v41 = vmul.f32 %v2915_v2, %v310_v33  ;;  %v2975_v42 = vmax.f32 %v358_v34, 0.0  ;;  %v311_v49 = vld [vmem:[%s2907_s9 + $0xc8] sm:$0xff]  ;;  %v312_v1 = vld [vmem:[%s2907_s9 + $0xd0] sm:$0xff]  ;;  %v305_v19 = vld [vmem:[%s2907_s9 + $0x98] sm:$0xff] }
  0x18   : > { %4326 = vst [vmem:[#allocation5_spill] sm:$0xff] %v2943_v23  ;;  %v2947_v25 = vmax.f32 %v380_v20, 0.0  ;;  %2488 = vmatmul.msk.f32.vlgmr.msra.gmra.mxu1 %vm536_vm1, %v2943_v23  ;;  %v2972_v40 = vmax.f32 %v381_v29, 0.0  ;;  %v323_v43 = vmul.f32 %v2915_v2, %v287_v35  ;;  %v366_v44 = vadd.f32 %v2920_v3, %v330_v38  ;;  %v313_v20 = vld [vmem:[%s2907_s9 + $0xd8] sm:$0xff]  ;;  %v290_v22 = vld [vmem:[%s2907_s9 + $0x20] sm:$0xff] }
  0x19   : > { %4327 = vst [vmem:[#allocation6_spill] sm:$0xff] %v2945_v24  ;;  %2496 = vmatmul.msk.f32.vlgmr.msra.gmra.mxu2 %vm536_vm1, %v2945_v24  ;;  %v374_v45 = vadd.f32 %v2920_v3, %v338_v39  ;;  %v382_v46 = vadd.f32 %v2920_v3, %v346_v41  ;;  %v331_v54 = vmul.f32 %v2915_v2, %v295_v47  ;;  %v298_v38 = vld [vmem:[%s2907_s9 + $0x60] sm:$0xff]  ;;  %v1699_v39 = vld [vmem:[#allocation2 + $0x18] sm:$0xf] }
  0x1a   : > { %4328 = vst [vmem:[#allocation7_spill] sm:$0xff] %v2947_v25  ;;  %2504 = vmatmul.msk.f32.vlgmr.msra.gmra.mxu3 %vm536_vm1, %v2947_v25  ;;  %v359_v50 = vadd.f32 %v2920_v3, %v323_v43  ;;  %v2994_v52 = vmax.f32 %v366_v44, 0.0  ;;  %v339_v55 = vmul.f32 %v2915_v2, %v303_v48  ;;  %v347_v57 = vmul.f32 %v2915_v2, %v311_v49  ;;  %v306_v43 = vld [vmem:[%s2907_s9 + $0xa0] sm:$0xff]  ;;  %v1849_v44 = vld [vmem:[#allocation2 + $0x1c] sm:$0xf]  ;;  %v291_v48 = vld [vmem:[%s2907_s9 + $0x28] sm:$0xff] }
  0x1b   : > { %4329 = vst [vmem:[#allocation8_spill] sm:$0xff] %v2966_v36  ;;  %v2996_v53 = vmax.f32 %v374_v45, 0.0  ;;  %v3000_v56 = vmax.f32 %v382_v46, 0.0  ;;  %v324_v59 = vmul.f32 %v2915_v2, %v288_v51  ;;  %v367_v60 = vadd.f32 %v2920_v3, %v331_v54  ;;  %2677 = vmatpush.msk.msra.mxu2 %vm599_vm0, %v1699_v39  ;;  %v1544_v45 = vld [vmem:[#allocation2 + $0x14] sm:$0xf]  ;;  %v314_v46 = vld [vmem:[%s2907_s9 + $0xe0] sm:$0xff]  ;;  %2710 = vmatpush.msk.msra.mxu3 %vm599_vm0, %v1849_v44 }
  0x1c   : > { %4330 = vst [vmem:[#allocation9_spill] sm:$0xff] %v2968_v37  ;;  %v3003_v58 = vmax.f32 %v359_v50, 0.0  ;;  %v375_v61 = vadd.f32 %v2920_v3, %v339_v55  ;;  %v383_v62 = vadd.f32 %v2920_v3, %v347_v57  ;;  %v332_v8 = vmul.f32 %v2915_v2, %v296_v63  ;;  %2644 = vmatpush.msk.msra.mxu1 %vm599_vm0, %v1544_v45 }
  0x1d   : > { %4331 = vst [vmem:[#allocation10_spill] sm:$0xff] %v2972_v40  ;;  %v360_v4 = vadd.f32 %v2920_v3, %v324_v59  ;;  %v3022_v6 = vmax.f32 %v367_v60, 0.0  ;;  %v340_v9 = vmul.f32 %v2915_v2, %v304_v0  ;;  %v348_v11 = vmul.f32 %v2915_v2, %v312_v1  ;;  %v299_v0 = vld [vmem:[%s2907_s9 + $0x68] sm:$0xff] }
  0x1e   : > { %4332 = vst [vmem:[#allocation11_spill] sm:$0xff] %v2994_v52  ;;  %v3024_v7 = vmax.f32 %v375_v61, 0.0  ;;  %v3028_v10 = vmax.f32 %v383_v62, 0.0  ;;  %v325_v14 = vmul.f32 %v2915_v2, %v289_v5  ;;  %v368_v15 = vadd.f32 %v2920_v3, %v332_v8  ;;  %v307_v1 = vld [vmem:[%s2907_s9 + $0xa8] sm:$0xff] }
  0x1f   : > { %2482 = vmatmul.msk.f32.gmra.mxu0 %vm536_vm1, %v2975_v42  ;;  %4333 = vst [vmem:[#allocation12_spill] sm:$0xff] %v2996_v53  ;;  %v3031_v12 = vmax.f32 %v360_v4, 0.0  ;;  %v376_v16 = vadd.f32 %v2920_v3, %v340_v9  ;;  %v384_v17 = vadd.f32 %v2920_v3, %v348_v11  ;;  %v333_v28 = vmul.f32 %v2915_v2, %v297_v18  ;;  %v1999_v4 = vld [vmem:[#allocation2 + $0x20] sm:$0xf]  ;;  %v315_v5 = vld [vmem:[%s2907_s9 + $0xe8] sm:$0xff] }
  0x20   : > { %2489 = vmatmul.msk.f32.gmra.mxu1 %vm536_vm1, %v2966_v36  ;;  %4334 = vst [vmem:[#allocation13_spill] sm:$0xff] %v3000_v56  ;;  %v361_v21 = vadd.f32 %v2920_v3, %v325_v14  ;;  %v3050_v26 = vmax.f32 %v368_v15, 0.0  ;;  %v341_v29 = vmul.f32 %v2915_v2, %v305_v19  ;;  %v349_v31 = vmul.f32 %v2915_v2, %v313_v20 }
  0x21   : > { %2497 = vmatmul.msk.f32.gmra.mxu2 %vm536_vm1, %v2968_v37  ;;  %4335 = vst [vmem:[#allocation14_spill] sm:$0xff] %v3022_v6  ;;  %v3052_v27 = vmax.f32 %v376_v16, 0.0  ;;  %v3056_v30 = vmax.f32 %v384_v17, 0.0  ;;  %v326_v33 = vmul.f32 %v2915_v2, %v290_v22  ;;  %v369_v34 = vadd.f32 %v2920_v3, %v333_v28  ;;  %2741 = vmatpush.msk.msra.mxu0 %vm599_vm0, %v1999_v4 }
  0x22   : > { %2505 = vmatmul.msk.f32.gmra.mxu3 %vm536_vm1, %v2972_v40  ;;  %4336 = vst [vmem:[#allocation15_spill] sm:$0xff] %v3024_v7  ;;  %v3059_v32 = vmax.f32 %v361_v21, 0.0  ;;  %v377_v35 = vadd.f32 %v2920_v3, %v341_v29  ;;  %v385_v41 = vadd.f32 %v2920_v3, %v349_v31  ;;  %v334_v51 = vmul.f32 %v2915_v2, %v298_v38 }
  0x23   : > { %4337 = vst [vmem:[#allocation16_spill] sm:$0xff] %v3028_v10  ;;  %v362_v47 = vadd.f32 %v2920_v3, %v326_v33  ;;  %v3081_v49 = vmax.f32 %v369_v34, 0.0  ;;  %v342_v54 = vmul.f32 %v2915_v2, %v306_v43  ;;  %v350_v57 = vmul.f32 %v2915_v2, %v314_v46 }
  0x24   : > { %4338 = vst [vmem:[#allocation17_spill] sm:$0xff] %v3050_v26  ;;  %v3083_v50 = vmax.f32 %v377_v35, 0.0  ;;  %v3087_v55 = vmax.f32 %v385_v41, 0.0  ;;  %v327_v60 = vmul.f32 %v2915_v2, %v291_v48  ;;  %v370_v61 = vadd.f32 %v2920_v3, %v334_v51 }
  0x25   : > { %4339 = vst [vmem:[#allocation18_spill] sm:$0xff] %v3052_v27  ;;  %v3090_v59 = vmax.f32 %v362_v47, 0.0  ;;  %v378_v62 = vadd.f32 %v2920_v3, %v342_v54  ;;  %v386_v63 = vadd.f32 %v2920_v3, %v350_v57  ;;  %v335_v14 = vmul.f32 %v2915_v2, %v299_v0 }
  0x26   : > { %4340 = vst [vmem:[#allocation19_spill] sm:$0xff] %v3056_v30  ;;  %v363_v8 = vadd.f32 %v2920_v3, %v327_v60  ;;  %v3109_v9 = vmax.f32 %v370_v61, 0.0  ;;  %v343_v15 = vmul.f32 %v2915_v2, %v307_v1  ;;  %v351_v17 = vmul.f32 %v2915_v2, %v315_v5 }
  0x27   : > { %2483 = vmatmul.msk.f32.gmra.mxu0 %vm536_vm1, %v3003_v58  ;;  %4341 = vst [vmem:[#allocation20_spill] sm:$0xff] %v3081_v49  ;;  %v3111_v11 = vmax.f32 %v378_v62, 0.0  ;;  %v3115_v16 = vmax.f32 %v386_v63, 0.0  ;;  %v371_v19 = vadd.f32 %v2920_v3, %v335_v14  ;;  %v456_v29 = vrot.slane %v2975_v42, 7 }
  0x28   : > { %2490 = vmatmul.msk.f32.gmra.mxu1 %vm536_vm1, %v2994_v52  ;;  %4342 = vst [vmem:[#allocation21_spill] sm:$0xff] %v3083_v50  ;;  %v3118_v18 = vmax.f32 %v363_v8, 0.0  ;;  %v379_v20 = vadd.f32 %v2920_v3, %v343_v15  ;;  %v387_v21 = vadd.f32 %v2920_v3, %v351_v17  ;;  %v3144_v3 = vrot.slane %v4264_v13, 7 }
  0x29   : > { %2498 = vmatmul.msk.f32.gmra.mxu2 %vm536_vm1, %v2996_v53  ;;  %4343 = vst [vmem:[#allocation22_spill] sm:$0xff] %v3087_v55  ;;  %v3131_v2 = vmax.f32 %v371_v19, 0.0  ;;  %v3150_v31 = vrot.slane %v4264_v13, 1  ;;  %v518_v34 = vsel %vm453_vm2, 0.0, %v456_v29  ;;  %v457_v35 = vrot.slane %v3003_v58, 7 }
  0x2a   : > { %2506 = vmatmul.msk.f32.gmra.mxu3 %vm536_vm1, %v3000_v56  ;;  %4344 = vst [vmem:[#allocation23_spill] sm:$0xff] %v3109_v9  ;;  %v3133_v22 = vmax.f32 %v379_v20, 0.0  ;;  %v3135_v28 = vmax.f32 %v387_v21, 0.0  ;;  %v3154_v33 = vsel %vm453_vm2, 0.0, %v3144_v3  ;;  %v915_v41 = vrot.slane %v2975_v42, 1 }
  0x2b   : > { %4345 = vst [vmem:[#allocation24_spill] sm:$0xff] %v3111_v11  ;;  %v3167_v38 = vsel %vm912_vm3, %v3150_v31, 0.0  ;;  %v458_v39 = vsel %vm453_vm2, %v456_v29, %v457_v35  ;;  %v916_v43 = vrot.slane %v3003_v58, 1  ;;  %v459_v44 = vrot.slane %v3031_v12, 7 }
  0x2c   : > { %4346 = vst [vmem:[#allocation25_spill] sm:$0xff] %v3118_v18  ;;  %v918_v48 = vrot.slane %v3031_v12, 1  ;;  %v919_v51 = vrot.slane %v3059_v32, 1  ;;  %v462_v54 = vrot.slane %v3090_v59, 7  ;;  %v463_v61 = vrot.slane %v3118_v18, 7 }
  0x2d   : > { %4347 = vst [vmem:[#allocation26_spill] sm:$0xff] %v3131_v2  ;;  %v3181_v45 = vsel %vm912_vm3, %v915_v41, %v916_v43  ;;  %v3184_v46 = vsel %vm453_vm2, 0.0, %v459_v44  ;;  %v921_v0 = vrot.slane %v3090_v59, 1  ;;  %v922_v1 = vrot.slane %v3118_v18, 1 }
  0x2e   : > { %4348 = vst [vmem:[#allocation27_spill] sm:$0xff] %v3133_v22  ;;  %v3211_v57 = vsel %vm912_vm3, %v918_v48, %v919_v51  ;;  %v3214_v60 = vsel %vm453_vm2, 0.0, %v462_v54  ;;  %v3226_v62 = vsel %vm912_vm3, %v919_v51, 0.0  ;;  %v3229_v63 = vsel %vm453_vm2, %v462_v54, %v463_v61 }
  0x2f   : > { %2484 = vmatmul.msk.f32.gmra.mxu0 %vm536_vm1, %v3031_v12  ;;  %4349 = vst [vmem:[#allocation28_spill] sm:$0xff] %v3144_v3  ;;  %v465_v4 = vrot.slane %v2943_v23, 7  ;;  %v3243_v5 = vsel %vm912_vm3, %v921_v0, %v922_v1  ;;  %v466_v14 = vrot.slane %v2966_v36, 7  ;;  %v3258_v15 = vsel %vm912_vm3, %v922_v1, 0.0 }
  0x30   : > { %2491 = vmatmul.msk.f32.gmra.mxu1 %vm536_vm1, %v3022_v6  ;;  %4350 = vst [vmem:[#allocation29_spill] sm:$0xff] %v3150_v31  ;;  %v924_v20 = vrot.slane %v2943_v23, 1  ;;  %v925_v21 = vrot.slane %v2966_v36, 1  ;;  %v468_v29 = vrot.slane %v2994_v52, 7  ;;  %v927_v0 = vrot.slane %v2994_v52, 1 }
  0x31   : > { %2499 = vmatmul.msk.f32.gmra.mxu2 %vm536_vm1, %v3024_v7  ;;  %4351 = vst [vmem:[#allocation30_spill] sm:$0xff] %v3154_v33  ;;  %v3246_v8 = vsel %vm453_vm2, 0.0, %v465_v4  ;;  %v3261_v17 = vsel %vm453_vm2, %v465_v4, %v466_v14  ;;  %v928_v1 = vrot.slane %v3022_v6, 1  ;;  %v471_v4 = vrot.slane %v3050_v26, 7 }
  0x32   : > { %2507 = vmatmul.msk.f32.gmra.mxu3 %vm536_vm1, %v3028_v10  ;;  %4352 = vst [vmem:[#allocation31_spill] sm:$0xff] %v3167_v38  ;;  %v3279_v35 = vsel %vm912_vm3, %v924_v20, %v925_v21  ;;  %v3302_v51 = vsel %vm912_vm3, %v925_v21, 0.0 }
  0x33   : > { %4353 = vst [vmem:[#allocation32_spill] sm:$0xff] %v3246_v8 }
  0x34   : > { %4354 = vst [vmem:[#allocation33_spill] sm:$0xff] %v3261_v17 }
  0x35   : > { %4355 = vst [vmem:[#allocation34_spill] sm:$0xff] %v3279_v35 }
  0x36   : > { %4358 = vst [vmem:[#allocation37_spill] sm:$0xff] %v3302_v51 }
  0x37   : > { %2485 = vmatmul.msk.f32.gmra.mxu0 %vm536_vm1, %v3059_v32 }
  0x38   : > { %2492 = vmatmul.msk.f32.gmra.mxu1 %vm536_vm1, %v3050_v26 }
  0x39   : > { %2500 = vmatmul.msk.f32.gmra.mxu2 %vm536_vm1, %v3052_v27 }
  0x3a   : > { %2508 = vmatmul.msk.f32.gmra.mxu3 %vm536_vm1, %v3056_v30 }
  0x3f   : > { %2486 = vmatmul.msk.f32.gmra.mxu0 %vm536_vm1, %v3090_v59 }
  0x40   : > { %2493 = vmatmul.msk.f32.gmra.mxu1 %vm536_vm1, %v3081_v49 }
  0x41   : > { %2501 = vmatmul.msk.f32.gmra.mxu2 %vm536_vm1, %v3083_v50 }
  0x42   : > { %2509 = vmatmul.msk.f32.gmra.mxu3 %vm536_vm1, %v3087_v55 }
  0x47   : > { %2487 = vmatmul.msk.f32.gmra.mxu0 %vm536_vm1, %v3118_v18 }
  0x48   : > { %2494 = vmatmul.msk.f32.gmra.mxu1 %vm536_vm1, %v3109_v9 }
  0x49   : > { %2502 = vmatmul.msk.f32.gmra.mxu2 %vm536_vm1, %v3111_v11 }
  0x4a   : > { %2510 = vmatmul.msk.f32.gmra.mxu3 %vm536_vm1, %v3115_v16 }
  0x4f   : > { %2612 = vmatmul.msk.f32.vlgmr.msrb.gmra.mxu0 %vm536_vm1, %v2975_v42  ;;  %v460_v42 = vrot.slane %v3059_v32, 7 }
  0x50   : > { %2495 = vmatmul.msk.f32.gmra.mxu1 %vm536_vm1, %v3131_v2 }
  0x51   : > { %2503 = vmatmul.msk.f32.gmra.mxu2 %vm536_vm1, %v3133_v22  ;;  %v3198_v47 = vsel %vm453_vm2, %v459_v44, %v460_v42 }
  0x52   : > { %2511 = vmatmul.msk.f32.gmra.mxu3 %vm536_vm1, %v3135_v28 }
  0x57   : > { %2613 = vmatmul.msk.f32.gmra.mxu0 %vm536_vm1, %v3003_v58  ;;  %v3195_v58 = vsel %vm912_vm3, %v916_v43, 0.0  ;;  %v469_v43 = vrot.slane %v3022_v6, 7 }
  0x58   : > { %2513 = vmatmul.msk.f32.vlgmr.msrb.gmra.mxu1 %vm536_vm1, %v3154_v33 }
  0x59   : > { %2546 = vmatmul.msk.f32.vlgmr.msrb.gmra.mxu2 %vm536_vm1, %v3150_v31  ;;  %v3305_v54 = vsel %vm453_vm2, %v468_v29, %v469_v43  ;;  %v3330_v43 = vsel %vm453_vm2, 0.0, %v471_v4  ;;  %v3350_v31 = vsel %vm912_vm3, %v928_v1, 0.0 }
  0x5a   : > { %2579 = vmatmul.msk.f32.vlgmr.msrb.gmra.mxu3 %vm536_vm1, %v518_v34  ;;  %4359 = vst [vmem:[#allocation38_spill] sm:$0xff] %v3305_v54 }
  0x5b   : > { %4362 = vst [vmem:[#allocation41_spill] sm:$0xff] %v3330_v43 }
  0x5c   : > { %4364 = vst [vmem:[#allocation43_spill] sm:$0xff] %v3350_v31 }
  0x5f   : > { %2614 = vmatmul.msk.f32.gmra.mxu0 %vm536_vm1, %v3031_v12 }
  0x60   : > { %2514 = vmatmul.msk.f32.gmra.mxu1 %vm536_vm1, %v3144_v3  ;;  %v472_v3 = vrot.slane %v3081_v49, 7 }
  0x61   : > { %2547 = vmatmul.msk.f32.gmra.mxu2 %vm536_vm1, %v3167_v38 }
  0x62   : > { %2580 = vmatmul.msk.f32.gmra.mxu3 %vm536_vm1, %v458_v39 }
  0x67   : > { %2615 = vmatmul.msk.f32.gmra.mxu0 %vm536_vm1, %v3059_v32 }
  0x68   : > { %2515 = vmatmul.msk.f32.gmra.mxu1 %vm536_vm1, %v518_v34 }
  0x69   : > { %2548 = vmatmul.msk.f32.gmra.mxu2 %vm536_vm1, %v3181_v45 }
  0x6a   : > { %2581 = vmatmul.msk.f32.gmra.mxu3 %vm536_vm1, %v3184_v46 }
  0x6f   : > { %2616 = vmatmul.msk.f32.gmra.mxu0 %vm536_vm1, %v3090_v59 }
  0x70   : > { %2516 = vmatmul.msk.f32.gmra.mxu1 %vm536_vm1, %v458_v39  ;;  %v3282_v39 = vsel %vm453_vm2, 0.0, %v468_v29  ;;  %v3327_v29 = vsel %vm912_vm3, %v927_v0, %v928_v1  ;;  %v474_v1 = vrot.slane %v3109_v9, 7 }
  0x71   : > { %2549 = vmatmul.msk.f32.gmra.mxu2 %vm536_vm1, %v3195_v58  ;;  %4356 = vst [vmem:[#allocation35_spill] sm:$0xff] %v3282_v39 }
  0x72   : > { %2582 = vmatmul.msk.f32.gmra.mxu3 %vm536_vm1, %v3198_v47  ;;  %4361 = vst [vmem:[#allocation40_spill] sm:$0xff] %v3327_v29 }
  0x77   : > { %2617 = vmatmul.msk.f32.gmra.mxu0 %vm536_vm1, %v3118_v18 }
  0x78   : > { %2517 = vmatmul.msk.f32.gmra.mxu1 %vm536_vm1, %v3184_v46 }
  0x79   : > { %2550 = vmatmul.msk.f32.gmra.mxu2 %vm536_vm1, %v3211_v57 }
  0x7a   : > { %2583 = vmatmul.msk.f32.gmra.mxu3 %vm536_vm1, %v3214_v60 }
  0x7f   : > { %2618 = vmatmul.msk.f32.gmra.mxu0 %vm536_vm1, %v2943_v23 }
  0x80   : > { %2518 = vmatmul.msk.f32.gmra.mxu1 %vm536_vm1, %v3198_v47 }
  0x81   : > { %2551 = vmatmul.msk.f32.gmra.mxu2 %vm536_vm1, %v3226_v62 }
  0x82   : > { %2584 = vmatmul.msk.f32.gmra.mxu3 %vm536_vm1, %v3229_v63 }
  0x87   : > { %2619 = vmatmul.msk.f32.gmra.mxu0 %vm536_vm1, %v2966_v36  ;;  %v934_v36 = vrot.slane %v3131_v2, 1 }
  0x88   : > { %2519 = vmatmul.msk.f32.gmra.mxu1 %vm536_vm1, %v3214_v60 }
  0x89   : > { %2552 = vmatmul.msk.f32.gmra.mxu2 %vm536_vm1, %v3243_v5 }
  0x8a   : > { %2585 = vmatmul.msk.f32.gmra.mxu3 %vm536_vm1, %v3246_v8 }
  0x8c   : > { %v3263_v19 = vpop.f32.mrf.mxu0 }
  0x8f   : > { %2620 = vmatmul.msk.f32.gmra.mxu0 %vm536_vm1, %v2994_v52  ;;  %v3378_v52 = vsel %vm453_vm2, 0.0, %v474_v1 }
  0x90   : > { %2520 = vmatmul.msk.f32.gmra.mxu1 %vm536_vm1, %v3229_v63  ;;  %4369 = vst [vmem:[#allocation48_spill] sm:$0xff] %v3378_v52 }
  0x91   : > { %2553 = vmatmul.msk.f32.gmra.mxu2 %vm536_vm1, %v3258_v15 }
  0x92   : > { %2586 = vmatmul.msk.f32.gmra.mxu3 %vm536_vm1, %v3261_v17 }
  0x94   : > { %v3284_v41 = vpop.f32.mrf.mxu0 }
  0x95   : > { %v3276_v34 = vpop.f32.mrf.mxu1 }
  0x97   : > { %2621 = vmatmul.msk.f32.gmra.mxu0 %vm536_vm1, %v3022_v6  ;;  %v931_v6 = vrot.slane %v3081_v49, 1 }
  0x98   : > { %2521 = vmatmul.msk.f32.gmra.mxu1 %vm536_vm1, %v3246_v8 }
  0x99   : > { %2554 = vmatmul.msk.f32.gmra.mxu2 %vm536_vm1, %v3279_v35 }
  0x9a   : > { %2587 = vmatmul.msk.f32.gmra.mxu3 %vm536_vm1, %v3282_v39 }
  0x9c   : > { %v3295_v44 = vpop.f32.mrf.mxu2  ;;  %v3307_v61 = vpop.f32.mrf.mxu0 }
  0x9d   : > { %v3297_v42 = vpop.f32.mrf.mxu3  ;;  %v3299_v48 = vpop.f32.mrf.mxu1 }
  0x9e   : > { %4357 = vst [vmem:[#allocation36_spill] sm:$0xff] %v3297_v42 }
  0x9f   : > { %2622 = vmatmul.msk.f32.gmra.mxu0 %vm536_vm1, %v3050_v26 }
  0xa0   : > { %2522 = vmatmul.msk.f32.gmra.mxu1 %vm536_vm1, %v3261_v17 }
  0xa1   : > { %2555 = vmatmul.msk.f32.gmra.mxu2 %vm536_vm1, %v3302_v51  ;;  %v3446_v51 = vsel %vm912_vm3, %v934_v36, 0.0 }
  0xa2   : > { %2588 = vmatmul.msk.f32.gmra.mxu3 %vm536_vm1, %v3305_v54  ;;  %4380 = vst [vmem:[#allocation59_spill] sm:$0xff] %v3446_v51 }
  0xa4   : > { %v3320_v14 = vpop.f32.mrf.mxu2  ;;  %v3332_v13 = vpop.f32.mrf.mxu0 }
  0xa5   : > { %v3322_v20 = vpop.f32.mrf.mxu3  ;;  %v3324_v21 = vpop.f32.mrf.mxu1 }
  0xa6   : > { %4360 = vst [vmem:[#allocation39_spill] sm:$0xff] %v3322_v20  ;;  %v3353_v20 = vsel %vm453_vm2, %v471_v4, %v472_v3 }
  0xa7   : > { %2623 = vmatmul.msk.f32.gmra.mxu0 %vm536_vm1, %v3081_v49  ;;  %4365 = vst [vmem:[#allocation44_spill] sm:$0xff] %v3353_v20 }
  0xa8   : > { %2523 = vmatmul.msk.f32.gmra.mxu1 %vm536_vm1, %v3282_v39 }
  0xa9   : > { %2556 = vmatmul.msk.f32.gmra.mxu2 %vm536_vm1, %v3327_v29  ;;  %v3398_v29 = vsel %vm912_vm3, %v931_v6, 0.0 }
  0xaa   : > { %2589 = vmatmul.msk.f32.gmra.mxu3 %vm536_vm1, %v3330_v43  ;;  %4372 = vst [vmem:[#allocation51_spill] sm:$0xff] %v3398_v29 }
  0xac   : > { %v3343_v0 = vpop.f32.mrf.mxu2  ;;  %v3355_v42 = vpop.f32.mrf.mxu0 }
  0xad   : > { %v3345_v38 = vpop.f32.mrf.mxu3  ;;  %v3347_v33 = vpop.f32.mrf.mxu1 }
  0xae   : > { %4363 = vst [vmem:[#allocation42_spill] sm:$0xff] %v3345_v38  ;;  %v930_v38 = vrot.slane %v3050_v26, 1 }
  0xaf   : > { %2624 = vmatmul.msk.f32.gmra.mxu0 %vm536_vm1, %v3109_v9 }
  0xb0   : > { %2524 = vmatmul.msk.f32.gmra.mxu1 %vm536_vm1, %v3305_v54 }
  0xb1   : > { %2557 = vmatmul.msk.f32.gmra.mxu2 %vm536_vm1, %v3350_v31  ;;  %v3375_v31 = vsel %vm912_vm3, %v930_v38, %v931_v6  ;;  %v477_v6 = vrot.slane %v2945_v24, 7 }
  0xb2   : > { %2590 = vmatmul.msk.f32.gmra.mxu3 %vm536_vm1, %v3353_v20  ;;  %4368 = vst [vmem:[#allocation47_spill] sm:$0xff] %v3375_v31 }
  0xb3   : > { %v3426_v17 = vsel %vm453_vm2, 0.0, %v477_v6 }
  0xb4   : > { %v3368_v3 = vpop.f32.mrf.mxu2  ;;  %v3380_v26 = vpop.f32.mrf.mxu0  ;;  %4377 = vst [vmem:[#allocation56_spill] sm:$0xff] %v3426_v17 }
  0xb5   : > { %4366 = vst [vmem:[#allocation45_spill] sm:$0xff] %v3368_v3  ;;  %v3370_v4 = vpop.f32.mrf.mxu3  ;;  %v3372_v54 = vpop.f32.mrf.mxu1 }
  0xb6   : > { %4367 = vst [vmem:[#allocation46_spill] sm:$0xff] %v3370_v4  ;;  %v475_v4 = vrot.slane %v3131_v2, 7 }
  0xb7   : > { %2625 = vmatmul.msk.f32.gmra.mxu0 %vm536_vm1, %v3131_v2 }
  0xb8   : > { %2525 = vmatmul.msk.f32.gmra.mxu1 %vm536_vm1, %v3330_v43  ;;  %v3401_v43 = vsel %vm453_vm2, %v474_v1, %v475_v4 }
  0xb9   : > { %2558 = vmatmul.msk.f32.gmra.mxu2 %vm536_vm1, %v3375_v31  ;;  %4373 = vst [vmem:[#allocation52_spill] sm:$0xff] %v3401_v43 }
  0xba   : > { %2591 = vmatmul.msk.f32.gmra.mxu3 %vm536_vm1, %v3378_v52 }
  0xbc   : > { %v3391_v38 = vpop.f32.mrf.mxu2  ;;  %v3403_v31 = vpop.f32.mrf.mxu0 }
  0xbd   : > { %4370 = vst [vmem:[#allocation49_spill] sm:$0xff] %v3391_v38  ;;  %v3393_v49 = vpop.f32.mrf.mxu3  ;;  %v3395_v39 = vpop.f32.mrf.mxu1 }
  0xbe   : > { %4371 = vst [vmem:[#allocation50_spill] sm:$0xff] %v3393_v49  ;;  %v933_v49 = vrot.slane %v3109_v9, 1 }
  0xbf   : > { %2626 = vmatmul.msk.f32.gmra.mxu0 %vm536_vm1, %v2945_v24 }
  0xc0   : > { %2526 = vmatmul.msk.f32.gmra.mxu1 %vm536_vm1, %v3353_v20 }
  0xc1   : > { %2559 = vmatmul.msk.f32.gmra.mxu2 %vm536_vm1, %v3398_v29  ;;  %v3423_v29 = vsel %vm912_vm3, %v933_v49, %v934_v36  ;;  %v480_v36 = vrot.slane %v2996_v53, 7 }
  0xc2   : > { %2592 = vmatmul.msk.f32.gmra.mxu3 %vm536_vm1, %v3401_v43  ;;  %4376 = vst [vmem:[#allocation55_spill] sm:$0xff] %v3423_v29 }
  0xc4   : > { %v3416_v1 = vpop.f32.mrf.mxu2  ;;  %v3428_v9 = vpop.f32.mrf.mxu0 }
  0xc5   : > { %4374 = vst [vmem:[#allocation53_spill] sm:$0xff] %v3416_v1  ;;  %v3418_v4 = vpop.f32.mrf.mxu3  ;;  %v3420_v20 = vpop.f32.mrf.mxu1 }
  0xc6   : > { %4375 = vst [vmem:[#allocation54_spill] sm:$0xff] %v3418_v4  ;;  %v478_v4 = vrot.slane %v2968_v37, 7 }
  0xc7   : > { %2627 = vmatmul.msk.f32.gmra.mxu0 %vm536_vm1, %v2968_v37 }
  0xc8   : > { %2527 = vmatmul.msk.f32.gmra.mxu1 %vm536_vm1, %v3378_v52  ;;  %v3449_v52 = vsel %vm453_vm2, %v477_v6, %v478_v4 }
  0xc9   : > { %2560 = vmatmul.msk.f32.gmra.mxu2 %vm536_vm1, %v3423_v29 }
  0xca   : > { %2593 = vmatmul.msk.f32.gmra.mxu3 %vm536_vm1, %v3426_v17 }
  0xcc   : > { %v3439_v49 = vpop.f32.mrf.mxu2  ;;  %v1410_v29 = vpop.f32.mrf.mxu0 }
  0xcd   : > { %4378 = vst [vmem:[#allocation57_spill] sm:$0xff] %v3439_v49  ;;  %v3441_v2 = vpop.f32.mrf.mxu3  ;;  %v3443_v1 = vpop.f32.mrf.mxu1  ;;  %v937_v49 = vrot.slane %v2968_v37, 1 }
  0xce   : > { %4379 = vst [vmem:[#allocation58_spill] sm:$0xff] %v3441_v2  ;;  %v936_v2 = vrot.slane %v2945_v24, 1 }
  0xcf   : > { %2628 = vmatmul.msk.f32.gmra.mxu0 %vm536_vm1, %v2996_v53  ;;  %v3483_v35 = vsel %vm912_vm3, %v937_v49, 0.0 }
  0xd0   : > { %2528 = vmatmul.msk.f32.gmra.mxu1 %vm536_vm1, %v3401_v43  ;;  %v3467_v38 = vsel %vm912_vm3, %v936_v2, %v937_v49 }
  0xd1   : > { %2561 = vmatmul.msk.f32.gmra.mxu2 %vm536_vm1, %v3446_v51  ;;  %4383 = vst [vmem:[#allocation62_spill] sm:$0xff] %v3467_v38  ;;  %v3470_v51 = vsel %vm453_vm2, 0.0, %v480_v36 }
  0xd2   : > { %2594 = vmatmul.msk.f32.gmra.mxu3 %vm536_vm1, %v3449_v52 }
  0xd4   : > { %v3462_v6 = vpop.f32.mrf.mxu2  ;;  %v1413_v23 = vpop.f32.mrf.mxu0 }
  0xd5   : > { %4381 = vst [vmem:[#allocation60_spill] sm:$0xff] %v3462_v6  ;;  %v3464_v4 = vpop.f32.mrf.mxu3  ;;  %v816_v43 = vpop.f32.mrf.mxu1 }
  0xd6   : > { %4382 = vst [vmem:[#allocation61_spill] sm:$0xff] %v3464_v4  ;;  %v817_v37 = vadd.f32 %v816_v43, %v3263_v19  ;;  %v481_v4 = vrot.slane %v3024_v7, 7  ;;  %v940_v19 = vrot.slane %v3024_v7, 1  ;;  %v483_v43 = vrot.slane %v3052_v27, 7 }
  0xd7   : > { %2629 = vmatmul.msk.f32.gmra.mxu0 %vm536_vm1, %v3024_v7 }
  0xd8   : > { %2529 = vmatmul.msk.f32.gmra.mxu1 %vm536_vm1, %v3426_v17 }
  0xd9   : > { %2562 = vmatmul.msk.f32.gmra.mxu2 %vm536_vm1, %v3467_v38  ;;  %v3486_v38 = vsel %vm453_vm2, %v480_v36, %v481_v4 }
  0xda   : > { %2595 = vmatmul.msk.f32.gmra.mxu3 %vm536_vm1, %v3470_v51 }
  0xdc   : > { %v1094_v2 = vpop.f32.mrf.mxu2  ;;  %v1416_v3 = vpop.f32.mrf.mxu0 }
  0xdd   : > { %v1190_v24 = vadd.f32 %v1094_v2, %v817_v37  ;;  %v1256_v6 = vpop.f32.mrf.mxu3  ;;  %v819_v8 = vpop.f32.mrf.mxu1  ;;  %v939_v37 = vrot.slane %v2996_v53, 1  ;;  %v3506_v2 = vsel %vm453_vm2, 0.0, %v483_v43 }
  0xdf   : > { %v1352_v17 = vadd.f32 %v1256_v6, %v1190_v24  ;;  %v820_v24 = vadd.f32 %v819_v8, %v3284_v41  ;;  %2630 = vmatmul.msk.f32.gmra.mxu0 %vm536_vm1, %v3052_v27  ;;  %v3503_v6 = vsel %vm912_vm3, %v939_v37, %v940_v19  ;;  %v484_v41 = vrot.slane %v3083_v50, 7 }
  0xe0   : > { %2530 = vmatmul.msk.f32.gmra.mxu1 %vm536_vm1, %v3449_v52 }
  0xe1   : > { %v3488_v18 = vadd.f32 %v1410_v29, %v1352_v17  ;;  %2563 = vmatmul.msk.f32.gmra.mxu2 %vm536_vm1, %v3483_v35 }
  0xe2   : > { %2596 = vmatmul.msk.f32.gmra.mxu3 %vm536_vm1, %v3486_v38 }
  0xe3   : > { %4384 = vst [vmem:[#allocation63_spill] sm:$0xff] %v3488_v18 }
  0xe4   : > { %v1097_v17 = vpop.f32.mrf.mxu2  ;;  %v1419_v18 = vpop.f32.mrf.mxu0 }
  0xe5   : > { %v1191_v29 = vadd.f32 %v1097_v17, %v820_v24  ;;  %v1259_v49 = vpop.f32.mrf.mxu3  ;;  %v822_v36 = vpop.f32.mrf.mxu1 }
  0xe6   : > { %v823_v8 = vadd.f32 %v822_v36, %v3307_v61  ;;  %v942_v61 = vrot.slane %v3052_v27, 1 }
  0xe7   : > { %v1353_v4 = vadd.f32 %v1259_v49, %v1191_v29  ;;  %2631 = vmatmul.msk.f32.gmra.mxu0 %vm536_vm1, %v3083_v50  ;;  %v3521_v29 = vsel %vm912_vm3, %v940_v19, 0.0  ;;  %v943_v19 = vrot.slane %v3083_v50, 1 }
  0xe8   : > { %2531 = vmatmul.msk.f32.gmra.mxu1 %vm536_vm1, %v3470_v51 }
  0xe9   : > { %v3508_v7 = vadd.f32 %v1413_v23, %v1353_v4  ;;  %2564 = vmatmul.msk.f32.gmra.mxu2 %vm536_vm1, %v3503_v6  ;;  %v3524_v4 = vsel %vm453_vm2, %v483_v43, %v484_v41  ;;  %v486_v43 = vrot.slane %v3111_v11, 7 }
  0xea   : > { %2597 = vmatmul.msk.f32.gmra.mxu3 %vm536_vm1, %v3506_v2 }
  0xeb   : > { %4385 = vst [vmem:[#allocation64_spill] sm:$0xff] %v3508_v7 }
  0xec   : > { %v1100_v37 = vpop.f32.mrf.mxu2  ;;  %v1422_v7 = vpop.f32.mrf.mxu0 }
  0xed   : > { %v1192_v24 = vadd.f32 %v1100_v37, %v823_v8  ;;  %v1262_v23 = vpop.f32.mrf.mxu3  ;;  %v825_v17 = vpop.f32.mrf.mxu1 }
  0xee   : > { %v826_v36 = vadd.f32 %v825_v17, %v3332_v13  ;;  %v487_v17 = vrot.slane %v3133_v22, 7 }
  0xef   : > { %v1354_v49 = vadd.f32 %v1262_v23, %v1192_v24  ;;  %2632 = vmatmul.msk.f32.gmra.mxu0 %vm536_vm1, %v3111_v11  ;;  %v3541_v24 = vsel %vm912_vm3, %v942_v61, %v943_v19 }
  0xf0   : > { %2532 = vmatmul.msk.f32.gmra.mxu1 %vm536_vm1, %v3486_v38 }
  0xf1   : > { %v3526_v53 = vadd.f32 %v1416_v3, %v1354_v49  ;;  %2565 = vmatmul.msk.f32.gmra.mxu2 %vm536_vm1, %v3521_v29  ;;  %v3544_v49 = vsel %vm453_vm2, 0.0, %v486_v43 }
  0xf2   : > { %2598 = vmatmul.msk.f32.gmra.mxu3 %vm536_vm1, %v3524_v4 }
  0xf3   : > { %4386 = vst [vmem:[#allocation65_spill] sm:$0xff] %v3526_v53 }
  0xf4   : > { %v1103_v3 = vpop.f32.mrf.mxu2  ;;  %v1425_v53 = vpop.f32.mrf.mxu0 }
  0xf5   : > { %v1193_v8 = vadd.f32 %v1103_v3, %v826_v36  ;;  %v1265_v41 = vpop.f32.mrf.mxu3  ;;  %v828_v37 = vpop.f32.mrf.mxu1 }
  0xf6   : > { %v829_v13 = vadd.f32 %v828_v37, %v3355_v42  ;;  %v945_v42 = vrot.slane %v3111_v11, 1 }
  0xf7   : > { %v1355_v23 = vadd.f32 %v1265_v41, %v1193_v8  ;;  %2633 = vmatmul.msk.f32.gmra.mxu0 %vm536_vm1, %v3133_v22  ;;  %v3559_v8 = vsel %vm912_vm3, %v943_v19, 0.0  ;;  %v946_v19 = vrot.slane %v3133_v22, 1 }
  0xf8   : > { %2533 = vmatmul.msk.f32.gmra.mxu1 %vm536_vm1, %v3506_v2 }
  0xf9   : > { %v3546_v50 = vadd.f32 %v1419_v18, %v1355_v23  ;;  %2566 = vmatmul.msk.f32.gmra.mxu2 %vm536_vm1, %v3541_v24  ;;  %v3562_v23 = vsel %vm453_vm2, %v486_v43, %v487_v17  ;;  %v489_v43 = vrot.slane %v2947_v25, 7 }
  0xfa   : > { %2599 = vmatmul.msk.f32.gmra.mxu3 %vm536_vm1, %v3544_v49 }
  0xfb   : > { %4387 = vst [vmem:[#allocation66_spill] sm:$0xff] %v3546_v50 }
  0xfc   : > { %v1106_v61 = vpop.f32.mrf.mxu2  ;;  %v1428_v50 = vpop.f32.mrf.mxu0 }
  0xfd   : > { %v1194_v36 = vadd.f32 %v1106_v61, %v829_v13  ;;  %v1268_v18 = vpop.f32.mrf.mxu3  ;;  %v831_v3 = vpop.f32.mrf.mxu1 }
  0xfe   : > { %v832_v37 = vadd.f32 %v831_v3, %v3380_v26  ;;  %v490_v3 = vrot.slane %v2972_v40, 7 }
  0xff   : > { %v1356_v41 = vadd.f32 %v1268_v18, %v1194_v36  ;;  %2634 = vmatmul.msk.f32.gmra.mxu0 %vm536_vm1, %v2947_v25  ;;  %v3579_v36 = vsel %vm912_vm3, %v945_v42, %v946_v19 }
 0x100   : > { %2534 = vmatmul.msk.f32.gmra.mxu1 %vm536_vm1, %v3524_v4 }
 0x101   : > { %v3564_v27 = vadd.f32 %v1422_v7, %v1356_v41  ;;  %2567 = vmatmul.msk.f32.gmra.mxu2 %vm536_vm1, %v3559_v8  ;;  %v3582_v41 = vsel %vm453_vm2, 0.0, %v489_v43 }
 0x102   : > { %2600 = vmatmul.msk.f32.gmra.mxu3 %vm536_vm1, %v3562_v23 }
 0x103   : > { %4388 = vst [vmem:[#allocation67_spill] sm:$0xff] %v3564_v27 }
 0x104   : > { %v1109_v7 = vpop.f32.mrf.mxu2  ;;  %v1431_v27 = vpop.f32.mrf.mxu0 }
 0x105   : > { %v1195_v13 = vadd.f32 %v1109_v7, %v832_v37  ;;  %v1271_v17 = vpop.f32.mrf.mxu3  ;;  %v834_v61 = vpop.f32.mrf.mxu1 }
 0x106   : > { %v835_v26 = vadd.f32 %v834_v61, %v3403_v31  ;;  %v948_v31 = vrot.slane %v2947_v25, 1 }
 0x107   : > { %v1357_v18 = vadd.f32 %v1271_v17, %v1195_v13  ;;  %2635 = vmatmul.msk.f32.gmra.mxu0 %vm536_vm1, %v2972_v40  ;;  %v3597_v13 = vsel %vm912_vm3, %v946_v19, 0.0  ;;  %v949_v19 = vrot.slane %v2972_v40, 1 }
 0x108   : > { %2535 = vmatmul.msk.f32.gmra.mxu1 %vm536_vm1, %v3544_v49 }
 0x109   : > { %v3584_v22 = vadd.f32 %v1425_v53, %v1357_v18  ;;  %2568 = vmatmul.msk.f32.gmra.mxu2 %vm536_vm1, %v3579_v36  ;;  %v3600_v18 = vsel %vm453_vm2, %v489_v43, %v490_v3  ;;  %v492_v43 = vrot.slane %v3000_v56, 7 }
 0x10a   : > { %2601 = vmatmul.msk.f32.gmra.mxu3 %vm536_vm1, %v3582_v41 }
 0x10b   : > { %4389 = vst [vmem:[#allocation68_spill] sm:$0xff] %v3584_v22 }
 0x10c   : > { %v1112_v42 = vpop.f32.mrf.mxu2  ;;  %v1434_v22 = vpop.f32.mrf.mxu0 }
 0x10d   : > { %v1196_v37 = vadd.f32 %v1112_v42, %v835_v26  ;;  %v1274_v53 = vpop.f32.mrf.mxu3  ;;  %v837_v7 = vpop.f32.mrf.mxu1 }
 0x10e   : > { %v838_v61 = vadd.f32 %v837_v7, %v3428_v9  ;;  %v493_v7 = vrot.slane %v3028_v10, 7 }
 0x10f   : > { %v1358_v17 = vadd.f32 %v1274_v53, %v1196_v37  ;;  %2636 = vmatmul.msk.f32.gmra.mxu0 %vm536_vm1, %v3000_v56  ;;  %v3617_v37 = vsel %vm912_vm3, %v948_v31, %v949_v19 }
 0x110   : > { %2536 = vmatmul.msk.f32.gmra.mxu1 %vm536_vm1, %v3562_v23 }
 0x111   : > { %v3602_v11 = vadd.f32 %v1428_v50, %v1358_v17  ;;  %2569 = vmatmul.msk.f32.gmra.mxu2 %vm536_vm1, %v3597_v13  ;;  %v3620_v17 = vsel %vm453_vm2, 0.0, %v492_v43 }
 0x112   : > { %2602 = vmatmul.msk.f32.gmra.mxu3 %vm536_vm1, %v3600_v18 }
 0x113   : > { %4390 = vst [vmem:[#allocation69_spill] sm:$0xff] %v3602_v11 }
 0x114   : > { %v1115_v50 = vpop.f32.mrf.mxu2  ;;  %v1437_v11 = vpop.f32.mrf.mxu0 }
 0x115   : > { %v1197_v26 = vadd.f32 %v1115_v50, %v838_v61  ;;  %v1277_v3 = vpop.f32.mrf.mxu3  ;;  %v840_v42 = vpop.f32.mrf.mxu1 }
 0x116   : > { %v841_v9 = vadd.f32 %v840_v42, %v3276_v34  ;;  %v951_v34 = vrot.slane %v3000_v56, 1 }
 0x117   : > { %v1359_v53 = vadd.f32 %v1277_v3, %v1197_v26  ;;  %2637 = vmatmul.msk.f32.gmra.mxu0 %vm536_vm1, %v3028_v10  ;;  %v3635_v26 = vsel %vm912_vm3, %v949_v19, 0.0  ;;  %v952_v19 = vrot.slane %v3028_v10, 1 }
 0x118   : > { %2537 = vmatmul.msk.f32.gmra.mxu1 %vm536_vm1, %v3582_v41 }
 0x119   : > { %v3622_v40 = vadd.f32 %v1431_v27, %v1359_v53  ;;  %2570 = vmatmul.msk.f32.gmra.mxu2 %vm536_vm1, %v3617_v37  ;;  %v3638_v53 = vsel %vm453_vm2, %v492_v43, %v493_v7  ;;  %v495_v43 = vrot.slane %v3056_v30, 7 }
 0x11a   : > { %2603 = vmatmul.msk.f32.gmra.mxu3 %vm536_vm1, %v3620_v17  ;;  %4392 = vst [vmem:[#allocation71_spill] sm:$0xff] %v3638_v53 }
 0x11b   : > { %4391 = vst [vmem:[#allocation70_spill] sm:$0xff] %v3622_v40 }
 0x11c   : > { %v1118_v31 = vpop.f32.mrf.mxu2  ;;  %v1440_v40 = vpop.f32.mrf.mxu0 }
 0x11d   : > { %v1198_v61 = vadd.f32 %v1118_v31, %v841_v9  ;;  %v1280_v27 = vpop.f32.mrf.mxu3  ;;  %v843_v50 = vpop.f32.mrf.mxu1 }
 0x11e   : > { %v844_v42 = vadd.f32 %v843_v50, %v3299_v48  ;;  %v496_v50 = vrot.slane %v3087_v55, 7 }
 0x11f   : > { %v1360_v3 = vadd.f32 %v1280_v27, %v1198_v61  ;;  %2638 = vmatmul.msk.f32.gmra.mxu0 %vm536_vm1, %v3056_v30  ;;  %v3655_v61 = vsel %vm912_vm3, %v951_v34, %v952_v19 }
 0x120   : > { %2538 = vmatmul.msk.f32.gmra.mxu1 %vm536_vm1, %v3600_v18 }
 0x121   : > { %v3640_v25 = vadd.f32 %v1434_v22, %v1360_v3  ;;  %2571 = vmatmul.msk.f32.gmra.mxu2 %vm536_vm1, %v3635_v26  ;;  %v3658_v3 = vsel %vm453_vm2, 0.0, %v495_v43 }
 0x122   : > { %2604 = vmatmul.msk.f32.gmra.mxu3 %vm536_vm1, %v3638_v53  ;;  %4394 = vst [vmem:[#allocation73_spill] sm:$0xff] %v3658_v3 }
 0x123   : > { %4393 = vst [vmem:[#allocation72_spill] sm:$0xff] %v3640_v25 }
 0x124   : > { %v1121_v22 = vpop.f32.mrf.mxu2  ;;  %v1443_v25 = vpop.f32.mrf.mxu0 }
 0x125   : > { %v1199_v9 = vadd.f32 %v1121_v22, %v844_v42  ;;  %v1283_v7 = vpop.f32.mrf.mxu3  ;;  %v846_v31 = vpop.f32.mrf.mxu1 }
 0x126   : > { %v847_v48 = vadd.f32 %v846_v31, %v3324_v21  ;;  %v954_v21 = vrot.slane %v3056_v30, 1 }
 0x127   : > { %v1361_v27 = vadd.f32 %v1283_v7, %v1199_v9  ;;  %2639 = vmatmul.msk.f32.gmra.mxu0 %vm536_vm1, %v3087_v55  ;;  %v3673_v9 = vsel %vm912_vm3, %v952_v19, 0.0  ;;  %v955_v19 = vrot.slane %v3087_v55, 1 }
 0x128   : > { %2539 = vmatmul.msk.f32.gmra.mxu1 %vm536_vm1, %v3620_v17  ;;  %4396 = vst [vmem:[#allocation75_spill] sm:$0xff] %v3673_v9 }
 0x129   : > { %v3660_v10 = vadd.f32 %v1437_v11, %v1361_v27  ;;  %2572 = vmatmul.msk.f32.gmra.mxu2 %vm536_vm1, %v3655_v61  ;;  %v3676_v27 = vsel %vm453_vm2, %v495_v43, %v496_v50  ;;  %v498_v43 = vrot.slane %v3115_v16, 7 }
 0x12a   : > { %2605 = vmatmul.msk.f32.gmra.mxu3 %vm536_vm1, %v3658_v3 }
 0x12b   : > { %4395 = vst [vmem:[#allocation74_spill] sm:$0xff] %v3660_v10 }
 0x12c   : > { %v1124_v34 = vpop.f32.mrf.mxu2  ;;  %v1446_v10 = vpop.f32.mrf.mxu0 }
 0x12d   : > { %v1200_v42 = vadd.f32 %v1124_v34, %v847_v48  ;;  %v1286_v11 = vpop.f32.mrf.mxu3  ;;  %v849_v22 = vpop.f32.mrf.mxu1  ;;  %v316_v48 = vld [vmem:[%s2907_s9 + $0xf0] sm:$0xff] }
 0x12e   : > { %v850_v31 = vadd.f32 %v849_v22, %v3347_v33  ;;  %v2805_v33 = vld [vmem:[%s4259_s2] ss:$0 sm:$0xff] }
 0x12f   : > { %v1362_v7 = vadd.f32 %v1286_v11, %v1200_v42  ;;  %2640 = vmatmul.msk.f32.gmra.mxu0 %vm536_vm1, %v3115_v16  ;;  %v3694_v11 = vsel %vm912_vm3, %v954_v21, %v955_v19  ;;  %v352_v22 = vmul.f32 %v2805_v33, %v316_v48 }
 0x130   : > { %2540 = vmatmul.msk.f32.gmra.mxu1 %vm536_vm1, %v3638_v53  ;;  %4398 = vst [vmem:[#allocation77_spill] sm:$0xff] %v3694_v11 }
 0x131   : > { %v3678_v56 = vadd.f32 %v1440_v40, %v1362_v7  ;;  %2573 = vmatmul.msk.f32.gmra.mxu2 %vm536_vm1, %v3673_v9 }
 0x132   : > { %2606 = vmatmul.msk.f32.gmra.mxu3 %vm536_vm1, %v3676_v27 }
 0x133   : > { %4397 = vst [vmem:[#allocation76_spill] sm:$0xff] %v3678_v56  ;;  %v3697_v56 = vsel %vm453_vm2, 0.0, %v498_v43 }
 0x134   : > { %v1127_v40 = vpop.f32.mrf.mxu2  ;;  %v1449_v55 = vpop.f32.mrf.mxu0 }
 0x135   : > { %v1201_v50 = vadd.f32 %v1127_v40, %v850_v31  ;;  %v1289_v34 = vpop.f32.mrf.mxu3  ;;  %v852_v42 = vpop.f32.mrf.mxu1  ;;  %v499_v31 = vrot.slane %v3135_v28, 7  ;;  %v2806_v40 = vld [vmem:[%s4260_s3] ss:$0 sm:$0xff] }
 0x136   : > { %v853_v21 = vadd.f32 %v852_v42, %v3372_v54  ;;  %v388_v48 = vadd.f32 %v2806_v40, %v352_v22 }
 0x137   : > { %v1363_v7 = vadd.f32 %v1289_v34, %v1201_v50  ;;  %2641 = vmatmul.msk.f32.gmra.mxu0 %vm536_vm1, %v3135_v28  ;;  %v317_v50 = vld [vmem:[%s2907_s9 + $0xf8] sm:$0xff]  ;;  %v3722_v54 = vsel %vm453_vm2, %v498_v43, %v499_v31  ;;  %v958_v43 = vrot.slane %v3135_v28, 1 }
 0x138   : > { %2541 = vmatmul.msk.f32.gmra.mxu1 %vm536_vm1, %v3658_v3  ;;  %v3719_v3 = vsel %vm912_vm3, %v955_v19, 0.0  ;;  %v3724_v42 = vmax.f32 %v388_v48, 0.0  ;;  %v353_v53 = vmul.f32 %v2805_v33, %v317_v50  ;;  %v957_v19 = vrot.slane %v3115_v16, 1 }
 0x139   : > { %v3702_v30 = vadd.f32 %v1443_v25, %v1363_v7  ;;  %2574 = vmatmul.msk.f32.gmra.mxu2 %vm536_vm1, %v3694_v11 }
 0x13a   : > { %2607 = vmatmul.msk.f32.gmra.mxu3 %vm536_vm1, %v3697_v56  ;;  %v1224_v33 = vrot.slane %v3724_v42, 7  ;;  %v389_v31 = vadd.f32 %v2806_v40, %v353_v53  ;;  %v3741_v50 = vsel %vm912_vm3, %v957_v19, %v958_v43 }
 0x13b   : > { %4399 = vst [vmem:[#allocation78_spill] sm:$0xff] %v3702_v30 }
 0x13c   : > { %v1130_v25 = vpop.f32.mrf.mxu2  ;;  %v1452_v9 = vpop.f32.mrf.mxu0 }
 0x13d   : > { %v1202_v34 = vadd.f32 %v1130_v25, %v853_v21  ;;  %v1292_v7 = vpop.f32.mrf.mxu3  ;;  %v855_v30 = vpop.f32.mrf.mxu1 }
 0x13e   : > { %v856_v21 = vadd.f32 %v855_v30, %v3395_v39 }
 0x13f   : > { %v1364_v11 = vadd.f32 %v1292_v7, %v1202_v34  ;;  %2642 = vmatmul.msk.f32.gmra.mxu0 %vm536_vm1, %v3724_v42  ;;  %v3744_v7 = vsel %vm453_vm2, 0.0, %v1224_v33 }
 0x140   : > { %2542 = vmatmul.msk.f32.gmra.mxu1 %vm536_vm1, %v3676_v27 }
 0x141   : > { %v3726_v22 = vadd.f32 %v1446_v10, %v1364_v11  ;;  %2575 = vmatmul.msk.f32.gmra.mxu2 %vm536_vm1, %v3719_v3 }
 0x142   : > { %2608 = vmatmul.msk.f32.gmra.mxu3 %vm536_vm1, %v3722_v54 }
 0x143   : > { %4400 = vst [vmem:[#allocation79_spill] sm:$0xff] %v3726_v22  ;;  %v3746_v22 = vmax.f32 %v389_v31, 0.0 }
 0x144   : > { %v1133_v10 = vpop.f32.mrf.mxu2  ;;  %v1455_v30 = vpop.f32.mrf.mxu0 }
 0x145   : > { %v1203_v11 = vadd.f32 %v1133_v10, %v856_v21  ;;  %v1295_v48 = vpop.f32.mrf.mxu3  ;;  %v858_v25 = vpop.f32.mrf.mxu1  ;;  %v1225_v40 = vrot.slane %v3746_v22, 7  ;;  %v3761_v10 = vsel %vm912_vm3, %v958_v43, 0.0 }
 0x146   : > { %v859_v53 = vadd.f32 %v858_v25, %v3420_v20 }
 0x147   : > { %v1365_v34 = vadd.f32 %v1295_v48, %v1203_v11  ;;  %2643 = vmatmul.msk.f32.gmra.mxu0 %vm536_vm1, %v3746_v22  ;;  %v3764_v48 = vsel %vm453_vm2, %v1224_v33, %v1225_v40 }
 0x148   : > { %2543 = vmatmul.msk.f32.gmra.mxu1 %vm536_vm1, %v3697_v56 }
 0x149   : > { %v3748_v39 = vadd.f32 %v1449_v55, %v1365_v34  ;;  %2576 = vmatmul.msk.f32.gmra.mxu2 %vm536_vm1, %v3741_v50 }
 0x14a   : > { %2609 = vmatmul.msk.f32.gmra.mxu3 %vm536_vm1, %v3744_v7 }
 0x14b   : > { %4401 = vst [vmem:[#allocation80_spill] sm:$0xff] %v3748_v39 }
 0x14c   : > { %v1136_v19 = vpop.f32.mrf.mxu2  ;;  %v1458_v34 = vpop.f32.mrf.mxu0 }
 0x14d   : > { %v1204_v21 = vadd.f32 %v1136_v19, %v859_v53  ;;  %v1298_v55 = vpop.f32.mrf.mxu3  ;;  %v861_v31 = vpop.f32.mrf.mxu1 }
 0x14e   : > { %v862_v20 = vadd.f32 %v861_v31, %v3443_v1 }
 0x14f   : > { %v1366_v11 = vadd.f32 %v1298_v55, %v1204_v21  ;;  %2742 = vmatmul.msk.f32.vlgmr.msra.gmra.mxu0 %vm536_vm1, %v3211_v57 }
 0x150   : > { %2544 = vmatmul.msk.f32.gmra.mxu1 %vm536_vm1, %v3722_v54 }
 0x151   : > { %v3766_v39 = vadd.f32 %v1452_v9, %v1366_v11  ;;  %2577 = vmatmul.msk.f32.gmra.mxu2 %vm536_vm1, %v3761_v10 }
 0x152   : > { %2610 = vmatmul.msk.f32.gmra.mxu3 %vm536_vm1, %v3764_v48 }
 0x154   : > { %v1139_v43 = vpop.f32.mrf.mxu2  ;;  %v1461_v40 = vpop.f32.mrf.mxu0 }
 0x155   : > { %v1205_v33 = vadd.f32 %v1139_v43, %v862_v20  ;;  %v1301_v25 = vpop.f32.mrf.mxu3  ;;  %v864_v53 = vpop.f32.mrf.mxu1 }
 0x156   : > { %v865_v1 = vadd.f32 %v864_v53, %v3295_v44 }
 0x157   : > { %v1367_v9 = vadd.f32 %v1301_v25, %v1205_v33  ;;  %2743 = vmatmul.msk.f32.gmra.mxu0 %vm536_vm1, %v3226_v62 }
 0x158   : > { %2645 = vmatmul.msk.f32.vlgmr.msra.gmra.mxu1 %vm536_vm1, %v3181_v45 }
 0x159   : > { %v3777_v19 = vadd.f32 %v1455_v30, %v1367_v9  ;;  %2678 = vmatmul.msk.f32.vlgmr.msra.gmra.mxu2 %vm536_vm1, %v3184_v46 }
 0x15a   : > { %2711 = vmatmul.msk.f32.vlgmr.msra.gmra.mxu3 %vm536_vm1, %v3031_v12 }
 0x15c   : > { %v1142_v21 = vpop.f32.mrf.mxu2  ;;  %v1464_v20 = vpop.f32.mrf.mxu0 }
 0x15d   : > { %v1206_v55 = vadd.f32 %v1142_v21, %v865_v1  ;;  %v1304_v31 = vpop.f32.mrf.mxu3  ;;  %v867_v11 = vpop.f32.mrf.mxu1 }
 0x15e   : > { %v868_v12 = vadd.f32 %v867_v11, %v3320_v14 }
 0x15f   : > { %v1368_v30 = vadd.f32 %v1304_v31, %v1206_v55  ;;  %2744 = vmatmul.msk.f32.gmra.mxu0 %vm536_vm1, %v3243_v5 }
 0x160   : > { %2646 = vmatmul.msk.f32.gmra.mxu1 %vm536_vm1, %v3195_v58 }
 0x161   : > { %v3788_v43 = vadd.f32 %v1458_v34, %v1368_v30  ;;  %2679 = vmatmul.msk.f32.gmra.mxu2 %vm536_vm1, %v3198_v47 }
 0x162   : > { %2712 = vmatmul.msk.f32.gmra.mxu3 %vm536_vm1, %v3059_v32 }
 0x164   : > { %v1145_v45 = vpop.f32.mrf.mxu2  ;;  %v1467_v25 = vpop.f32.mrf.mxu0 }
 0x165   : > { %v1207_v46 = vadd.f32 %v1145_v45, %v868_v12  ;;  %v1307_v44 = vpop.f32.mrf.mxu3  ;;  %v870_v33 = vpop.f32.mrf.mxu1 }
 0x166   : > { %v871_v32 = vadd.f32 %v870_v33, %v3343_v0  ;;  %v4404_v0 = vld [vmem:[#allocation34_spill] sm:$0xff]  ;;  %v4408_v33 = vld [vmem:[#allocation37_spill] sm:$0xff] }
 0x167   : > { %v1369_v34 = vadd.f32 %v1307_v44, %v1207_v46  ;;  %2745 = vmatmul.msk.f32.gmra.mxu0 %vm536_vm1, %v3258_v15  ;;  %v4407_v46 = vld [vmem:[#allocation49_spill] sm:$0xff] }
 0x168   : > { %2647 = vmatmul.msk.f32.gmra.mxu1 %vm536_vm1, %v3211_v57  ;;  %v4403_v57 = vld [vmem:[#allocation45_spill] sm:$0xff] }
 0x169   : > { %v3799_v53 = vadd.f32 %v1461_v40, %v1369_v34  ;;  %2680 = vmatmul.msk.f32.gmra.mxu2 %vm536_vm1, %v3214_v60 }
 0x16a   : > { %2713 = vmatmul.msk.f32.gmra.mxu3 %vm536_vm1, %v3090_v59  ;;  %v4402_v59 = vld [vmem:[#allocation25_spill] sm:$0xff] }
 0x16c   : > { %v1148_v58 = vpop.f32.mrf.mxu2  ;;  %v1470_v1 = vpop.f32.mrf.mxu0 }
 0x16d   : > { %v1208_v47 = vadd.f32 %v1148_v58, %v871_v32  ;;  %v1310_v14 = vpop.f32.mrf.mxu3  ;;  %v873_v9 = vpop.f32.mrf.mxu1 }
 0x16e   : > { %v874_v60 = vadd.f32 %v873_v9, %v4403_v57 }
 0x16f   : > { %v1370_v40 = vadd.f32 %v1310_v14, %v1208_v47  ;;  %2746 = vmatmul.msk.f32.gmra.mxu0 %vm536_vm1, %v4404_v0 }
 0x170   : > { %2648 = vmatmul.msk.f32.gmra.mxu1 %vm536_vm1, %v3226_v62  ;;  %v4405_v62 = vld [vmem:[#allocation32_spill] sm:$0xff] }
 0x171   : > { %v3810_v21 = vadd.f32 %v1464_v20, %v1370_v40  ;;  %2681 = vmatmul.msk.f32.gmra.mxu2 %vm536_vm1, %v3229_v63  ;;  %v4406_v63 = vld [vmem:[#allocation5_spill] sm:$0xff]  ;;  %v4410_v40 = vld [vmem:[#allocation8_spill] sm:$0xff] }
 0x172   : > { %2714 = vmatmul.msk.f32.gmra.mxu3 %vm536_vm1, %v4402_v59  ;;  %v4411_v59 = vld [vmem:[#allocation53_spill] sm:$0xff] }
 0x174   : > { %v1151_v55 = vpop.f32.mrf.mxu2  ;;  %v1473_v12 = vpop.f32.mrf.mxu0 }
 0x175   : > { %v1209_v31 = vadd.f32 %v1151_v55, %v874_v60  ;;  %v1313_v11 = vpop.f32.mrf.mxu3  ;;  %v876_v30 = vpop.f32.mrf.mxu1  ;;  %v4412_v60 = vld [vmem:[#allocation40_spill] sm:$0xff] }
 0x176   : > { %v877_v44 = vadd.f32 %v876_v30, %v4407_v46  ;;  %v4415_v46 = vld [vmem:[#allocation57_spill] sm:$0xff] }
 0x177   : > { %v1371_v20 = vadd.f32 %v1313_v11, %v1209_v31  ;;  %2747 = vmatmul.msk.f32.gmra.mxu0 %vm536_vm1, %v4408_v33 }
 0x178   : > { %2649 = vmatmul.msk.f32.gmra.mxu1 %vm536_vm1, %v3243_v5  ;;  %v4409_v5 = vld [vmem:[#allocation33_spill] sm:$0xff] }
 0x179   : > { %v3821_v45 = vadd.f32 %v1467_v25, %v1371_v20  ;;  %2682 = vmatmul.msk.f32.gmra.mxu2 %vm536_vm1, %v4405_v62 }
 0x17a   : > { %2715 = vmatmul.msk.f32.gmra.mxu3 %vm536_vm1, %v4406_v63  ;;  %v4414_v63 = vld [vmem:[#allocation11_spill] sm:$0xff] }
 0x17c   : > { %v1154_v34 = vpop.f32.mrf.mxu2  ;;  %v1476_v14 = vpop.f32.mrf.mxu0 }
 0x17d   : > { %v1210_v32 = vadd.f32 %v1154_v34, %v877_v44  ;;  %v1316_v58 = vpop.f32.mrf.mxu3  ;;  %v879_v47 = vpop.f32.mrf.mxu1  ;;  %v4416_v34 = vld [vmem:[#allocation43_spill] sm:$0xff] }
 0x17e   : > { %v880_v57 = vadd.f32 %v879_v47, %v4411_v59  ;;  %v4418_v59 = vld [vmem:[#allocation14_spill] sm:$0xff] }
 0x17f   : > { %v1372_v25 = vadd.f32 %v1316_v58, %v1210_v32  ;;  %2748 = vmatmul.msk.f32.gmra.mxu0 %vm536_vm1, %v4412_v60 }
 0x180   : > { %2650 = vmatmul.msk.f32.gmra.mxu1 %vm536_vm1, %v3258_v15  ;;  %v4413_v15 = vld [vmem:[#allocation35_spill] sm:$0xff] }
 0x181   : > { %v3832_v9 = vadd.f32 %v1470_v1, %v1372_v25  ;;  %2683 = vmatmul.msk.f32.gmra.mxu2 %vm536_vm1, %v4409_v5 }
 0x182   : > { %2716 = vmatmul.msk.f32.gmra.mxu3 %vm536_vm1, %v4410_v40 }
 0x184   : > { %v1157_v55 = vpop.f32.mrf.mxu2  ;;  %v1479_v20 = vpop.f32.mrf.mxu0 }
 0x185   : > { %v1211_v31 = vadd.f32 %v1157_v55, %v880_v57  ;;  %v1319_v11 = vpop.f32.mrf.mxu3  ;;  %v882_v30 = vpop.f32.mrf.mxu1  ;;  %v4419_v57 = vld [vmem:[#allocation60_spill] sm:$0xff] }
 0x186   : > { %v883_v44 = vadd.f32 %v882_v30, %v4415_v46 }
 0x187   : > { %v1373_v1 = vadd.f32 %v1319_v11, %v1211_v31  ;;  %2749 = vmatmul.msk.f32.gmra.mxu0 %vm536_vm1, %v4416_v34  ;;  %v4420_v31 = vld [vmem:[#allocation47_spill] sm:$0xff] }
 0x188   : > { %2651 = vmatmul.msk.f32.gmra.mxu1 %vm536_vm1, %v4404_v0  ;;  %v4417_v0 = vld [vmem:[#allocation38_spill] sm:$0xff] }
 0x189   : > { %v3843_v62 = vadd.f32 %v1473_v12, %v1373_v1  ;;  %2684 = vmatmul.msk.f32.gmra.mxu2 %vm536_vm1, %v4413_v15 }
 0x18a   : > { %2717 = vmatmul.msk.f32.gmra.mxu3 %vm536_vm1, %v4414_v63 }
 0x18c   : > { %v1160_v32 = vpop.f32.mrf.mxu2  ;;  %v1482_v5 = vpop.f32.mrf.mxu0 }
 0x18d   : > { %v1212_v58 = vadd.f32 %v1160_v32, %v883_v44  ;;  %v1322_v47 = vpop.f32.mrf.mxu3  ;;  %v885_v25 = vpop.f32.mrf.mxu1  ;;  %v4422_v44 = vld [vmem:[#allocation17_spill] sm:$0xff]  ;;  %v4423_v32 = vld [vmem:[#allocation36_spill] sm:$0xff] }
 0x18e   : > { %v886_v55 = vadd.f32 %v885_v25, %v4419_v57 }
 0x18f   : > { %v1374_v12 = vadd.f32 %v1322_v47, %v1212_v58  ;;  %2750 = vmatmul.msk.f32.gmra.mxu0 %vm536_vm1, %v4420_v31  ;;  %v4424_v47 = vld [vmem:[#allocation51_spill] sm:$0xff] }
 0x190   : > { %2652 = vmatmul.msk.f32.gmra.mxu1 %vm536_vm1, %v4408_v33  ;;  %v4421_v33 = vld [vmem:[#allocation41_spill] sm:$0xff] }
 0x191   : > { %v3854_v40 = vadd.f32 %v1476_v14, %v1374_v12  ;;  %2685 = vmatmul.msk.f32.gmra.mxu2 %vm536_vm1, %v4417_v0 }
 0x192   : > { %2718 = vmatmul.msk.f32.gmra.mxu3 %vm536_vm1, %v4418_v59 }
 0x194   : > { %v1163_v11 = vpop.f32.mrf.mxu2  ;;  %v1485_v63 = vpop.f32.mrf.mxu0 }
 0x195   : > { %v1213_v30 = vadd.f32 %v1163_v11, %v886_v55  ;;  %v1325_v1 = vpop.f32.mrf.mxu3  ;;  %v888_v15 = vpop.f32.mrf.mxu1  ;;  %v4426_v11 = vld [vmem:[#allocation20_spill] sm:$0xff] }
 0x196   : > { %v889_v58 = vadd.f32 %v888_v15, %v4423_v32  ;;  %v4428_v15 = vld [vmem:[#allocation55_spill] sm:$0xff] }
 0x197   : > { %v1375_v14 = vadd.f32 %v1325_v1, %v1213_v30  ;;  %2751 = vmatmul.msk.f32.gmra.mxu0 %vm536_vm1, %v4424_v47  ;;  %v4427_v30 = vld [vmem:[#allocation39_spill] sm:$0xff] }
 0x198   : > { %2653 = vmatmul.msk.f32.gmra.mxu1 %vm536_vm1, %v4412_v60  ;;  %v4425_v60 = vld [vmem:[#allocation44_spill] sm:$0xff] }
 0x199   : > { %v3865_v46 = vadd.f32 %v1479_v20, %v1375_v14  ;;  %2686 = vmatmul.msk.f32.gmra.mxu2 %vm536_vm1, %v4421_v33 }
 0x19a   : > { %2719 = vmatmul.msk.f32.gmra.mxu3 %vm536_vm1, %v4422_v44 }
 0x19c   : > { %v1166_v25 = vpop.f32.mrf.mxu2  ;;  %v1488_v57 = vpop.f32.mrf.mxu0 }
 0x19d   : > { %v1214_v12 = vadd.f32 %v1166_v25, %v889_v58  ;;  %v1328_v0 = vpop.f32.mrf.mxu3  ;;  %v891_v59 = vpop.f32.mrf.mxu1 }
 0x19e   : > { %v892_v1 = vadd.f32 %v891_v59, %v4427_v30 }
 0x19f   : > { %v1376_v20 = vadd.f32 %v1328_v0, %v1214_v12  ;;  %2752 = vmatmul.msk.f32.gmra.mxu0 %vm536_vm1, %v4428_v15  ;;  %v4430_v12 = vld [vmem:[#allocation23_spill] sm:$0xff]  ;;  %v4431_v0 = vld [vmem:[#allocation42_spill] sm:$0xff] }
 0x1a0   : > { %2654 = vmatmul.msk.f32.gmra.mxu1 %vm536_vm1, %v4416_v34  ;;  %v4429_v34 = vld [vmem:[#allocation48_spill] sm:$0xff] }
 0x1a1   : > { %v3876_v55 = vadd.f32 %v1482_v5, %v1376_v20  ;;  %2687 = vmatmul.msk.f32.gmra.mxu2 %vm536_vm1, %v4425_v60  ;;  %v4432_v20 = vld [vmem:[#allocation59_spill] sm:$0xff] }
 0x1a2   : > { %2720 = vmatmul.msk.f32.gmra.mxu3 %vm536_vm1, %v4426_v11 }
 0x1a4   : > { %v1169_v14 = vpop.f32.mrf.mxu2  ;;  %v1491_v58 = vpop.f32.mrf.mxu0 }
 0x1a5   : > { %v1215_v33 = vadd.f32 %v1169_v14, %v892_v1  ;;  %v1331_v44 = vpop.f32.mrf.mxu3  ;;  %v894_v32 = vpop.f32.mrf.mxu1 }
 0x1a6   : > { %v895_v59 = vadd.f32 %v894_v32, %v4431_v0  ;;  %v4435_v32 = vld [vmem:[#allocation46_spill] sm:$0xff] }
 0x1a7   : > { %v1377_v5 = vadd.f32 %v1331_v44, %v1215_v33  ;;  %2753 = vmatmul.msk.f32.gmra.mxu0 %vm536_vm1, %v4432_v20  ;;  %v4434_v44 = vld [vmem:[#allocation26_spill] sm:$0xff] }
 0x1a8   : > { %2655 = vmatmul.msk.f32.gmra.mxu1 %vm536_vm1, %v4420_v31  ;;  %v4433_v31 = vld [vmem:[#allocation52_spill] sm:$0xff] }
 0x1a9   : > { %v3887_v25 = vadd.f32 %v1485_v63, %v1377_v5  ;;  %2688 = vmatmul.msk.f32.gmra.mxu2 %vm536_vm1, %v4429_v34  ;;  %v4436_v34 = vld [vmem:[#allocation62_spill] sm:$0xff] }
 0x1aa   : > { %2721 = vmatmul.msk.f32.gmra.mxu3 %vm536_vm1, %v4430_v12 }
 0x1ac   : > { %v1172_v60 = vpop.f32.mrf.mxu2  ;;  %v1494_v14 = vpop.f32.mrf.mxu0 }
 0x1ad   : > { %v1216_v11 = vadd.f32 %v1172_v60, %v895_v59  ;;  %v1334_v30 = vpop.f32.mrf.mxu3  ;;  %v897_v1 = vpop.f32.mrf.mxu1 }
 0x1ae   : > { %v898_v5 = vadd.f32 %v897_v1, %v4435_v32  ;;  %v4439_v1 = vld [vmem:[#allocation50_spill] sm:$0xff] }
 0x1af   : > { %v1378_v63 = vadd.f32 %v1334_v30, %v1216_v11  ;;  %2754 = vmatmul.msk.f32.gmra.mxu0 %vm536_vm1, %v4436_v34 }
 0x1b0   : > { %2656 = vmatmul.msk.f32.gmra.mxu1 %vm536_vm1, %v4424_v47  ;;  %v4437_v47 = vld [vmem:[#allocation56_spill] sm:$0xff] }
 0x1b1   : > { %v3898_v33 = vadd.f32 %v1488_v57, %v1378_v63  ;;  %2689 = vmatmul.msk.f32.gmra.mxu2 %vm536_vm1, %v4433_v31  ;;  %v4438_v63 = vld [vmem:[#allocation6_spill] sm:$0xff] }
 0x1b2   : > { %2722 = vmatmul.msk.f32.gmra.mxu3 %vm536_vm1, %v4434_v44 }
 0x1b4   : > { %v1175_v12 = vpop.f32.mrf.mxu2  ;;  %v1497_v11 = vpop.f32.mrf.mxu0 }
 0x1b5   : > { %v1217_v0 = vadd.f32 %v1175_v12, %v898_v5  ;;  %v1337_v59 = vpop.f32.mrf.mxu3  ;;  %v900_v60 = vpop.f32.mrf.mxu1 }
 0x1b6   : > { %v901_v31 = vadd.f32 %v900_v60, %v4439_v1  ;;  %v4441_v60 = vld [vmem:[#allocation54_spill] sm:$0xff] }
 0x1b7   : > { %v1379_v57 = vadd.f32 %v1337_v59, %v1217_v0  ;;  %2755 = vmatmul.msk.f32.gmra.mxu0 %vm536_vm1, %v3483_v35 }
 0x1b8   : > { %2657 = vmatmul.msk.f32.gmra.mxu1 %vm536_vm1, %v4428_v15  ;;  %v4440_v15 = vld [vmem:[#allocation9_spill] sm:$0xff] }
 0x1b9   : > { %v3909_v30 = vadd.f32 %v1491_v58, %v1379_v57  ;;  %2690 = vmatmul.msk.f32.gmra.mxu2 %vm536_vm1, %v4437_v47 }
 0x1ba   : > { %2723 = vmatmul.msk.f32.gmra.mxu3 %vm536_vm1, %v4438_v63 }
 0x1bc   : > { %v1178_v44 = vpop.f32.mrf.mxu2  ;;  %v1500_v0 = vpop.f32.mrf.mxu0 }
 0x1bd   : > { %v1218_v32 = vadd.f32 %v1178_v44, %v901_v31  ;;  %v1340_v5 = vpop.f32.mrf.mxu3  ;;  %v903_v12 = vpop.f32.mrf.mxu1 }
 0x1be   : > { %v904_v57 = vadd.f32 %v903_v12, %v4441_v60 }
 0x1bf   : > { %v1380_v58 = vadd.f32 %v1340_v5, %v1218_v32  ;;  %2756 = vmatmul.msk.f32.gmra.mxu0 %vm536_vm1, %v3503_v6 }
 0x1c0   : > { %2658 = vmatmul.msk.f32.gmra.mxu1 %vm536_vm1, %v4432_v20  ;;  %v4443_v20 = vld [vmem:[#allocation58_spill] sm:$0xff] }
 0x1c1   : > { %v3920_v59 = vadd.f32 %v1494_v14, %v1380_v58  ;;  %2691 = vmatmul.msk.f32.gmra.mxu2 %vm536_vm1, %v3449_v52  ;;  %v4442_v52 = vld [vmem:[#allocation12_spill] sm:$0xff] }
 0x1c2   : > { %2724 = vmatmul.msk.f32.gmra.mxu3 %vm536_vm1, %v4440_v15 }
 0x1c4   : > { %v1181_v47 = vpop.f32.mrf.mxu2  ;;  %v1503_v44 = vpop.f32.mrf.mxu0 }
 0x1c5   : > { %v1219_v63 = vadd.f32 %v1181_v47, %v904_v57  ;;  %v1343_v1 = vpop.f32.mrf.mxu3  ;;  %v906_v31 = vpop.f32.mrf.mxu1 }
 0x1c6   : > { %v907_v5 = vadd.f32 %v906_v31, %v4443_v20 }
 0x1c7   : > { %v1381_v14 = vadd.f32 %v1343_v1, %v1219_v63  ;;  %2757 = vmatmul.msk.f32.gmra.mxu0 %vm536_vm1, %v3521_v29 }
 0x1c8   : > { %2659 = vmatmul.msk.f32.gmra.mxu1 %vm536_vm1, %v4436_v34  ;;  %v4445_v34 = vld [vmem:[#allocation61_spill] sm:$0xff] }
 0x1c9   : > { %v3931_v32 = vadd.f32 %v1497_v11, %v1381_v14  ;;  %2692 = vmatmul.msk.f32.gmra.mxu2 %vm536_vm1, %v3470_v51  ;;  %v4444_v51 = vld [vmem:[#allocation15_spill] sm:$0xff] }
 0x1ca   : > { %2725 = vmatmul.msk.f32.gmra.mxu3 %vm536_vm1, %v4442_v52 }
 0x1cc   : > { %v1184_v12 = vpop.f32.mrf.mxu2  ;;  %v2020_v57 = vpop.f32.mrf.mxu0 }
 0x1cd   : > { %v1220_v58 = vadd.f32 %v1184_v12, %v907_v5  ;;  %v1346_v15 = vpop.f32.mrf.mxu3  ;;  %v909_v60 = vpop.f32.mrf.mxu1 }
 0x1ce   : > { %v910_v63 = vadd.f32 %v909_v60, %v4445_v34  ;;  %v4449_v34 = vld [vmem:[#allocation64_spill] sm:$0xff] }
 0x1cf   : > { %v1382_v11 = vadd.f32 %v1346_v15, %v1220_v58  ;;  %2758 = vmatmul.msk.f32.gmra.mxu0 %vm536_vm1, %v3541_v24 }
 0x1d0   : > { %2660 = vmatmul.msk.f32.gmra.mxu1 %vm536_vm1, %v3483_v35  ;;  %v4446_v35 = vld [vmem:[#allocation18_spill] sm:$0xff] }
 0x1d1   : > { %v3942_v47 = vadd.f32 %v1500_v0, %v1382_v11  ;;  %2693 = vmatmul.msk.f32.gmra.mxu2 %vm536_vm1, %v3486_v38  ;;  %v4447_v38 = vld [vmem:[#allocation63_spill] sm:$0xff] }
 0x1d2   : > { %2726 = vmatmul.msk.f32.gmra.mxu3 %vm536_vm1, %v4444_v51  ;;  %v4448_v51 = vld [vmem:[#allocation21_spill] sm:$0xff] }
 0x1d4   : > { %v1187_v1 = vpop.f32.mrf.mxu2  ;;  %v2023_v20 = vpop.f32.mrf.mxu0 }
 0x1d5   : > { %v1221_v31 = vadd.f32 %v1187_v1, %v910_v63  ;;  %v1349_v14 = vpop.f32.mrf.mxu3  ;;  %v1570_v0 = vpop.f32.mrf.mxu1 }
 0x1d6   : > { %v1666_v12 = vadd.f32 %v1570_v0, %v4447_v38 }
 0x1d7   : > { %v1383_v52 = vadd.f32 %v1349_v14, %v1221_v31  ;;  %2759 = vmatmul.msk.f32.gmra.mxu0 %vm536_vm1, %v3559_v8 }
 0x1d8   : > { %2661 = vmatmul.msk.f32.gmra.mxu1 %vm536_vm1, %v3503_v6 }
 0x1d9   : > { %v3953_v5 = vadd.f32 %v1503_v44, %v1383_v52  ;;  %2694 = vmatmul.msk.f32.gmra.mxu2 %vm536_vm1, %v3506_v2 }
 0x1da   : > { %2727 = vmatmul.msk.f32.gmra.mxu3 %vm536_vm1, %v4446_v35 }
 0x1dc   : > { %v1720_v58 = vpop.f32.mrf.mxu2  ;;  %v2026_v6 = vpop.f32.mrf.mxu0 }
 0x1dd   : > { %v1816_v15 = vadd.f32 %v1720_v58, %v1666_v12  ;;  %v1870_v60 = vpop.f32.mrf.mxu3  ;;  %v1573_v11 = vpop.f32.mrf.mxu1  ;;  %v4451_v12 = vld [vmem:[#allocation65_spill] sm:$0xff] }
 0x1de   : > { %v1667_v63 = vadd.f32 %v1573_v11, %v4449_v34 }
 0x1df   : > { %v1966_v44 = vadd.f32 %v1870_v60, %v1816_v15  ;;  %2760 = vmatmul.msk.f32.gmra.mxu0 %vm536_vm1, %v3579_v36 }
 0x1e0   : > { %2662 = vmatmul.msk.f32.gmra.mxu1 %vm536_vm1, %v3521_v29 }
 0x1e1   : > { %v2116_v2 = vadd.f32 %v2020_v57, %v1966_v44  ;;  %2695 = vmatmul.msk.f32.gmra.mxu2 %vm536_vm1, %v3524_v4  ;;  %v4450_v4 = vld [vmem:[#allocation24_spill] sm:$0xff] }
 0x1e2   : > { %2728 = vmatmul.msk.f32.gmra.mxu3 %vm536_vm1, %v4448_v51 }
 0x1e3   : > { %2148 = vst.msk [vmem:[%s3969_s20] sm:$0xff] %vm536_vm1, %v2116_v2  ;;  %v2251_v52 = vmul.f32 %v2116_v2, %v2116_v2  ;;  %v2180_v38 = vsel %vm536_vm1, %v2116_v2, 0.0 }
 0x1e4   : > { %v1723_v1 = vpop.f32.mrf.mxu2  ;;  %v2029_v29 = vpop.f32.mrf.mxu0 }
 0x1e5   : > { %v1817_v31 = vadd.f32 %v1723_v1, %v1667_v63  ;;  %v1873_v57 = vpop.f32.mrf.mxu3  ;;  %v1576_v14 = vpop.f32.mrf.mxu1 }
 0x1e6   : > { %v1668_v58 = vadd.f32 %v1576_v14, %v4451_v12  ;;  %v4453_v14 = vld [vmem:[#allocation66_spill] sm:$0xff] }
 0x1e7   : > { %v1967_v0 = vadd.f32 %v1873_v57, %v1817_v31  ;;  %2761 = vmatmul.msk.f32.gmra.mxu0 %vm536_vm1, %v3597_v13  ;;  %v4452_v57 = vld [vmem:[#allocation27_spill] sm:$0xff] }
 0x1e8   : > { %2663 = vmatmul.msk.f32.gmra.mxu1 %vm536_vm1, %v3541_v24 }
 0x1e9   : > { %v2117_v35 = vadd.f32 %v2023_v20, %v1967_v0  ;;  %2696 = vmatmul.msk.f32.gmra.mxu2 %vm536_vm1, %v3544_v49  ;;  %v2283_v49 = vsel %vm536_vm1, %v2251_v52, 0.0 }
 0x1ea   : > { %2729 = vmatmul.msk.f32.gmra.mxu3 %vm536_vm1, %v4450_v4 }
 0x1eb   : > { %2149 = vst.msk [vmem:[%s3969_s20 + $0x8] sm:$0xff] %vm536_vm1, %v2117_v35  ;;  %v2181_v15 = vsel %vm536_vm1, %v2117_v35, 0.0  ;;  %v2252_v60 = vmul.f32 %v2117_v35, %v2117_v35 }
 0x1ec   : > { %v2182_v24 = vadd.f32 %v2181_v15, %v2180_v38  ;;  %v1726_v20 = vpop.f32.mrf.mxu2  ;;  %v2032_v1 = vpop.f32.mrf.mxu0 }
 0x1ed   : > { %v2284_v11 = vsel %vm536_vm1, %v2252_v60, 0.0  ;;  %v1818_v44 = vadd.f32 %v1726_v20, %v1668_v58  ;;  %v1876_v51 = vpop.f32.mrf.mxu3  ;;  %v1579_v34 = vpop.f32.mrf.mxu1 }
 0x1ee   : > { %v2285_v2 = vadd.f32 %v2284_v11, %v2283_v49  ;;  %v1669_v0 = vadd.f32 %v1579_v34, %v4453_v14  ;;  %v4454_v49 = vld [vmem:[#allocation7_spill] sm:$0xff] }
 0x1ef   : > { %v1968_v63 = vadd.f32 %v1876_v51, %v1818_v44  ;;  %2762 = vmatmul.msk.f32.gmra.mxu0 %vm536_vm1, %v3617_v37 }
 0x1f0   : > { %2664 = vmatmul.msk.f32.gmra.mxu1 %vm536_vm1, %v3559_v8 }
 0x1f1   : > { %v2118_v31 = vadd.f32 %v2026_v6, %v1968_v63  ;;  %2697 = vmatmul.msk.f32.gmra.mxu2 %vm536_vm1, %v3562_v23 }
 0x1f2   : > { %2730 = vmatmul.msk.f32.gmra.mxu3 %vm536_vm1, %v4452_v57 }
 0x1f3   : > { %2150 = vst.msk [vmem:[%s3969_s20 + $0x10] sm:$0xff] %vm536_vm1, %v2118_v31  ;;  %v2183_v52 = vsel %vm536_vm1, %v2118_v31, 0.0  ;;  %v2253_v35 = vmul.f32 %v2118_v31, %v2118_v31 }
 0x1f4   : > { %v2184_v6 = vadd.f32 %v2183_v52, %v2182_v24  ;;  %v1729_v4 = vpop.f32.mrf.mxu2  ;;  %v2035_v60 = vpop.f32.mrf.mxu0  ;;  %v4455_v24 = vld [vmem:[#allocation67_spill] sm:$0xff]  ;;  %v4456_v52 = vld [vmem:[#allocation10_spill] sm:$0xff] }
 0x1f5   : > { %v2286_v8 = vsel %vm536_vm1, %v2253_v35, 0.0  ;;  %v1819_v38 = vadd.f32 %v1729_v4, %v1669_v0  ;;  %v1879_v23 = vpop.f32.mrf.mxu3  ;;  %v1582_v58 = vpop.f32.mrf.mxu1  ;;  %v4457_v35 = vld [vmem:[#allocation68_spill] sm:$0xff] }
 0x1f6   : > { %v2287_v12 = vadd.f32 %v2286_v8, %v2285_v2  ;;  %v1670_v11 = vadd.f32 %v1582_v58, %v4455_v24  ;;  %v4458_v24 = vld [vmem:[#allocation13_spill] sm:$0xff] }
 0x1f7   : > { %v1969_v15 = vadd.f32 %v1879_v23, %v1819_v38  ;;  %2763 = vmatmul.msk.f32.gmra.mxu0 %vm536_vm1, %v3635_v26 }
 0x1f8   : > { %2665 = vmatmul.msk.f32.gmra.mxu1 %vm536_vm1, %v3579_v36 }
 0x1f9   : > { %v2119_v20 = vadd.f32 %v2029_v29, %v1969_v15  ;;  %2698 = vmatmul.msk.f32.gmra.mxu2 %vm536_vm1, %v3582_v41 }
 0x1fa   : > { %2731 = vmatmul.msk.f32.gmra.mxu3 %vm536_vm1, %v4454_v49 }
 0x1fb   : > { %2151 = vst.msk [vmem:[%s3969_s20 + $0x18] sm:$0xff] %vm536_vm1, %v2119_v20  ;;  %v2185_v44 = vsel %vm536_vm1, %v2119_v20, 0.0  ;;  %v2254_v51 = vmul.f32 %v2119_v20, %v2119_v20 }
 0x1fc   : > { %v2186_v29 = vadd.f32 %v2185_v44, %v2184_v6  ;;  %v1732_v2 = vpop.f32.mrf.mxu2  ;;  %v2038_v14 = vpop.f32.mrf.mxu0 }
 0x1fd   : > { %v2288_v36 = vsel %vm536_vm1, %v2254_v51, 0.0  ;;  %v1820_v34 = vadd.f32 %v1732_v2, %v1670_v11  ;;  %v1882_v41 = vpop.f32.mrf.mxu3  ;;  %v1585_v31 = vpop.f32.mrf.mxu1  ;;  %v4459_v11 = vld [vmem:[#allocation69_spill] sm:$0xff]  ;;  %v4460_v2 = vld [vmem:[#allocation75_spill] sm:$0xff] }
 0x1fe   : > { %v2289_v63 = vadd.f32 %v2288_v36, %v2287_v12  ;;  %v1671_v6 = vadd.f32 %v1585_v31, %v4457_v35  ;;  %v4462_v35 = vld [vmem:[#allocation16_spill] sm:$0xff] }
 0x1ff   : > { %v1970_v57 = vadd.f32 %v1882_v41, %v1820_v34  ;;  %2764 = vmatmul.msk.f32.gmra.mxu0 %vm536_vm1, %v3655_v61 }
 0x200   : > { %2666 = vmatmul.msk.f32.gmra.mxu1 %vm536_vm1, %v3597_v13 }
 0x201   : > { %v2120_v0 = vadd.f32 %v2032_v1, %v1970_v57  ;;  %2699 = vmatmul.msk.f32.gmra.mxu2 %vm536_vm1, %v3600_v18 }
 0x202   : > { %2732 = vmatmul.msk.f32.gmra.mxu3 %vm536_vm1, %v4456_v52  ;;  %v4461_v52 = vld [vmem:[#allocation71_spill] sm:$0xff] }
 0x203   : > { %2152 = vst.msk [vmem:[%s3969_s20 + $0x20] sm:$0xff] %vm536_vm1, %v2120_v0  ;;  %v2187_v4 = vsel %vm536_vm1, %v2120_v0, 0.0  ;;  %v2255_v8 = vmul.f32 %v2120_v0, %v2120_v0 }
 0x204   : > { %v2188_v1 = vadd.f32 %v2187_v4, %v2186_v29  ;;  %v1735_v38 = vpop.f32.mrf.mxu2  ;;  %v2041_v20 = vpop.f32.mrf.mxu0 }
 0x205   : > { %v2290_v13 = vsel %vm536_vm1, %v2255_v8, 0.0  ;;  %v1821_v23 = vadd.f32 %v1735_v38, %v1671_v6  ;;  %v1885_v18 = vpop.f32.mrf.mxu3  ;;  %v1588_v58 = vpop.f32.mrf.mxu1  ;;  %v4463_v6 = vld [vmem:[#allocation70_spill] sm:$0xff]  ;;  %v4464_v38 = vld [vmem:[#allocation77_spill] sm:$0xff] }
 0x206   : > { %v2291_v12 = vadd.f32 %v2290_v13, %v2289_v63  ;;  %v1672_v44 = vadd.f32 %v1588_v58, %v4459_v11  ;;  %v4465_v11 = vld [vmem:[#allocation73_spill] sm:$0xff] }
 0x207   : > { %v1971_v15 = vadd.f32 %v1885_v18, %v1821_v23  ;;  %2765 = vmatmul.msk.f32.gmra.mxu0 %vm536_vm1, %v4460_v2 }
 0x208   : > { %2667 = vmatmul.msk.f32.gmra.mxu1 %vm536_vm1, %v3617_v37 }
 0x209   : > { %v2121_v49 = vadd.f32 %v2035_v60, %v1971_v15  ;;  %2700 = vmatmul.msk.f32.gmra.mxu2 %vm536_vm1, %v3620_v17 }
 0x20a   : > { %2733 = vmatmul.msk.f32.gmra.mxu3 %vm536_vm1, %v4458_v24 }
 0x20b   : > { %2153 = vst.msk [vmem:[%s3969_s20 + $0x28] sm:$0xff] %vm536_vm1, %v2121_v49  ;;  %v2189_v51 = vsel %vm536_vm1, %v2121_v49, 0.0  ;;  %v2256_v29 = vmul.f32 %v2121_v49, %v2121_v49 }
 0x20c   : > { %v2190_v60 = vadd.f32 %v2189_v51, %v2188_v1  ;;  %v1738_v36 = vpop.f32.mrf.mxu2  ;;  %v2044_v57 = vpop.f32.mrf.mxu0  ;;  %v4467_v51 = vld [vmem:[#allocation72_spill] sm:$0xff] }
 0x20d   : > { %v2292_v37 = vsel %vm536_vm1, %v2256_v29, 0.0  ;;  %v1822_v34 = vadd.f32 %v1738_v36, %v1672_v44  ;;  %v1888_v17 = vpop.f32.mrf.mxu3  ;;  %v1591_v63 = vpop.f32.mrf.mxu1  ;;  %v4466_v44 = vld [vmem:[#allocation19_spill] sm:$0xff] }
 0x20e   : > { %v2293_v41 = vadd.f32 %v2292_v37, %v2291_v12  ;;  %v1673_v4 = vadd.f32 %v1591_v63, %v4463_v6  ;;  %v4469_v6 = vld [vmem:[#allocation74_spill] sm:$0xff] }
 0x20f   : > { %v1972_v31 = vadd.f32 %v1888_v17, %v1822_v34  ;;  %2766 = vmatmul.msk.f32.gmra.mxu0 %vm536_vm1, %v4464_v38 }
 0x210   : > { %2668 = vmatmul.msk.f32.gmra.mxu1 %vm536_vm1, %v3635_v26 }
 0x211   : > { %v2122_v0 = vadd.f32 %v2038_v14, %v1972_v31  ;;  %2701 = vmatmul.msk.f32.gmra.mxu2 %vm536_vm1, %v4461_v52 }
 0x212   : > { %2734 = vmatmul.msk.f32.gmra.mxu3 %vm536_vm1, %v4462_v35  ;;  %v4468_v35 = vld [vmem:[#allocation22_spill] sm:$0xff] }
 0x213   : > { %2154 = vst.msk [vmem:[%s3969_s20 + $0x30] sm:$0xff] %vm536_vm1, %v2122_v0  ;;  %v2191_v8 = vsel %vm536_vm1, %v2122_v0, 0.0  ;;  %v2257_v1 = vmul.f32 %v2122_v0, %v2122_v0 }
 0x214   : > { %v2192_v14 = vadd.f32 %v2191_v8, %v2190_v60  ;;  %v1741_v13 = vpop.f32.mrf.mxu2  ;;  %v2047_v49 = vpop.f32.mrf.mxu0 }
 0x215   : > { %v2294_v26 = vsel %vm536_vm1, %v2257_v1, 0.0  ;;  %v1823_v23 = vadd.f32 %v1741_v13, %v1673_v4  ;;  %v1891_v18 = vpop.f32.mrf.mxu3  ;;  %v1594_v58 = vpop.f32.mrf.mxu1 }
 0x216   : > { %v2295_v12 = vadd.f32 %v2294_v26, %v2293_v41  ;;  %v1674_v29 = vadd.f32 %v1594_v58, %v4467_v51 }
 0x217   : > { %v1973_v15 = vadd.f32 %v1891_v18, %v1823_v23  ;;  %2767 = vmatmul.msk.f32.gmra.mxu0 %vm536_vm1, %v3719_v3 }
 0x218   : > { %2669 = vmatmul.msk.f32.gmra.mxu1 %vm536_vm1, %v3655_v61 }
 0x219   : > { %v2123_v24 = vadd.f32 %v2041_v20, %v1973_v15  ;;  %2702 = vmatmul.msk.f32.gmra.mxu2 %vm536_vm1, %v4465_v11  ;;  %v4470_v15 = vld [vmem:[#allocation76_spill] sm:$0xff] }
 0x21a   : > { %2735 = vmatmul.msk.f32.gmra.mxu3 %vm536_vm1, %v4466_v44 }
 0x21b   : > { %2155 = vst.msk [vmem:[%s3969_s20 + $0x38] sm:$0xff] %vm536_vm1, %v2123_v24  ;;  %v2193_v60 = vsel %vm536_vm1, %v2123_v24, 0.0  ;;  %v2258_v36 = vmul.f32 %v2123_v24, %v2123_v24 }
 0x21c   : > { %v2194_v20 = vadd.f32 %v2193_v60, %v2192_v14  ;;  %v1744_v37 = vpop.f32.mrf.mxu2  ;;  %v2050_v0 = vpop.f32.mrf.mxu0 }
 0x21d   : > { %v2296_v61 = vsel %vm536_vm1, %v2258_v36, 0.0  ;;  %v1824_v34 = vadd.f32 %v1744_v37, %v1674_v29  ;;  %v1894_v17 = vpop.f32.mrf.mxu3  ;;  %v1597_v63 = vpop.f32.mrf.mxu1 }
 0x21e   : > { %v2297_v41 = vadd.f32 %v2296_v61, %v2295_v12  ;;  %v1675_v4 = vadd.f32 %v1597_v63, %v4469_v6 }
 0x21f   : > { %v1974_v31 = vadd.f32 %v1894_v17, %v1824_v34  ;;  %2768 = vmatmul.msk.f32.gmra.mxu0 %vm536_vm1, %v3741_v50 }
 0x220   : > { %2670 = vmatmul.msk.f32.gmra.mxu1 %vm536_vm1, %v4460_v2 }
 0x221   : > { %v2124_v52 = vadd.f32 %v2044_v57, %v1974_v31  ;;  %2703 = vmatmul.msk.f32.gmra.mxu2 %vm536_vm1, %v3676_v27 }
 0x222   : > { %2736 = vmatmul.msk.f32.gmra.mxu3 %vm536_vm1, %v4468_v35 }
 0x223   : > { %2156 = vst.msk [vmem:[%s3969_s20 + $0x40] sm:$0xff] %vm536_vm1, %v2124_v52  ;;  %v2195_v8 = vsel %vm536_vm1, %v2124_v52, 0.0  ;;  %v2259_v1 = vmul.f32 %v2124_v52, %v2124_v52 }
 0x224   : > { %v2196_v57 = vadd.f32 %v2195_v8, %v2194_v20  ;;  %v1747_v14 = vpop.f32.mrf.mxu2  ;;  %v2053_v12 = vpop.f32.mrf.mxu0 }
 0x225   : > { %v2298_v2 = vsel %vm536_vm1, %v2259_v1, 0.0  ;;  %v1825_v13 = vadd.f32 %v1747_v14, %v1675_v4  ;;  %v1897_v27 = vpop.f32.mrf.mxu3  ;;  %v1600_v23 = vpop.f32.mrf.mxu1 }
 0x226   : > { %v2299_v26 = vadd.f32 %v2298_v2, %v2297_v41  ;;  %v1676_v24 = vadd.f32 %v1600_v23, %v4470_v15  ;;  %v4471_v41 = vld [vmem:[#allocation78_spill] sm:$0xff]  ;;  %v4472_v2 = vld [vmem:[#allocation79_spill] sm:$0xff] }
 0x227   : > { %v1975_v18 = vadd.f32 %v1897_v27, %v1825_v13  ;;  %2769 = vmatmul.msk.f32.gmra.mxu0 %vm536_vm1, %v3761_v10 }
 0x228   : > { %2671 = vmatmul.msk.f32.gmra.mxu1 %vm536_vm1, %v4464_v38  ;;  %v1538_v38 = vrot.slane %v3724_v42, 1 }
 0x229   : > { %v2125_v58 = vadd.f32 %v2047_v49, %v1975_v18  ;;  %2704 = vmatmul.msk.f32.gmra.mxu2 %vm536_vm1, %v3697_v56  ;;  %v1539_v56 = vrot.slane %v3746_v22, 1 }
 0x22a   : > { %2737 = vmatmul.msk.f32.gmra.mxu3 %vm536_vm1, %v3115_v16 }
 0x22b   : > { %2157 = vst.msk [vmem:[%s3969_s20 + $0x48] sm:$0xff] %vm536_vm1, %v2125_v58  ;;  %v2197_v11 = vsel %vm536_vm1, %v2125_v58, 0.0  ;;  %v2260_v44 = vmul.f32 %v2125_v58, %v2125_v58  ;;  %v1540_v34 = vsel %vm912_vm3, %v1538_v38, %v1539_v56 }
 0x22c   : > { %v2198_v49 = vadd.f32 %v2197_v11, %v2196_v57  ;;  %v1750_v51 = vpop.f32.mrf.mxu2  ;;  %v2056_v61 = vpop.f32.mrf.mxu0  ;;  %v1542_v57 = vsel %vm912_vm3, %v1539_v56, 0.0  ;;  %v4474_v56 = vld [vmem:[#allocation29_spill] sm:$0xff] }
 0x22d   : > { %v2300_v29 = vsel %vm536_vm1, %v2260_v44, 0.0  ;;  %v1826_v16 = vadd.f32 %v1750_v51, %v1676_v24  ;;  %v1900_v60 = vpop.f32.mrf.mxu3  ;;  %v1603_v20 = vpop.f32.mrf.mxu1  ;;  %v4473_v44 = vld [vmem:[#allocation80_spill] sm:$0xff] }
 0x22e   : > { %v2301_v36 = vadd.f32 %v2300_v29, %v2299_v26  ;;  %v1677_v63 = vadd.f32 %v1603_v20, %v4471_v41  ;;  %v4476_v41 = vmov 0.0  }
 0x22f   : > { %v1976_v37 = vadd.f32 %v1900_v60, %v1826_v16  ;;  %2770 = vmatmul.msk.f32.gmra.mxu0 %vm536_vm1, %v1540_v34 }
 0x230   : > { %2672 = vmatmul.msk.f32.gmra.mxu1 %vm536_vm1, %v3719_v3 }
 0x231   : > { %v2126_v17 = vadd.f32 %v2050_v0, %v1976_v37  ;;  %2705 = vmatmul.msk.f32.gmra.mxu2 %vm536_vm1, %v3722_v54 }
 0x232   : > { %2738 = vmatmul.msk.f32.gmra.mxu3 %vm536_vm1, %v3135_v28 }
 0x233   : > { %2158 = vst.msk [vmem:[%s3969_s20 + $0x50] sm:$0xff] %vm536_vm1, %v2126_v17  ;;  %v2199_v31 = vsel %vm536_vm1, %v2126_v17, 0.0  ;;  %v2261_v52 = vmul.f32 %v2126_v17, %v2126_v17  ;;  %v4475_v17 = vld [vmem:[#allocation30_spill] sm:$0xff] }
 0x234   : > { %v2200_v0 = vadd.f32 %v2199_v31, %v2198_v49  ;;  %v1753_v35 = vpop.f32.mrf.mxu2  ;;  %v2059_v28 = vpop.f32.mrf.mxu0 }
 0x235   : > { %v2302_v3 = vsel %vm536_vm1, %v2261_v52, 0.0  ;;  %v1827_v6 = vadd.f32 %v1753_v35, %v1677_v63  ;;  %v1903_v4 = vpop.f32.mrf.mxu3  ;;  %v1606_v8 = vpop.f32.mrf.mxu1 }
 0x236   : > { %v2303_v54 = vadd.f32 %v2302_v3, %v2301_v36  ;;  %v1678_v13 = vadd.f32 %v1606_v8, %v4472_v2 }
 0x237   : > { %v1977_v1 = vadd.f32 %v1903_v4, %v1827_v6  ;;  %2771 = vmatmul.msk.f32.gmra.mxu0 %vm536_vm1, %v1542_v57 }
 0x238   : > { %2673 = vmatmul.msk.f32.gmra.mxu1 %vm536_vm1, %v3741_v50 }
 0x239   : > { %v2127_v14 = vadd.f32 %v2053_v12, %v1977_v1  ;;  %2706 = vmatmul.msk.f32.gmra.mxu2 %vm536_vm1, %v3744_v7 }
 0x23a   : > { %2739 = vmatmul.msk.f32.gmra.mxu3 %vm536_vm1, %v3724_v42 }
 0x23b   : > { %2159 = vst.msk [vmem:[%s3969_s20 + $0x58] sm:$0xff] %vm536_vm1, %v2127_v14  ;;  %v2201_v27 = vsel %vm536_vm1, %v2127_v14, 0.0  ;;  %v2262_v26 = vmul.f32 %v2127_v14, %v2127_v14  ;;  %v4478_v14 = vld [vmem:[#allocation28_spill] sm:$0xff] }
 0x23c   : > { %v2202_v23 = vadd.f32 %v2201_v27, %v2200_v0  ;;  %v1756_v18 = vpop.f32.mrf.mxu2  ;;  %v2062_v42 = vpop.f32.mrf.mxu0  ;;  %v4477_v0 = vld [vmem:[#allocation31_spill] sm:$0xff] }
 0x23d   : > { %v2304_v50 = vsel %vm536_vm1, %v2262_v26, 0.0  ;;  %v1828_v12 = vadd.f32 %v1756_v18, %v1678_v13  ;;  %v1906_v58 = vpop.f32.mrf.mxu3  ;;  %v1609_v15 = vpop.f32.mrf.mxu1 }
 0x23e   : > { %v2305_v7 = vadd.f32 %v2304_v50, %v2303_v54  ;;  %v1679_v49 = vadd.f32 %v1609_v15, %v4473_v44 }
 0x23f   : > { %v1978_v24 = vadd.f32 %v1906_v58, %v1828_v12  ;;  %2772 = vmatmul.msk.f32.gmra.mxu0 %vm536_vm1, %v4474_v56 }
 0x240   : > { %2674 = vmatmul.msk.f32.gmra.mxu1 %vm536_vm1, %v3761_v10 }
 0x241   : > { %v2128_v11 = vadd.f32 %v2056_v61, %v1978_v24  ;;  %2707 = vmatmul.msk.f32.gmra.mxu2 %vm536_vm1, %v3764_v48 }
 0x242   : > { %2740 = vmatmul.msk.f32.gmra.mxu3 %vm536_vm1, %v3746_v22 }
 0x243   : > { %2160 = vst.msk [vmem:[%s3969_s20 + $0x60] sm:$0xff] %vm536_vm1, %v2128_v11  ;;  %v2203_v51 = vsel %vm536_vm1, %v2128_v11, 0.0  ;;  %v2263_v38 = vmul.f32 %v2128_v11, %v2128_v11 }
 0x244   : > { %v2204_v29 = vadd.f32 %v2203_v51, %v2202_v23  ;;  %v1759_v16 = vpop.f32.mrf.mxu2  ;;  %v2065_v37 = vpop.f32.mrf.mxu0 }
 0x245   : > { %v2306_v10 = vsel %vm536_vm1, %v2263_v38, 0.0  ;;  %v1829_v60 = vadd.f32 %v1759_v16, %v1679_v49  ;;  %v1909_v48 = vpop.f32.mrf.mxu3  ;;  %v1612_v20 = vpop.f32.mrf.mxu1 }
 0x246   : > { %v2307_v36 = vadd.f32 %v2306_v10, %v2305_v7  ;;  %v1680_v63 = vadd.f32 %v1612_v20, %v3766_v39 }
 0x247   : > { %v1979_v22 = vadd.f32 %v1909_v48, %v1829_v60  ;;  %2773 = vmatmul.msk.f32.gmra.mxu0 %vm536_vm1, %v4477_v0 }
 0x248   : > { %2675 = vmatmul.msk.f32.gmra.mxu1 %vm536_vm1, %v1540_v34 }
 0x249   : > { %v2129_v61 = vadd.f32 %v2059_v28, %v1979_v22  ;;  %2708 = vmatmul.msk.f32.gmra.mxu2 %vm536_vm1, %v4475_v17 }
 0x24a   : > { %1959 = vmatmul.f32.gmra.mxu3 %v4476_v41 }
 0x24b   : > { %2161 = vst.msk [vmem:[%s3969_s20 + $0x68] sm:$0xff] %vm536_vm1, %v2129_v61  ;;  %v2205_v31 = vsel %vm536_vm1, %v2129_v61, 0.0  ;;  %v2264_v52 = vmul.f32 %v2129_v61, %v2129_v61 }
 0x24c   : > { %v2206_v35 = vadd.f32 %v2205_v31, %v2204_v29  ;;  %v1762_v3 = vpop.f32.mrf.mxu2  ;;  %v2068_v28 = vpop.f32.mrf.mxu0 }
 0x24d   : > { %v2308_v34 = vsel %vm536_vm1, %v2264_v52, 0.0  ;;  %v1830_v6 = vadd.f32 %v1762_v3, %v1680_v63  ;;  %v1912_v4 = vpop.f32.mrf.mxu3  ;;  %v1615_v8 = vpop.f32.mrf.mxu1 }
 0x24e   : > { %v2309_v54 = vadd.f32 %v2308_v34, %v2307_v36  ;;  %v1681_v2 = vadd.f32 %v1615_v8, %v3777_v19 }
 0x24f   : > { %v1980_v1 = vadd.f32 %v1912_v4, %v1830_v6 }
 0x250   : > { %2676 = vmatmul.msk.f32.gmra.mxu1 %vm536_vm1, %v1542_v57 }
 0x251   : > { %v2130_v39 = vadd.f32 %v2062_v42, %v1980_v1  ;;  %2709 = vmatmul.msk.f32.gmra.mxu2 %vm536_vm1, %v4478_v14 }
 0x252   : > { %1962 = vmatmul.f32.gmra.mxu3 %v4476_v41 }
 0x253   : > { %2162 = vst.msk [vmem:[%s3969_s20 + $0x70] sm:$0xff] %vm536_vm1, %v2130_v39  ;;  %v2207_v13 = vsel %vm536_vm1, %v2130_v39, 0.0  ;;  %v2265_v27 = vmul.f32 %v2130_v39, %v2130_v39 }
 0x254   : > { %v2208_v26 = vadd.f32 %v2207_v13, %v2206_v35  ;;  %v1765_v23 = vpop.f32.mrf.mxu2  ;;  %v2071_v15 = vpop.f32.mrf.mxu0 }
 0x255   : > { %v2310_v18 = vsel %vm536_vm1, %v2265_v27, 0.0  ;;  %v1831_v50 = vadd.f32 %v1765_v23, %v1681_v2  ;;  %v1915_v12 = vpop.f32.mrf.mxu3  ;;  %v1618_v58 = vpop.f32.mrf.mxu1 }
 0x256   : > { %v2311_v57 = vadd.f32 %v2310_v18, %v2309_v54  ;;  %v1682_v42 = vadd.f32 %v1618_v58, %v3788_v43 }
 0x257   : > { %v1981_v7 = vadd.f32 %v1915_v12, %v1831_v50 }
 0x259   : > { %v2131_v24 = vadd.f32 %v2065_v37, %v1981_v7 }
 0x25b   : > { %2163 = vst.msk [vmem:[%s3969_s20 + $0x78] sm:$0xff] %vm536_vm1, %v2131_v24  ;;  %v2209_v19 = vsel %vm536_vm1, %v2131_v24, 0.0  ;;  %v2266_v11 = vmul.f32 %v2131_v24, %v2131_v24 }
 0x25c   : > { %v2210_v44 = vadd.f32 %v2209_v19, %v2208_v26  ;;  %v1768_v49 = vpop.f32.mrf.mxu2  ;;  %v2074_v60 = vpop.f32.mrf.mxu0 }
 0x25d   : > { %v2312_v51 = vsel %vm536_vm1, %v2266_v11, 0.0  ;;  %v1832_v38 = vadd.f32 %v1768_v49, %v1682_v42  ;;  %v1918_v56 = vpop.f32.mrf.mxu3  ;;  %v1621_v16 = vpop.f32.mrf.mxu1 }
 0x25e   : > { %v2313_v29 = vadd.f32 %v2312_v51, %v2311_v57  ;;  %v1683_v36 = vadd.f32 %v1621_v16, %v3799_v53 }
 0x25f   : > { %v1982_v10 = vadd.f32 %v1918_v56, %v1832_v38 }
 0x261   : > { %v2132_v48 = vadd.f32 %v2068_v28, %v1982_v10 }
 0x263   : > { %2164 = vst.msk [vmem:[%s3969_s20 + $0x80] sm:$0xff] %vm536_vm1, %v2132_v48  ;;  %v2211_v43 = vsel %vm536_vm1, %v2132_v48, 0.0  ;;  %v2267_v20 = vmul.f32 %v2132_v48, %v2132_v48 }
 0x264   : > { %v2212_v22 = vadd.f32 %v2211_v43, %v2210_v44  ;;  %v1771_v37 = vpop.f32.mrf.mxu2  ;;  %v2077_v0 = vpop.f32.mrf.mxu0 }
 0x265   : > { %v2314_v61 = vsel %vm536_vm1, %v2267_v20, 0.0  ;;  %v1833_v17 = vadd.f32 %v1771_v37, %v1683_v36  ;;  %v1921_v41 = vpop.f32.mrf.mxu3  ;;  %v1624_v31 = vpop.f32.mrf.mxu1 }
 0x266   : > { %v2315_v63 = vadd.f32 %v2314_v61, %v2313_v29  ;;  %v1684_v3 = vadd.f32 %v1624_v31, %v3810_v21 }
 0x267   : > { %v1983_v52 = vadd.f32 %v1921_v41, %v1833_v17 }
 0x269   : > { %v2133_v35 = vadd.f32 %v2071_v15, %v1983_v52 }
 0x26b   : > { %2165 = vst.msk [vmem:[%s3969_s20 + $0x88] sm:$0xff] %vm536_vm1, %v2133_v35  ;;  %v2213_v53 = vsel %vm536_vm1, %v2133_v35, 0.0  ;;  %v2268_v34 = vmul.f32 %v2133_v35, %v2133_v35 }
 0x26c   : > { %v2214_v6 = vadd.f32 %v2213_v53, %v2212_v22  ;;  %v1774_v4 = vpop.f32.mrf.mxu2  ;;  %v2080_v2 = vpop.f32.mrf.mxu0 }
 0x26d   : > { %v2316_v54 = vsel %vm536_vm1, %v2268_v34, 0.0  ;;  %v1834_v8 = vadd.f32 %v1774_v4, %v1684_v3  ;;  %v1924_v1 = vpop.f32.mrf.mxu3  ;;  %v1627_v39 = vpop.f32.mrf.mxu1 }
 0x26e   : > { %v2317_v28 = vadd.f32 %v2316_v54, %v2315_v63  ;;  %v1685_v27 = vadd.f32 %v1627_v39, %v3821_v45 }
 0x26f   : > { %v1984_v14 = vadd.f32 %v1924_v1, %v1834_v8 }
 0x271   : > { %v2134_v13 = vadd.f32 %v2074_v60, %v1984_v14 }
 0x273   : > { %2166 = vst.msk [vmem:[%s3969_s20 + $0x90] sm:$0xff] %vm536_vm1, %v2134_v13  ;;  %v2215_v21 = vsel %vm536_vm1, %v2134_v13, 0.0  ;;  %v2269_v26 = vmul.f32 %v2134_v13, %v2134_v13 }
 0x274   : > { %v2216_v23 = vadd.f32 %v2215_v21, %v2214_v6  ;;  %v1777_v18 = vpop.f32.mrf.mxu2  ;;  %v2083_v24 = vpop.f32.mrf.mxu0 }
 0x275   : > { %v2318_v50 = vsel %vm536_vm1, %v2269_v26, 0.0  ;;  %v1835_v12 = vadd.f32 %v1777_v18, %v1685_v27  ;;  %v1927_v57 = vpop.f32.mrf.mxu3  ;;  %v1630_v7 = vpop.f32.mrf.mxu1 }
 0x276   : > { %v2319_v58 = vadd.f32 %v2318_v50, %v2317_v28  ;;  %v1686_v19 = vadd.f32 %v1630_v7, %v3832_v9 }
 0x277   : > { %v1985_v15 = vadd.f32 %v1927_v57, %v1835_v12 }
 0x279   : > { %v2135_v42 = vadd.f32 %v2077_v0, %v1985_v15 }
 0x27b   : > { %2167 = vst.msk [vmem:[%s3969_s20 + $0x98] sm:$0xff] %vm536_vm1, %v2135_v42  ;;  %v2217_v45 = vsel %vm536_vm1, %v2135_v42, 0.0  ;;  %v2270_v11 = vmul.f32 %v2135_v42, %v2135_v42 }
 0x27c   : > { %v2218_v44 = vadd.f32 %v2217_v45, %v2216_v23  ;;  %v1780_v49 = vpop.f32.mrf.mxu2  ;;  %v2086_v60 = vpop.f32.mrf.mxu0 }
 0x27d   : > { %v2320_v51 = vsel %vm536_vm1, %v2270_v11, 0.0  ;;  %v1836_v38 = vadd.f32 %v1780_v49, %v1686_v19  ;;  %v1930_v56 = vpop.f32.mrf.mxu3  ;;  %v1633_v16 = vpop.f32.mrf.mxu1 }
 0x27e   : > { %v2321_v29 = vadd.f32 %v2320_v51, %v2319_v58  ;;  %v1687_v36 = vadd.f32 %v1633_v16, %v3843_v62 }
 0x27f   : > { %v1986_v10 = vadd.f32 %v1930_v56, %v1836_v38 }
 0x281   : > { %v2136_v48 = vadd.f32 %v2080_v2, %v1986_v10 }
 0x283   : > { %2168 = vst.msk [vmem:[%s3969_s20 + $0xa0] sm:$0xff] %vm536_vm1, %v2136_v48  ;;  %v2219_v9 = vsel %vm536_vm1, %v2136_v48, 0.0  ;;  %v2271_v43 = vmul.f32 %v2136_v48, %v2136_v48 }
 0x284   : > { %v2220_v20 = vadd.f32 %v2219_v9, %v2218_v44  ;;  %v1783_v22 = vpop.f32.mrf.mxu2  ;;  %v2089_v52 = vpop.f32.mrf.mxu0 }
 0x285   : > { %v2322_v37 = vsel %vm536_vm1, %v2271_v43, 0.0  ;;  %v1837_v61 = vadd.f32 %v1783_v22, %v1687_v36  ;;  %v1933_v17 = vpop.f32.mrf.mxu3  ;;  %v1636_v63 = vpop.f32.mrf.mxu1 }
 0x286   : > { %v2323_v41 = vadd.f32 %v2322_v37, %v2321_v29  ;;  %v1688_v35 = vadd.f32 %v1636_v63, %v3854_v40 }
 0x287   : > { %v1987_v31 = vadd.f32 %v1933_v17, %v1837_v61 }
 0x289   : > { %v2137_v0 = vadd.f32 %v2083_v24, %v1987_v31 }
 0x28b   : > { %2169 = vst.msk [vmem:[%s3969_s20 + $0xa8] sm:$0xff] %vm536_vm1, %v2137_v0  ;;  %v2221_v62 = vsel %vm536_vm1, %v2137_v0, 0.0  ;;  %v2272_v3 = vmul.f32 %v2137_v0, %v2137_v0 }
 0x28c   : > { %v2222_v53 = vadd.f32 %v2221_v62, %v2220_v20  ;;  %v1786_v34 = vpop.f32.mrf.mxu2  ;;  %v2092_v39 = vpop.f32.mrf.mxu0 }
 0x28d   : > { %v2324_v6 = vsel %vm536_vm1, %v2272_v3, 0.0  ;;  %v1838_v4 = vadd.f32 %v1786_v34, %v1688_v35  ;;  %v1936_v54 = vpop.f32.mrf.mxu3  ;;  %v1639_v1 = vpop.f32.mrf.mxu1 }
 0x28e   : > { %v2325_v8 = vadd.f32 %v2324_v6, %v2323_v41  ;;  %v1689_v2 = vadd.f32 %v1639_v1, %v3865_v46 }
 0x28f   : > { %v1988_v28 = vadd.f32 %v1936_v54, %v1838_v4 }
 0x291   : > { %v2138_v14 = vadd.f32 %v2086_v60, %v1988_v28 }
 0x293   : > { %2170 = vst.msk [vmem:[%s3969_s20 + $0xb0] sm:$0xff] %vm536_vm1, %v2138_v14  ;;  %v2223_v40 = vsel %vm536_vm1, %v2138_v14, 0.0  ;;  %v2273_v13 = vmul.f32 %v2138_v14, %v2138_v14 }
 0x294   : > { %v2224_v27 = vadd.f32 %v2223_v40, %v2222_v53  ;;  %v1789_v21 = vpop.f32.mrf.mxu2  ;;  %v2095_v7 = vpop.f32.mrf.mxu0 }
 0x295   : > { %v2326_v26 = vsel %vm536_vm1, %v2273_v13, 0.0  ;;  %v1839_v23 = vadd.f32 %v1789_v21, %v1689_v2  ;;  %v1939_v18 = vpop.f32.mrf.mxu3  ;;  %v1642_v12 = vpop.f32.mrf.mxu1 }
 0x296   : > { %v2327_v50 = vadd.f32 %v2326_v26, %v2325_v8  ;;  %v1690_v15 = vadd.f32 %v1642_v12, %v3876_v55 }
 0x297   : > { %v1989_v57 = vadd.f32 %v1939_v18, %v1839_v23 }
 0x299   : > { %v2139_v58 = vadd.f32 %v2089_v52, %v1989_v57 }
 0x29b   : > { %2171 = vst.msk [vmem:[%s3969_s20 + $0xb8] sm:$0xff] %vm536_vm1, %v2139_v58  ;;  %v2225_v46 = vsel %vm536_vm1, %v2139_v58, 0.0  ;;  %v2274_v24 = vmul.f32 %v2139_v58, %v2139_v58 }
 0x29c   : > { %v2226_v42 = vadd.f32 %v2225_v46, %v2224_v27  ;;  %v1792_v19 = vpop.f32.mrf.mxu2  ;;  %v2098_v48 = vpop.f32.mrf.mxu0 }
 0x29d   : > { %v2328_v45 = vsel %vm536_vm1, %v2274_v24, 0.0  ;;  %v1840_v11 = vadd.f32 %v1792_v19, %v1690_v15  ;;  %v1942_v44 = vpop.f32.mrf.mxu3  ;;  %v1645_v51 = vpop.f32.mrf.mxu1 }
 0x29e   : > { %v2329_v49 = vadd.f32 %v2328_v45, %v2327_v50  ;;  %v1691_v29 = vadd.f32 %v1645_v51, %v3887_v25 }
 0x29f   : > { %v1990_v38 = vadd.f32 %v1942_v44, %v1840_v11 }
 0x2a1   : > { %v2140_v56 = vadd.f32 %v2092_v39, %v1990_v38 }
 0x2a3   : > { %2172 = vst.msk [vmem:[%s3969_s20 + $0xc0] sm:$0xff] %vm536_vm1, %v2140_v56  ;;  %v2227_v55 = vsel %vm536_vm1, %v2140_v56, 0.0  ;;  %v2275_v16 = vmul.f32 %v2140_v56, %v2140_v56 }
 0x2a4   : > { %v2228_v10 = vadd.f32 %v2227_v55, %v2226_v42  ;;  %v1795_v60 = vpop.f32.mrf.mxu2  ;;  %v2101_v53 = vpop.f32.mrf.mxu0 }
 0x2a5   : > { %v2330_v36 = vsel %vm536_vm1, %v2275_v16, 0.0  ;;  %v1841_v9 = vadd.f32 %v1795_v60, %v1691_v29  ;;  %v1945_v43 = vpop.f32.mrf.mxu3  ;;  %v1648_v22 = vpop.f32.mrf.mxu1 }
 0x2a6   : > { %v2331_v20 = vadd.f32 %v2330_v36, %v2329_v49  ;;  %v1692_v17 = vadd.f32 %v1648_v22, %v3898_v33 }
 0x2a7   : > { %v1991_v37 = vadd.f32 %v1945_v43, %v1841_v9 }
 0x2a9   : > { %v2141_v61 = vadd.f32 %v2095_v7, %v1991_v37 }
 0x2ab   : > { %2173 = vst.msk [vmem:[%s3969_s20 + $0xc8] sm:$0xff] %vm536_vm1, %v2141_v61  ;;  %v2229_v25 = vsel %vm536_vm1, %v2141_v61, 0.0  ;;  %v2276_v41 = vmul.f32 %v2141_v61, %v2141_v61 }
 0x2ac   : > { %v2230_v63 = vadd.f32 %v2229_v25, %v2228_v10  ;;  %v1798_v31 = vpop.f32.mrf.mxu2  ;;  %v2104_v27 = vpop.f32.mrf.mxu0 }
 0x2ad   : > { %v2332_v52 = vsel %vm536_vm1, %v2276_v41, 0.0  ;;  %v1842_v0 = vadd.f32 %v1798_v31, %v1692_v17  ;;  %v1948_v35 = vpop.f32.mrf.mxu3  ;;  %v1651_v3 = vpop.f32.mrf.mxu1 }
 0x2ae   : > { %v2333_v62 = vadd.f32 %v2332_v52, %v2331_v20  ;;  %v1693_v4 = vadd.f32 %v1651_v3, %v3909_v30 }
 0x2af   : > { %v1992_v34 = vadd.f32 %v1948_v35, %v1842_v0 }
 0x2b1   : > { %v2142_v6 = vadd.f32 %v2098_v48, %v1992_v34 }
 0x2b3   : > { %2174 = vst.msk [vmem:[%s3969_s20 + $0xd0] sm:$0xff] %vm536_vm1, %v2142_v6  ;;  %v2231_v33 = vsel %vm536_vm1, %v2142_v6, 0.0  ;;  %v2277_v54 = vmul.f32 %v2142_v6, %v2142_v6 }
 0x2b4   : > { %v2232_v8 = vadd.f32 %v2231_v33, %v2230_v63  ;;  %v1801_v1 = vpop.f32.mrf.mxu2  ;;  %v2107_v42 = vpop.f32.mrf.mxu0 }
 0x2b5   : > { %v2334_v28 = vsel %vm536_vm1, %v2277_v54, 0.0  ;;  %v1843_v39 = vadd.f32 %v1801_v1, %v1693_v4  ;;  %v1951_v14 = vpop.f32.mrf.mxu3  ;;  %v1654_v40 = vpop.f32.mrf.mxu1 }
 0x2b6   : > { %v2335_v2 = vadd.f32 %v2334_v28, %v2333_v62  ;;  %v1694_v26 = vadd.f32 %v1654_v40, %v3920_v59 }
 0x2b7   : > { %v1993_v13 = vadd.f32 %v1951_v14, %v1843_v39 }
 0x2b9   : > { %v2143_v21 = vadd.f32 %v2101_v53, %v1993_v13 }
 0x2bb   : > { %2175 = vst.msk [vmem:[%s3969_s20 + $0xd8] sm:$0xff] %vm536_vm1, %v2143_v21  ;;  %v2233_v30 = vsel %vm536_vm1, %v2143_v21, 0.0  ;;  %v2278_v23 = vmul.f32 %v2143_v21, %v2143_v21 }
 0x2bc   : > { %v2234_v18 = vadd.f32 %v2233_v30, %v2232_v8  ;;  %v1804_v50 = vpop.f32.mrf.mxu2  ;;  %v2110_v9 = vpop.f32.mrf.mxu0 }
 0x2bd   : > { %v2336_v12 = vsel %vm536_vm1, %v2278_v23, 0.0  ;;  %v1844_v57 = vadd.f32 %v1804_v50, %v1694_v26  ;;  %v1954_v58 = vpop.f32.mrf.mxu3  ;;  %v1657_v15 = vpop.f32.mrf.mxu1 }
 0x2be   : > { %v2337_v7 = vadd.f32 %v2336_v12, %v2335_v2  ;;  %v1695_v19 = vadd.f32 %v1657_v15, %v3931_v32 }
 0x2bf   : > { %v1994_v46 = vadd.f32 %v1954_v58, %v1844_v57 }
 0x2c1   : > { %v2144_v24 = vadd.f32 %v2104_v27, %v1994_v46 }
 0x2c3   : > { %2176 = vst.msk [vmem:[%s3969_s20 + $0xe0] sm:$0xff] %vm536_vm1, %v2144_v24  ;;  %v2235_v59 = vsel %vm536_vm1, %v2144_v24, 0.0  ;;  %v2279_v45 = vmul.f32 %v2144_v24, %v2144_v24 }
 0x2c4   : > { %v2236_v11 = vadd.f32 %v2235_v59, %v2234_v18  ;;  %v1807_v44 = vpop.f32.mrf.mxu2  ;;  %v2113_v53 = vpop.f32.mrf.mxu0 }
 0x2c5   : > { %v2338_v49 = vsel %vm536_vm1, %v2279_v45, 0.0  ;;  %v1845_v51 = vadd.f32 %v1807_v44, %v1695_v19  ;;  %v1957_v38 = vpop.f32.mrf.mxu3  ;;  %v1660_v29 = vpop.f32.mrf.mxu1 }
 0x2c6   : > { %v2339_v56 = vadd.f32 %v2338_v49, %v2337_v7  ;;  %v1696_v10 = vadd.f32 %v1660_v29, %v3942_v47 }
 0x2c7   : > { %v1995_v55 = vadd.f32 %v1957_v38, %v1845_v51 }
 0x2c9   : > { %v2145_v16 = vadd.f32 %v2107_v42, %v1995_v55 }
 0x2cb   : > { %2177 = vst.msk [vmem:[%s3969_s20 + $0xe8] sm:$0xff] %vm536_vm1, %v2145_v16  ;;  %v2237_v32 = vsel %vm536_vm1, %v2145_v16, 0.0  ;;  %v2280_v60 = vmul.f32 %v2145_v16, %v2145_v16 }
 0x2cc   : > { %v2238_v48 = vadd.f32 %v2237_v32, %v2236_v11  ;;  %v1810_v36 = vpop.f32.mrf.mxu2 }
 0x2cd   : > { %v2340_v43 = vsel %vm536_vm1, %v2280_v60, 0.0  ;;  %v1846_v20 = vadd.f32 %v1810_v36, %v1696_v10  ;;  %v1960_v22 = vpop.f32.mrf.mxu3  ;;  %v1663_v17 = vpop.f32.mrf.mxu1 }
 0x2ce   : > { %v2341_v37 = vadd.f32 %v2340_v43, %v2339_v56  ;;  %v1697_v41 = vadd.f32 %v1663_v17, %v3953_v5 }
 0x2cf   : > { %v1996_v61 = vadd.f32 %v1960_v22, %v1846_v20 }
 0x2d1   : > { %v2146_v25 = vadd.f32 %v2110_v9, %v1996_v61 }
 0x2d3   : > { %2178 = vst.msk [vmem:[%s3969_s20 + $0xf0] sm:$0xff] %vm536_vm1, %v2146_v25  ;;  %v2239_v47 = vsel %vm536_vm1, %v2146_v25, 0.0  ;;  %v2281_v63 = vmul.f32 %v2146_v25, %v2146_v25 }
 0x2d4   : > { %v2240_v31 = vadd.f32 %v2239_v47, %v2238_v48  ;;  %v1813_v52 = vpop.f32.mrf.mxu2 }
 0x2d5   : > { %v2342_v0 = vsel %vm536_vm1, %v2281_v63, 0.0  ;;  %v1847_v35 = vadd.f32 %v1813_v52, %v1697_v41  ;;  %v1963_v62 = vpop.f32.mrf.mxu3 }
 0x2d6   : > { %v2343_v3 = vadd.f32 %v2342_v0, %v2341_v37 }
 0x2d7   : > { %v1997_v34 = vadd.f32 %v1963_v62, %v1847_v35 }
 0x2d9   : > { %v2147_v6 = vadd.f32 %v2113_v53, %v1997_v34 }
 0x2db   : > { %2179 = vst.msk [vmem:[%s3969_s20 + $0xf8] sm:$0xff] %vm536_vm1, %v2147_v6  ;;  %v2241_v5 = vsel %vm536_vm1, %v2147_v6, 0.0  ;;  %v2282_v4 = vmul.f32 %v2147_v6, %v2147_v6 }
 0x2dc   : > { %v2242_v33 = vadd.f32 %v2241_v5, %v2240_v31 }
 0x2dd   : > { %v2344_v54 = vsel %vm536_vm1, %v2282_v4, 0.0 }
 0x2de   : > { %v2243_v8 = vrot.slane %v2242_v33, 4  ;;  %v2345_v1 = vadd.f32 %v2344_v54, %v2343_v3 }
 0x2e0   : > { %v2244_v28 = vadd.f32 %v2243_v8, %v2242_v33  ;;  %v2346_v39 = vrot.slane %v2345_v1, 4 }
 0x2e2   : > { %v2245_v14 = vrot.slane %v2244_v28, 2  ;;  %v2347_v2 = vadd.f32 %v2346_v39, %v2345_v1 }
 0x2e4   : > { %v2246_v40 = vadd.f32 %v2245_v14, %v2244_v28  ;;  %v2348_v13 = vrot.slane %v2347_v2, 2 }
 0x2e6   : > { %v2247_v27 = vrot.slane %v2246_v40, 1  ;;  %v2349_v21 = vadd.f32 %v2348_v13, %v2347_v2 }
 0x2e8   : > { %v2248_v26 = vadd.f32 %v2247_v27, %v2246_v40  ;;  %v2350_v30 = vrot.slane %v2349_v21, 1 }
 0x2ea   : > { %2250 = vst.msk [vmem:[%s282_s24] sm:$0x1] %vm2249_vm4, %v2248_v26  ;;  %v2351_v23 = vadd.f32 %v2350_v30, %v2349_v21 }
 0x2ec   : > { %2352 = vst.msk [vmem:[%s285_s28] sm:$0x1] %vm2249_vm4, %v2351_v23 }
 0x2ed PF: > { %s18_s21 = sadd.s32 1, %s2847_s21  }
 0x2ee   : > { %p15_p7 = scmp.ge.s32.totalorder %s18_s21, 4  }
 0x2f0   :  { %17 = sbr.rel (!%p15_p7) target bundleno = 1 (0x1), region = 103 }
 0x2f5   :  { %2398 = vsyncpa [#allocation3], 1 }
 0x2f6   :  { %2400 = vsyncpa [#allocation3 + $0x1], 1 }

// kernel: bottleneck_pallas.7
= control target key start
LH: loop header
LB: loop body
LE: loop exit
PB: predicated region body
PF: predicated region fallthrough
CT: control target
= control target key end

     0   :  { %s192_s0 = inlined_call_operand.vmem [shape: f32[32,256], index: 0, kind: input, shape index: {}]   ;;  %s193_s1 = inlined_call_operand.vmem [shape: f32[32,256], index: 1, kind: input, shape index: {}]   ;;  %s194_s2 = inlined_call_operand.vmem [shape: f32[1,256], index: 2, kind: input, shape index: {}]   ;;  %s195_s3 = inlined_call_operand.vmem [shape: f32[1,256], index: 3, kind: input, shape index: {}]   ;;  %s196_s4 = inlined_call_operand.vmem [shape: f32[32,256], index: 4, kind: output, shape index: {}]  }
   0x1   :  { %v17_v0 = vld [vmem:[%s192_s0] sm:$0xff]  ;;  %v18_v4 = vld [vmem:[%s192_s0 + $0x8] sm:$0xff]  ;;  %v19_v9 = vld [vmem:[%s192_s0 + $0x10] sm:$0xff] }
   0x2   :  { %v33_v1 = vld [vmem:[%s194_s2] sm:$0x3]  ;;  %v20_v10 = vld [vmem:[%s192_s0 + $0x18] sm:$0xff]  ;;  %v26_v12 = vld [vmem:[%s193_s1 + $0x8] sm:$0xff] }
   0x3   :  { %v35_v2 = vperm.slane %v33_v1, 0  ;;  %v47_v3 = vld [vmem:[%s195_s3] sm:$0x3]  ;;  %v36_v5 = vperm.slane %v33_v1, 1  ;;  %v27_v14 = vld [vmem:[%s193_s1 + $0x10] sm:$0xff]  ;;  %v28_v18 = vld [vmem:[%s193_s1 + $0x18] sm:$0xff] }
   0x4   :  { %v25_v6 = vld [vmem:[%s193_s1] sm:$0xff]  ;;  %v49_v7 = vperm.slane %v47_v3, 0  ;;  %v50_v8 = vperm.slane %v47_v3, 1  ;;  %v22_v20 = vld [vmem:[%s192_s0 + $0x28] sm:$0xff]  ;;  %v23_v21 = vld [vmem:[%s192_s0 + $0x30] sm:$0xff] }
   0x5   :  { %v39_v11 = vmul.f32 %v35_v2, %v17_v0  ;;  %v40_v13 = vmul.f32 %v36_v5, %v18_v4  ;;  %v41_v15 = vmul.f32 %v35_v2, %v19_v9  ;;  %v42_v16 = vmul.f32 %v36_v5, %v20_v10  ;;  %v21_v17 = vld [vmem:[%s192_s0 + $0x20] sm:$0xff]  ;;  %v24_v27 = vld [vmem:[%s192_s0 + $0x38] sm:$0xff]  ;;  %v30_v36 = vld [vmem:[%s193_s1 + $0x28] sm:$0xff] }
   0x6   :  { %v43_v19 = vmul.f32 %v35_v2, %v21_v17  ;;  %v29_v26 = vld [vmem:[%s193_s1 + $0x20] sm:$0xff]  ;;  %v44_v29 = vmul.f32 %v36_v5, %v22_v20  ;;  %v45_v30 = vmul.f32 %v35_v2, %v23_v21  ;;  %v46_v31 = vmul.f32 %v36_v5, %v24_v27  ;;  %v31_v37 = vld [vmem:[%s193_s1 + $0x30] sm:$0xff]  ;;  %v32_v38 = vld [vmem:[%s193_s1 + $0x38] sm:$0xff] }
   0x7   :  { %v53_v22 = vadd.f32 %v49_v7, %v39_v11  ;;  %v54_v23 = vadd.f32 %v50_v8, %v40_v13  ;;  %v55_v24 = vadd.f32 %v49_v7, %v41_v15  ;;  %v56_v25 = vadd.f32 %v50_v8, %v42_v16 }
   0x8   :  { %v57_v28 = vadd.f32 %v49_v7, %v43_v19  ;;  %v58_v40 = vadd.f32 %v50_v8, %v44_v29  ;;  %v59_v41 = vadd.f32 %v49_v7, %v45_v30  ;;  %v60_v42 = vadd.f32 %v50_v8, %v46_v31 }
   0x9   :  { %v61_v32 = vadd.f32 %v53_v22, %v25_v6  ;;  %v62_v33 = vadd.f32 %v54_v23, %v26_v12  ;;  %v63_v34 = vadd.f32 %v55_v24, %v27_v14  ;;  %v64_v35 = vadd.f32 %v56_v25, %v28_v18 }
   0xa   :  { %v65_v39 = vadd.f32 %v57_v28, %v29_v26  ;;  %v66_v47 = vadd.f32 %v58_v40, %v30_v36  ;;  %v67_v48 = vadd.f32 %v59_v41, %v31_v37  ;;  %v68_v49 = vadd.f32 %v60_v42, %v32_v38 }
   0xb   :  { %v69_v43 = vmax.f32 %v61_v32, 0.0  ;;  %v70_v44 = vmax.f32 %v62_v33, 0.0  ;;  %v71_v45 = vmax.f32 %v63_v34, 0.0  ;;  %v72_v46 = vmax.f32 %v64_v35, 0.0 }
   0xc   :  { %v73_v50 = vmax.f32 %v65_v39, 0.0  ;;  %v74_v51 = vmax.f32 %v66_v47, 0.0  ;;  %v75_v52 = vmax.f32 %v67_v48, 0.0  ;;  %v76_v53 = vmax.f32 %v68_v49, 0.0 }
   0xd   :  { %77 = vst [vmem:[%s196_s4] sm:$0xff] %v69_v43 }
   0xe   :  { %78 = vst [vmem:[%s196_s4 + $0x8] sm:$0xff] %v70_v44 }
   0xf   :  { %79 = vst [vmem:[%s196_s4 + $0x10] sm:$0xff] %v71_v45 }
  0x10   :  { %80 = vst [vmem:[%s196_s4 + $0x18] sm:$0xff] %v72_v46 }
  0x11   :  { %81 = vst [vmem:[%s196_s4 + $0x20] sm:$0xff] %v73_v50 }
  0x12   :  { %82 = vst [vmem:[%s196_s4 + $0x28] sm:$0xff] %v74_v51 }
  0x13   :  { %83 = vst [vmem:[%s196_s4 + $0x30] sm:$0xff] %v75_v52 }
  0x14   :  { %84 = vst [vmem:[%s196_s4 + $0x38] sm:$0xff] %v76_v53 }

</bundles_post_ra>
